<compile_context>
chip_gen: v7x
topology: tpu7x:2x2x1
jax: 0.10.0
libtpu: 0.0.40
codegen_flags: <defaults>
</compile_context>

<pallas_src>
import jax
import jax.numpy as jnp
from jax.experimental import pallas as pl
from jax.experimental.pallas import tpu as pltpu

N_MFCC = 40
H1 = 64
H2 = 128
LSTM_HIDDEN = 64
NUM_LAYERS = 2
NUM_DIR = 2
SEQ = 8
BN_EPS = 1e-5
OUT_PAD = 128                      # lane-dense padded output width (real = 40)

HD = LSTM_HIDDEN                   # 64
H2D = NUM_DIR * HD                 # 128 : fused [fwd|bwd] state width
G8 = 8 * HD                        # 512 : fused gate width


def mlp_lstm_kernel(x_ref, w1_ref, w2_ref, wih_ref, whh_ref, bl_ref,
                    wlin_ref, vecs_ref, out_ref):
    n = x_ref.shape[0]

    # Packed small params: rows = b1,g1,be1,b2,g2,be2,blin_pad,s0_0,s0_1,c0_0,c0_1
    vp = vecs_ref[...]                                   # (11, 128) f32
    b1, g1, be1 = vp[0:1, :H1], vp[1:2, :H1], vp[2:3, :H1]
    b2, g2, be2 = vp[3:4, :], vp[4:5, :], vp[5:6, :]
    blin = vp[6:7, :]

    def batchnorm(h, gamma, beta):
        # Single-pass train-mode BatchNorm1d (biased variance), gamma*rsqrt
        # folded into one scale vector; variance clamped as cheap insurance.
        inv_n = 1.0 / n
        mu = jnp.sum(h, axis=0, keepdims=True) * inv_n
        ex2 = jnp.sum(h * h, axis=0, keepdims=True) * inv_n
        var = jnp.maximum(ex2 - mu * mu, 0.0)
        scale = gamma * jax.lax.rsqrt(var + BN_EPS)
        return h * scale + (beta - mu * scale)

    # ---- feed-forward front end (bf16 operands, f32 accumulation) -------------
    h = jnp.dot(x_ref[...].astype(jnp.bfloat16), w1_ref[...],
                preferred_element_type=jnp.float32) + b1
    h = jnp.maximum(batchnorm(h, g1, be1), 0.0)
    h = jnp.dot(h.astype(jnp.bfloat16), w2_ref[...],
                preferred_element_type=jnp.float32) + b2
    seq = batchnorm(h, g2, be2)                          # (N, 128) f32

    # Masks hoisted out of the layer loop (JAX does not CSE iota/broadcast).
    lane_g = jax.lax.broadcasted_iota(jnp.int32, (1, G8), 1)
    fwd_gate_mask = (lane_g & HD) == 0                   # fwd-direction gate lanes
    lane_s = jax.lax.broadcasted_iota(jnp.int32, (n, H2D), 1)
    fwd_state_mask = lane_s < HD                         # fwd half of the state

    # ---- 2-layer bidirectional LSTM, both directions fused per layer ----------
    for layer in range(NUM_LAYERS):
        whh = whh_ref[layer]                             # (128, 512) bf16

        # Hoisted dense input projection for the whole sequence, bias folded in.
        # Row t: fwd lanes = W_ih_f x_t + b_f, bwd lanes = W_ih_b x_t + b_b.
        xd = jnp.dot(seq.astype(jnp.bfloat16), wih_ref[layer],
                     preferred_element_type=jnp.float32) + bl_ref[layer]  # (N,512)

        s = vp[7 + layer:8 + layer, :]                   # (1,128) = [h_fwd|h_bwd]
        c = vp[9 + layer:10 + layer, :]                  # (1,128) = [c_fwd|c_bwd]
        hs = []
        for t in range(n):                               # 8 serial fused steps
            rt = n - 1 - t
            # Per-step direction merge: fwd lanes use x_t, bwd lanes use x_{n-1-t}.
            # whh is loop-invariant -> Mosaic keeps the MXU RHS staged across steps.
            gates = jnp.where(fwd_gate_mask, xd[t:t + 1, :], xd[rt:rt + 1, :]) + jnp.dot(
                s.astype(jnp.bfloat16), whh, preferred_element_type=jnp.float32)
            # sigmoid(x) = 0.5*tanh(0.5x)+0.5 : one EUP pass per vreg.
            sg = 0.5 * jnp.tanh(0.5 * gates[:, 0:6 * HD]) + 0.5   # i|f|o, both dirs
            gg = jnp.tanh(gates[:, 6 * HD:G8])                     # g, both dirs
            i_g = sg[:, 0:H2D]
            f_g = sg[:, H2D:2 * H2D]
            o_g = sg[:, 2 * H2D:3 * H2D]
            c = f_g * c + i_g * gg
            s = o_g * jnp.tanh(c)
            hs.append(s)                                  # stays in registers

        # Un-fuse: output row t = [h_fwd(step t) | h_bwd(step n-1-t)].
        fwd_rows = jnp.concatenate(hs, axis=0)            # (N, 128)
        bwd_rows = jnp.concatenate(hs[::-1], axis=0)      # (N, 128)
        seq = jnp.where(fwd_state_mask, fwd_rows, bwd_rows)

    # ---- output projection Linear(128, 40), lane-dense padded to 128 ----------
    out_ref[...] = jnp.dot(seq.astype(jnp.bfloat16), wlin_ref[...],
                           preferred_element_type=jnp.float32) + blin


def init_params(key):
    ks = jax.random.split(key, 12)

    def linear(k, fan_in, fan_out):
        bound = 1.0 / float(fan_in) ** 0.5
        kw, kb = jax.random.split(k)
        w = jax.random.uniform(kw, (fan_in, fan_out), jnp.float32, -bound, bound)
        b = jax.random.uniform(kb, (1, fan_out), jnp.float32, -bound, bound)
        return w, b

    w1, b1 = linear(ks[0], N_MFCC, H1)
    g1 = jnp.ones((1, H1), jnp.float32)
    be1 = jnp.zeros((1, H1), jnp.float32)
    w2, b2 = linear(ks[1], H1, H2)
    g2 = jnp.ones((1, H2), jnp.float32)
    be2 = jnp.zeros((1, H2), jnp.float32)

    # Raw per-(layer,direction) LSTM params, PyTorch semantics, stored transposed:
    # wih_T (128,4H) / whh_T (64,4H), gate-column order [i,f,g,o]; bias = b_ih+b_hh.
    wih_raw, whh_raw, b_raw = [], [], []
    for idx in range(NUM_LAYERS * NUM_DIR):
        kih, khh, kb1, kb2 = jax.random.split(ks[2 + idx], 4)
        bound = 1.0 / float(HD) ** 0.5
        wih_raw.append(jax.random.uniform(kih, (H2, 4 * HD), jnp.float32, -bound, bound))
        whh_raw.append(jax.random.uniform(khh, (HD, 4 * HD), jnp.float32, -bound, bound))
        bih = jax.random.uniform(kb1, (1, 4 * HD), jnp.float32, -bound, bound)
        bhh = jax.random.uniform(kb2, (1, 4 * HD), jnp.float32, -bound, bound)
        b_raw.append(bih + bhh)

    h0_raw = jax.random.normal(ks[6], (NUM_LAYERS * NUM_DIR, 1, HD), jnp.float32)
    c0_raw = jax.random.normal(ks[7], (NUM_LAYERS * NUM_DIR, 1, HD), jnp.float32)

    wlin_raw, blin = linear(ks[8], H2D, N_MFCC)

    # Fused 8-block column layout (512 lanes): [i_f,i_b, f_f,f_b, o_f,o_b, g_f,g_b]
    src_gate = (0, 1, 3, 2)    # raw [i,f,g,o] indices feeding fused slots (i,f,o,g)

    def fuse_bidir(raw_f, raw_b):
        """Interleave two (rows,4H) per-direction matrices into the fused (rows,8H) layout."""
        rows = raw_f.shape[0]
        out = jnp.zeros((rows, G8), jnp.float32)
        for slot, gsrc in enumerate(src_gate):
            out = out.at[:, (2 * slot) * HD:(2 * slot + 1) * HD].set(
                raw_f[:, gsrc * HD:(gsrc + 1) * HD])
            out = out.at[:, (2 * slot + 1) * HD:(2 * slot + 2) * HD].set(
                raw_b[:, gsrc * HD:(gsrc + 1) * HD])
        return out

    wih_l, whh_l, bl_l, s0_l, c0_l = [], [], [], [], []
    for layer in range(NUM_LAYERS):
        fi = NUM_DIR * layer       # forward-direction flat index
        bi = fi + 1                # backward-direction flat index
        # Dense fused input projection: fwd weights in fwd lanes, bwd in bwd lanes.
        wih_l.append(fuse_bidir(wih_raw[fi], wih_raw[bi]))              # (128, 512)
        zf = jnp.zeros_like(whh_raw[fi])
        whh = jnp.zeros((H2D, G8), jnp.float32)                         # block-diagonal
        whh = whh.at[0:HD, :].set(fuse_bidir(whh_raw[fi], zf))
        whh = whh.at[HD:H2D, :].set(fuse_bidir(zf, whh_raw[bi]))
        whh_l.append(whh)                                               # (128, 512)
        bl_l.append(fuse_bidir(b_raw[fi], b_raw[bi]))                   # (1, 512)
        s0_l.append(jnp.concatenate([h0_raw[fi], h0_raw[bi]], axis=1))  # (1, 128)
        c0_l.append(jnp.concatenate([c0_raw[fi], c0_raw[bi]], axis=1))

    wih = jnp.stack(wih_l).astype(jnp.bfloat16)      # (2, 128, 512) bf16
    whh = jnp.stack(whh_l).astype(jnp.bfloat16)      # (2, 128, 512) bf16
    bl = jnp.stack(bl_l)                             # (2, 1, 512) f32

    # Lane-dense padded output projection (cols 40:128 zero, sliced in wrapper).
    wlin = jnp.zeros((H2D, OUT_PAD), jnp.float32).at[:, :N_MFCC].set(wlin_raw)
    wlin = wlin.astype(jnp.bfloat16)

    # Pack all tiny vectors into one (11,128) array -> one DMA instead of ten.
    vecs = jnp.zeros((11, 128), jnp.float32)
    vecs = vecs.at[0, :H1].set(b1[0]).at[1, :H1].set(g1[0]).at[2, :H1].set(be1[0])
    vecs = vecs.at[3, :].set(b2[0]).at[4, :].set(g2[0]).at[5, :].set(be2[0])
    vecs = vecs.at[6, :N_MFCC].set(blin[0])
    vecs = vecs.at[7, :].set(s0_l[0][0]).at[8, :].set(s0_l[1][0])
    vecs = vecs.at[9, :].set(c0_l[0][0]).at[10, :].set(c0_l[1][0])

    return (w1.astype(jnp.bfloat16), w2.astype(jnp.bfloat16),
            wih, whh, bl, wlin, vecs)


@jax.jit
def mlp_forward(x, params):
    n = x.shape[0]
    args = (x,) + tuple(params)
    vmem = pl.BlockSpec(memory_space=pltpu.MemorySpace.VMEM)

    # Advisory cost estimate so XLA can schedule around this tiny custom call.
    macs = n * (N_MFCC * H1 + H1 * H2 + H2 * OUT_PAD) + NUM_LAYERS * 2 * n * H2 * G8
    trans = NUM_LAYERS * n * (6 * HD + 2 * HD + 2 * HD)
    bytes_accessed = int(sum(a.size * a.dtype.itemsize for a in args) + n * OUT_PAD * 4)

    out = pl.pallas_call(
        mlp_lstm_kernel,
        out_shape=jax.ShapeDtypeStruct((n, OUT_PAD), jnp.float32),
        in_specs=[vmem] * len(args),
        out_specs=vmem,
        cost_estimate=pl.CostEstimate(
            flops=2 * macs, transcendentals=trans, bytes_accessed=bytes_accessed),
    )(*args)
    return out[:, :N_MFCC]


if __name__ == "__main__":
    key = jax.random.PRNGKey(0)
    kx, kp = jax.random.split(key)
    x = jax.random.normal(kx, (SEQ, N_MFCC), jnp.float32)   # (seq=8, n_mfcc=40)
    params = init_params(kp)

    out = mlp_forward(x, params)
    out = jax.block_until_ready(out)

    assert out.shape == (SEQ, N_MFCC), out.shape
    assert bool(jnp.all(jnp.isfinite(out)))
    print("KERNEL_OK")
</pallas_src>

<mosaic_0001>
module attributes {stable_mosaic.version = 11 : i64} {
  func.func @mlp_lstm_kernel(%arg0: memref<8x40xf32, #tpu.memory_space<vmem>>, %arg1: memref<40x64xbf16, #tpu.memory_space<vmem>>, %arg2: memref<64x128xbf16, #tpu.memory_space<vmem>>, %arg3: memref<2x128x512xbf16, #tpu.memory_space<vmem>>, %arg4: memref<2x128x512xbf16, #tpu.memory_space<vmem>>, %arg5: memref<2x1x512xf32, #tpu.memory_space<vmem>>, %arg6: memref<128x128xbf16, #tpu.memory_space<vmem>>, %arg7: memref<11x128xf32, #tpu.memory_space<vmem>>, %arg8: memref<8x128xf32, #tpu.memory_space<vmem>>) attributes {dimension_semantics = [], scalar_prefetch = 0 : i64, scratch_operands = 0 : i64, tpu.core_type = #tpu.core_type<tc>} {
    %c0 = arith.constant 0 : index
    %c0_0 = arith.constant 0 : index
    %0 = vector.load %arg7[%c0, %c0_0] : memref<11x128xf32, #tpu.memory_space<vmem>>, vector<11x128xf32>
    %1 = vector.extract_strided_slice %0 {offsets = [0, 0], sizes = [1, 64], strides = [1, 1]} : vector<11x128xf32> to vector<1x64xf32>
    %2 = vector.extract_strided_slice %0 {offsets = [1, 0], sizes = [1, 64], strides = [1, 1]} : vector<11x128xf32> to vector<1x64xf32>
    %3 = vector.extract_strided_slice %0 {offsets = [2, 0], sizes = [1, 64], strides = [1, 1]} : vector<11x128xf32> to vector<1x64xf32>
    %4 = vector.extract_strided_slice %0 {offsets = [3, 0], sizes = [1, 128], strides = [1, 1]} : vector<11x128xf32> to vector<1x128xf32>
    %5 = vector.extract_strided_slice %0 {offsets = [4, 0], sizes = [1, 128], strides = [1, 1]} : vector<11x128xf32> to vector<1x128xf32>
    %6 = vector.extract_strided_slice %0 {offsets = [5, 0], sizes = [1, 128], strides = [1, 1]} : vector<11x128xf32> to vector<1x128xf32>
    %7 = vector.extract_strided_slice %0 {offsets = [6, 0], sizes = [1, 128], strides = [1, 1]} : vector<11x128xf32> to vector<1x128xf32>
    %c0_1 = arith.constant 0 : index
    %c0_2 = arith.constant 0 : index
    %8 = vector.load %arg0[%c0_1, %c0_2] : memref<8x40xf32, #tpu.memory_space<vmem>>, vector<8x40xf32>
    %9 = arith.truncf %8 : vector<8x40xf32> to vector<8x40xbf16>
    %c0_3 = arith.constant 0 : index
    %c0_4 = arith.constant 0 : index
    %10 = vector.load %arg1[%c0_3, %c0_4] : memref<40x64xbf16, #tpu.memory_space<vmem>>, vector<40x64xbf16>
    %cst = arith.constant dense<0.000000e+00> : vector<8x64xf32>
    %11 = tpu.matmul %9, %10, %cst {dimension_numbers = #tpu.dot_dimension_numbers<[1], [0], [0], [1], [0, 0, 1, 1], [], []>} : vector<8x40xbf16>, vector<40x64xbf16>, vector<8x64xf32> -> vector<8x64xf32>
    %12 = vector.broadcast %1 : vector<1x64xf32> to vector<8x64xf32>
    %13 = arith.addf %11, %12 : vector<8x64xf32>
    %cst_5 = arith.constant dense<0.000000e+00> : vector<64xf32>
    %14 = vector.multi_reduction <add>, %13, %cst_5 [0] : vector<8x64xf32> to vector<64xf32>
    %15 = vector.shape_cast %14 : vector<64xf32> to vector<1x64xf32>
    %cst_6 = arith.constant 1.250000e-01 : f32
    %16 = vector.broadcast %cst_6 : f32 to vector<1x64xf32>
    %17 = arith.mulf %15, %16 : vector<1x64xf32>
    %18 = arith.mulf %13, %13 : vector<8x64xf32>
    %cst_7 = arith.constant dense<0.000000e+00> : vector<64xf32>
    %19 = vector.multi_reduction <add>, %18, %cst_7 [0] : vector<8x64xf32> to vector<64xf32>
    %20 = vector.shape_cast %19 : vector<64xf32> to vector<1x64xf32>
    %cst_8 = arith.constant 1.250000e-01 : f32
    %21 = vector.broadcast %cst_8 : f32 to vector<1x64xf32>
    %22 = arith.mulf %20, %21 : vector<1x64xf32>
    %23 = arith.mulf %17, %17 : vector<1x64xf32>
    %24 = arith.subf %22, %23 : vector<1x64xf32>
    %cst_9 = arith.constant 0.000000e+00 : f32
    %25 = vector.broadcast %cst_9 : f32 to vector<1x64xf32>
    %26 = arith.maximumf %24, %25 : vector<1x64xf32>
    %cst_10 = arith.constant 9.99999974E-6 : f32
    %27 = vector.broadcast %cst_10 : f32 to vector<1x64xf32>
    %28 = arith.addf %26, %27 : vector<1x64xf32>
    %29 = math.rsqrt %28 : vector<1x64xf32>
    %30 = arith.mulf %2, %29 : vector<1x64xf32>
    %31 = vector.broadcast %30 : vector<1x64xf32> to vector<8x64xf32>
    %32 = arith.mulf %13, %31 : vector<8x64xf32>
    %33 = arith.mulf %17, %30 : vector<1x64xf32>
    %34 = arith.subf %3, %33 : vector<1x64xf32>
    %35 = vector.broadcast %34 : vector<1x64xf32> to vector<8x64xf32>
    %36 = arith.addf %32, %35 : vector<8x64xf32>
    %cst_11 = arith.constant 0.000000e+00 : f32
    %37 = vector.broadcast %cst_11 : f32 to vector<8x64xf32>
    %38 = arith.maximumf %36, %37 : vector<8x64xf32>
    %39 = arith.truncf %38 : vector<8x64xf32> to vector<8x64xbf16>
    %c0_12 = arith.constant 0 : index
    %c0_13 = arith.constant 0 : index
    %40 = vector.load %arg2[%c0_12, %c0_13] : memref<64x128xbf16, #tpu.memory_space<vmem>>, vector<64x128xbf16>
    %cst_14 = arith.constant dense<0.000000e+00> : vector<8x128xf32>
    %41 = tpu.matmul %39, %40, %cst_14 {dimension_numbers = #tpu.dot_dimension_numbers<[1], [0], [0], [1], [0, 0, 1, 1], [], []>} : vector<8x64xbf16>, vector<64x128xbf16>, vector<8x128xf32> -> vector<8x128xf32>
    %42 = vector.broadcast %4 : vector<1x128xf32> to vector<8x128xf32>
    %43 = arith.addf %41, %42 : vector<8x128xf32>
    %cst_15 = arith.constant dense<0.000000e+00> : vector<128xf32>
    %44 = vector.multi_reduction <add>, %43, %cst_15 [0] : vector<8x128xf32> to vector<128xf32>
    %45 = vector.shape_cast %44 : vector<128xf32> to vector<1x128xf32>
    %cst_16 = arith.constant 1.250000e-01 : f32
    %46 = vector.broadcast %cst_16 : f32 to vector<1x128xf32>
    %47 = arith.mulf %45, %46 : vector<1x128xf32>
    %48 = arith.mulf %43, %43 : vector<8x128xf32>
    %cst_17 = arith.constant dense<0.000000e+00> : vector<128xf32>
    %49 = vector.multi_reduction <add>, %48, %cst_17 [0] : vector<8x128xf32> to vector<128xf32>
    %50 = vector.shape_cast %49 : vector<128xf32> to vector<1x128xf32>
    %cst_18 = arith.constant 1.250000e-01 : f32
    %51 = vector.broadcast %cst_18 : f32 to vector<1x128xf32>
    %52 = arith.mulf %50, %51 : vector<1x128xf32>
    %53 = arith.mulf %47, %47 : vector<1x128xf32>
    %54 = arith.subf %52, %53 : vector<1x128xf32>
    %cst_19 = arith.constant 0.000000e+00 : f32
    %55 = vector.broadcast %cst_19 : f32 to vector<1x128xf32>
    %56 = arith.maximumf %54, %55 : vector<1x128xf32>
    %cst_20 = arith.constant 9.99999974E-6 : f32
    %57 = vector.broadcast %cst_20 : f32 to vector<1x128xf32>
    %58 = arith.addf %56, %57 : vector<1x128xf32>
    %59 = math.rsqrt %58 : vector<1x128xf32>
    %60 = arith.mulf %5, %59 : vector<1x128xf32>
    %61 = vector.broadcast %60 : vector<1x128xf32> to vector<8x128xf32>
    %62 = arith.mulf %43, %61 : vector<8x128xf32>
    %63 = arith.mulf %47, %60 : vector<1x128xf32>
    %64 = arith.subf %6, %63 : vector<1x128xf32>
    %65 = vector.broadcast %64 : vector<1x128xf32> to vector<8x128xf32>
    %66 = arith.addf %62, %65 : vector<8x128xf32>
    %67 = tpu.iota {dimensions = array<i32: 1>} : vector<1x512xi32>
    %c64_i32 = arith.constant 64 : i32
    %68 = vector.broadcast %c64_i32 : i32 to vector<1x512xi32>
    %69 = arith.andi %67, %68 : vector<1x512xi32>
    %c0_i32 = arith.constant 0 : i32
    %70 = vector.broadcast %c0_i32 : i32 to vector<1x512xi32>
    %71 = arith.cmpi eq, %69, %70 : vector<1x512xi32>
    %72 = tpu.iota {dimensions = array<i32: 1>} : vector<8x128xi32>
    %c64_i32_21 = arith.constant 64 : i32
    %73 = vector.broadcast %c64_i32_21 : i32 to vector<8x128xi32>
    %74 = arith.cmpi slt, %72, %73 : vector<8x128xi32>
    %c0_22 = arith.constant 0 : index
    %c0_23 = arith.constant 0 : index
    %c0_24 = arith.constant 0 : index
    %75 = vector.load %arg4[%c0_22, %c0_23, %c0_24] : memref<2x128x512xbf16, #tpu.memory_space<vmem>>, vector<1x128x512xbf16>
    %76 = vector.shape_cast %75 : vector<1x128x512xbf16> to vector<128x512xbf16>
    %77 = arith.truncf %66 : vector<8x128xf32> to vector<8x128xbf16>
    %c0_25 = arith.constant 0 : index
    %c0_26 = arith.constant 0 : index
    %c0_27 = arith.constant 0 : index
    %78 = vector.load %arg3[%c0_25, %c0_26, %c0_27] : memref<2x128x512xbf16, #tpu.memory_space<vmem>>, vector<1x128x512xbf16>
    %79 = vector.shape_cast %78 : vector<1x128x512xbf16> to vector<128x512xbf16>
    %cst_28 = arith.constant dense<0.000000e+00> : vector<8x512xf32>
    %80 = tpu.matmul %77, %79, %cst_28 {dimension_numbers = #tpu.dot_dimension_numbers<[1], [0], [0], [1], [0, 0, 1, 1], [], []>} : vector<8x128xbf16>, vector<128x512xbf16>, vector<8x512xf32> -> vector<8x512xf32>
    %c0_29 = arith.constant 0 : index
    %c0_30 = arith.constant 0 : index
    %c0_31 = arith.constant 0 : index
    %81 = vector.load %arg5[%c0_29, %c0_30, %c0_31] : memref<2x1x512xf32, #tpu.memory_space<vmem>>, vector<1x1x512xf32>
    %82 = vector.shape_cast %81 : vector<1x1x512xf32> to vector<1x512xf32>
    %83 = vector.broadcast %82 : vector<1x512xf32> to vector<8x512xf32>
    %84 = arith.addf %80, %83 : vector<8x512xf32>
    %85 = vector.extract_strided_slice %0 {offsets = [7, 0], sizes = [1, 128], strides = [1, 1]} : vector<11x128xf32> to vector<1x128xf32>
    %86 = vector.extract_strided_slice %0 {offsets = [9, 0], sizes = [1, 128], strides = [1, 1]} : vector<11x128xf32> to vector<1x128xf32>
    %87 = vector.extract_strided_slice %84 {offsets = [0, 0], sizes = [1, 512], strides = [1, 1]} : vector<8x512xf32> to vector<1x512xf32>
    %88 = vector.extract_strided_slice %84 {offsets = [7, 0], sizes = [1, 512], strides = [1, 1]} : vector<8x512xf32> to vector<1x512xf32>
    %89 = arith.select %71, %87, %88 : vector<1x512xi1>, vector<1x512xf32>
    %90 = arith.truncf %85 : vector<1x128xf32> to vector<1x128xbf16>
    %cst_32 = arith.constant dense<0.000000e+00> : vector<1x512xf32>
    %91 = tpu.matmul %90, %76, %cst_32 {dimension_numbers = #tpu.dot_dimension_numbers<[1], [0], [0], [1], [0, 0, 1, 1], [], []>} : vector<1x128xbf16>, vector<128x512xbf16>, vector<1x512xf32> -> vector<1x512xf32>
    %92 = arith.addf %89, %91 : vector<1x512xf32>
    %93 = vector.extract_strided_slice %92 {offsets = [0, 0], sizes = [1, 384], strides = [1, 1]} : vector<1x512xf32> to vector<1x384xf32>
    %cst_33 = arith.constant 5.000000e-01 : f32
    %94 = vector.broadcast %cst_33 : f32 to vector<1x384xf32>
    %95 = arith.mulf %94, %93 : vector<1x384xf32>
    %96 = math.tanh %95 : vector<1x384xf32>
    %cst_34 = arith.constant 5.000000e-01 : f32
    %97 = vector.broadcast %cst_34 : f32 to vector<1x384xf32>
    %98 = arith.mulf %97, %96 : vector<1x384xf32>
    %cst_35 = arith.constant 5.000000e-01 : f32
    %99 = vector.broadcast %cst_35 : f32 to vector<1x384xf32>
    %100 = arith.addf %98, %99 : vector<1x384xf32>
    %101 = vector.extract_strided_slice %92 {offsets = [0, 384], sizes = [1, 128], strides = [1, 1]} : vector<1x512xf32> to vector<1x128xf32>
    %102 = math.tanh %101 : vector<1x128xf32>
    %103 = vector.extract_strided_slice %100 {offsets = [0, 0], sizes = [1, 128], strides = [1, 1]} : vector<1x384xf32> to vector<1x128xf32>
    %104 = vector.extract_strided_slice %100 {offsets = [0, 128], sizes = [1, 128], strides = [1, 1]} : vector<1x384xf32> to vector<1x128xf32>
    %105 = vector.extract_strided_slice %100 {offsets = [0, 256], sizes = [1, 128], strides = [1, 1]} : vector<1x384xf32> to vector<1x128xf32>
    %106 = arith.mulf %104, %86 : vector<1x128xf32>
    %107 = arith.mulf %103, %102 : vector<1x128xf32>
    %108 = arith.addf %106, %107 : vector<1x128xf32>
    %109 = math.tanh %108 : vector<1x128xf32>
    %110 = arith.mulf %105, %109 : vector<1x128xf32>
    %111 = vector.extract_strided_slice %84 {offsets = [1, 0], sizes = [1, 512], strides = [1, 1]} : vector<8x512xf32> to vector<1x512xf32>
    %112 = vector.extract_strided_slice %84 {offsets = [6, 0], sizes = [1, 512], strides = [1, 1]} : vector<8x512xf32> to vector<1x512xf32>
    %113 = arith.select %71, %111, %112 : vector<1x512xi1>, vector<1x512xf32>
    %114 = arith.truncf %110 : vector<1x128xf32> to vector<1x128xbf16>
    %cst_36 = arith.constant dense<0.000000e+00> : vector<1x512xf32>
    %115 = tpu.matmul %114, %76, %cst_36 {dimension_numbers = #tpu.dot_dimension_numbers<[1], [0], [0], [1], [0, 0, 1, 1], [], []>} : vector<1x128xbf16>, vector<128x512xbf16>, vector<1x512xf32> -> vector<1x512xf32>
    %116 = arith.addf %113, %115 : vector<1x512xf32>
    %117 = vector.extract_strided_slice %116 {offsets = [0, 0], sizes = [1, 384], strides = [1, 1]} : vector<1x512xf32> to vector<1x384xf32>
    %cst_37 = arith.constant 5.000000e-01 : f32
    %118 = vector.broadcast %cst_37 : f32 to vector<1x384xf32>
    %119 = arith.mulf %118, %117 : vector<1x384xf32>
    %120 = math.tanh %119 : vector<1x384xf32>
    %cst_38 = arith.constant 5.000000e-01 : f32
    %121 = vector.broadcast %cst_38 : f32 to vector<1x384xf32>
    %122 = arith.mulf %121, %120 : vector<1x384xf32>
    %cst_39 = arith.constant 5.000000e-01 : f32
    %123 = vector.broadcast %cst_39 : f32 to vector<1x384xf32>
    %124 = arith.addf %122, %123 : vector<1x384xf32>
    %125 = vector.extract_strided_slice %116 {offsets = [0, 384], sizes = [1, 128], strides = [1, 1]} : vector<1x512xf32> to vector<1x128xf32>
    %126 = math.tanh %125 : vector<1x128xf32>
    %127 = vector.extract_strided_slice %124 {offsets = [0, 0], sizes = [1, 128], strides = [1, 1]} : vector<1x384xf32> to vector<1x128xf32>
    %128 = vector.extract_strided_slice %124 {offsets = [0, 128], sizes = [1, 128], strides = [1, 1]} : vector<1x384xf32> to vector<1x128xf32>
    %129 = vector.extract_strided_slice %124 {offsets = [0, 256], sizes = [1, 128], strides = [1, 1]} : vector<1x384xf32> to vector<1x128xf32>
    %130 = arith.mulf %128, %108 : vector<1x128xf32>
    %131 = arith.mulf %127, %126 : vector<1x128xf32>
    %132 = arith.addf %130, %131 : vector<1x128xf32>
    %133 = math.tanh %132 : vector<1x128xf32>
    %134 = arith.mulf %129, %133 : vector<1x128xf32>
    %135 = vector.extract_strided_slice %84 {offsets = [2, 0], sizes = [1, 512], strides = [1, 1]} : vector<8x512xf32> to vector<1x512xf32>
    %136 = vector.extract_strided_slice %84 {offsets = [5, 0], sizes = [1, 512], strides = [1, 1]} : vector<8x512xf32> to vector<1x512xf32>
    %137 = arith.select %71, %135, %136 : vector<1x512xi1>, vector<1x512xf32>
    %138 = arith.truncf %134 : vector<1x128xf32> to vector<1x128xbf16>
    %cst_40 = arith.constant dense<0.000000e+00> : vector<1x512xf32>
    %139 = tpu.matmul %138, %76, %cst_40 {dimension_numbers = #tpu.dot_dimension_numbers<[1], [0], [0], [1], [0, 0, 1, 1], [], []>} : vector<1x128xbf16>, vector<128x512xbf16>, vector<1x512xf32> -> vector<1x512xf32>
    %140 = arith.addf %137, %139 : vector<1x512xf32>
    %141 = vector.extract_strided_slice %140 {offsets = [0, 0], sizes = [1, 384], strides = [1, 1]} : vector<1x512xf32> to vector<1x384xf32>
    %cst_41 = arith.constant 5.000000e-01 : f32
    %142 = vector.broadcast %cst_41 : f32 to vector<1x384xf32>
    %143 = arith.mulf %142, %141 : vector<1x384xf32>
    %144 = math.tanh %143 : vector<1x384xf32>
    %cst_42 = arith.constant 5.000000e-01 : f32
    %145 = vector.broadcast %cst_42 : f32 to vector<1x384xf32>
    %146 = arith.mulf %145, %144 : vector<1x384xf32>
    %cst_43 = arith.constant 5.000000e-01 : f32
    %147 = vector.broadcast %cst_43 : f32 to vector<1x384xf32>
    %148 = arith.addf %146, %147 : vector<1x384xf32>
    %149 = vector.extract_strided_slice %140 {offsets = [0, 384], sizes = [1, 128], strides = [1, 1]} : vector<1x512xf32> to vector<1x128xf32>
    %150 = math.tanh %149 : vector<1x128xf32>
    %151 = vector.extract_strided_slice %148 {offsets = [0, 0], sizes = [1, 128], strides = [1, 1]} : vector<1x384xf32> to vector<1x128xf32>
    %152 = vector.extract_strided_slice %148 {offsets = [0, 128], sizes = [1, 128], strides = [1, 1]} : vector<1x384xf32> to vector<1x128xf32>
    %153 = vector.extract_strided_slice %148 {offsets = [0, 256], sizes = [1, 128], strides = [1, 1]} : vector<1x384xf32> to vector<1x128xf32>
    %154 = arith.mulf %152, %132 : vector<1x128xf32>
    %155 = arith.mulf %151, %150 : vector<1x128xf32>
    %156 = arith.addf %154, %155 : vector<1x128xf32>
    %157 = math.tanh %156 : vector<1x128xf32>
    %158 = arith.mulf %153, %157 : vector<1x128xf32>
    %159 = vector.extract_strided_slice %84 {offsets = [3, 0], sizes = [1, 512], strides = [1, 1]} : vector<8x512xf32> to vector<1x512xf32>
    %160 = vector.extract_strided_slice %84 {offsets = [4, 0], sizes = [1, 512], strides = [1, 1]} : vector<8x512xf32> to vector<1x512xf32>
    %161 = arith.select %71, %159, %160 : vector<1x512xi1>, vector<1x512xf32>
    %162 = arith.truncf %158 : vector<1x128xf32> to vector<1x128xbf16>
    %cst_44 = arith.constant dense<0.000000e+00> : vector<1x512xf32>
    %163 = tpu.matmul %162, %76, %cst_44 {dimension_numbers = #tpu.dot_dimension_numbers<[1], [0], [0], [1], [0, 0, 1, 1], [], []>} : vector<1x128xbf16>, vector<128x512xbf16>, vector<1x512xf32> -> vector<1x512xf32>
    %164 = arith.addf %161, %163 : vector<1x512xf32>
    %165 = vector.extract_strided_slice %164 {offsets = [0, 0], sizes = [1, 384], strides = [1, 1]} : vector<1x512xf32> to vector<1x384xf32>
    %cst_45 = arith.constant 5.000000e-01 : f32
    %166 = vector.broadcast %cst_45 : f32 to vector<1x384xf32>
    %167 = arith.mulf %166, %165 : vector<1x384xf32>
    %168 = math.tanh %167 : vector<1x384xf32>
    %cst_46 = arith.constant 5.000000e-01 : f32
    %169 = vector.broadcast %cst_46 : f32 to vector<1x384xf32>
    %170 = arith.mulf %169, %168 : vector<1x384xf32>
    %cst_47 = arith.constant 5.000000e-01 : f32
    %171 = vector.broadcast %cst_47 : f32 to vector<1x384xf32>
    %172 = arith.addf %170, %171 : vector<1x384xf32>
    %173 = vector.extract_strided_slice %164 {offsets = [0, 384], sizes = [1, 128], strides = [1, 1]} : vector<1x512xf32> to vector<1x128xf32>
    %174 = math.tanh %173 : vector<1x128xf32>
    %175 = vector.extract_strided_slice %172 {offsets = [0, 0], sizes = [1, 128], strides = [1, 1]} : vector<1x384xf32> to vector<1x128xf32>
    %176 = vector.extract_strided_slice %172 {offsets = [0, 128], sizes = [1, 128], strides = [1, 1]} : vector<1x384xf32> to vector<1x128xf32>
    %177 = vector.extract_strided_slice %172 {offsets = [0, 256], sizes = [1, 128], strides = [1, 1]} : vector<1x384xf32> to vector<1x128xf32>
    %178 = arith.mulf %176, %156 : vector<1x128xf32>
    %179 = arith.mulf %175, %174 : vector<1x128xf32>
    %180 = arith.addf %178, %179 : vector<1x128xf32>
    %181 = math.tanh %180 : vector<1x128xf32>
    %182 = arith.mulf %177, %181 : vector<1x128xf32>
    %183 = vector.extract_strided_slice %84 {offsets = [4, 0], sizes = [1, 512], strides = [1, 1]} : vector<8x512xf32> to vector<1x512xf32>
    %184 = vector.extract_strided_slice %84 {offsets = [3, 0], sizes = [1, 512], strides = [1, 1]} : vector<8x512xf32> to vector<1x512xf32>
    %185 = arith.select %71, %183, %184 : vector<1x512xi1>, vector<1x512xf32>
    %186 = arith.truncf %182 : vector<1x128xf32> to vector<1x128xbf16>
    %cst_48 = arith.constant dense<0.000000e+00> : vector<1x512xf32>
    %187 = tpu.matmul %186, %76, %cst_48 {dimension_numbers = #tpu.dot_dimension_numbers<[1], [0], [0], [1], [0, 0, 1, 1], [], []>} : vector<1x128xbf16>, vector<128x512xbf16>, vector<1x512xf32> -> vector<1x512xf32>
    %188 = arith.addf %185, %187 : vector<1x512xf32>
    %189 = vector.extract_strided_slice %188 {offsets = [0, 0], sizes = [1, 384], strides = [1, 1]} : vector<1x512xf32> to vector<1x384xf32>
    %cst_49 = arith.constant 5.000000e-01 : f32
    %190 = vector.broadcast %cst_49 : f32 to vector<1x384xf32>
    %191 = arith.mulf %190, %189 : vector<1x384xf32>
    %192 = math.tanh %191 : vector<1x384xf32>
    %cst_50 = arith.constant 5.000000e-01 : f32
    %193 = vector.broadcast %cst_50 : f32 to vector<1x384xf32>
    %194 = arith.mulf %193, %192 : vector<1x384xf32>
    %cst_51 = arith.constant 5.000000e-01 : f32
    %195 = vector.broadcast %cst_51 : f32 to vector<1x384xf32>
    %196 = arith.addf %194, %195 : vector<1x384xf32>
    %197 = vector.extract_strided_slice %188 {offsets = [0, 384], sizes = [1, 128], strides = [1, 1]} : vector<1x512xf32> to vector<1x128xf32>
    %198 = math.tanh %197 : vector<1x128xf32>
    %199 = vector.extract_strided_slice %196 {offsets = [0, 0], sizes = [1, 128], strides = [1, 1]} : vector<1x384xf32> to vector<1x128xf32>
    %200 = vector.extract_strided_slice %196 {offsets = [0, 128], sizes = [1, 128], strides = [1, 1]} : vector<1x384xf32> to vector<1x128xf32>
    %201 = vector.extract_strided_slice %196 {offsets = [0, 256], sizes = [1, 128], strides = [1, 1]} : vector<1x384xf32> to vector<1x128xf32>
    %202 = arith.mulf %200, %180 : vector<1x128xf32>
    %203 = arith.mulf %199, %198 : vector<1x128xf32>
    %204 = arith.addf %202, %203 : vector<1x128xf32>
    %205 = math.tanh %204 : vector<1x128xf32>
    %206 = arith.mulf %201, %205 : vector<1x128xf32>
    %207 = vector.extract_strided_slice %84 {offsets = [5, 0], sizes = [1, 512], strides = [1, 1]} : vector<8x512xf32> to vector<1x512xf32>
    %208 = vector.extract_strided_slice %84 {offsets = [2, 0], sizes = [1, 512], strides = [1, 1]} : vector<8x512xf32> to vector<1x512xf32>
    %209 = arith.select %71, %207, %208 : vector<1x512xi1>, vector<1x512xf32>
    %210 = arith.truncf %206 : vector<1x128xf32> to vector<1x128xbf16>
    %cst_52 = arith.constant dense<0.000000e+00> : vector<1x512xf32>
    %211 = tpu.matmul %210, %76, %cst_52 {dimension_numbers = #tpu.dot_dimension_numbers<[1], [0], [0], [1], [0, 0, 1, 1], [], []>} : vector<1x128xbf16>, vector<128x512xbf16>, vector<1x512xf32> -> vector<1x512xf32>
    %212 = arith.addf %209, %211 : vector<1x512xf32>
    %213 = vector.extract_strided_slice %212 {offsets = [0, 0], sizes = [1, 384], strides = [1, 1]} : vector<1x512xf32> to vector<1x384xf32>
    %cst_53 = arith.constant 5.000000e-01 : f32
    %214 = vector.broadcast %cst_53 : f32 to vector<1x384xf32>
    %215 = arith.mulf %214, %213 : vector<1x384xf32>
    %216 = math.tanh %215 : vector<1x384xf32>
    %cst_54 = arith.constant 5.000000e-01 : f32
    %217 = vector.broadcast %cst_54 : f32 to vector<1x384xf32>
    %218 = arith.mulf %217, %216 : vector<1x384xf32>
    %cst_55 = arith.constant 5.000000e-01 : f32
    %219 = vector.broadcast %cst_55 : f32 to vector<1x384xf32>
    %220 = arith.addf %218, %219 : vector<1x384xf32>
    %221 = vector.extract_strided_slice %212 {offsets = [0, 384], sizes = [1, 128], strides = [1, 1]} : vector<1x512xf32> to vector<1x128xf32>
    %222 = math.tanh %221 : vector<1x128xf32>
    %223 = vector.extract_strided_slice %220 {offsets = [0, 0], sizes = [1, 128], strides = [1, 1]} : vector<1x384xf32> to vector<1x128xf32>
    %224 = vector.extract_strided_slice %220 {offsets = [0, 128], sizes = [1, 128], strides = [1, 1]} : vector<1x384xf32> to vector<1x128xf32>
    %225 = vector.extract_strided_slice %220 {offsets = [0, 256], sizes = [1, 128], strides = [1, 1]} : vector<1x384xf32> to vector<1x128xf32>
    %226 = arith.mulf %224, %204 : vector<1x128xf32>
    %227 = arith.mulf %223, %222 : vector<1x128xf32>
    %228 = arith.addf %226, %227 : vector<1x128xf32>
    %229 = math.tanh %228 : vector<1x128xf32>
    %230 = arith.mulf %225, %229 : vector<1x128xf32>
    %231 = vector.extract_strided_slice %84 {offsets = [6, 0], sizes = [1, 512], strides = [1, 1]} : vector<8x512xf32> to vector<1x512xf32>
    %232 = vector.extract_strided_slice %84 {offsets = [1, 0], sizes = [1, 512], strides = [1, 1]} : vector<8x512xf32> to vector<1x512xf32>
    %233 = arith.select %71, %231, %232 : vector<1x512xi1>, vector<1x512xf32>
    %234 = arith.truncf %230 : vector<1x128xf32> to vector<1x128xbf16>
    %cst_56 = arith.constant dense<0.000000e+00> : vector<1x512xf32>
    %235 = tpu.matmul %234, %76, %cst_56 {dimension_numbers = #tpu.dot_dimension_numbers<[1], [0], [0], [1], [0, 0, 1, 1], [], []>} : vector<1x128xbf16>, vector<128x512xbf16>, vector<1x512xf32> -> vector<1x512xf32>
    %236 = arith.addf %233, %235 : vector<1x512xf32>
    %237 = vector.extract_strided_slice %236 {offsets = [0, 0], sizes = [1, 384], strides = [1, 1]} : vector<1x512xf32> to vector<1x384xf32>
    %cst_57 = arith.constant 5.000000e-01 : f32
    %238 = vector.broadcast %cst_57 : f32 to vector<1x384xf32>
    %239 = arith.mulf %238, %237 : vector<1x384xf32>
    %240 = math.tanh %239 : vector<1x384xf32>
    %cst_58 = arith.constant 5.000000e-01 : f32
    %241 = vector.broadcast %cst_58 : f32 to vector<1x384xf32>
    %242 = arith.mulf %241, %240 : vector<1x384xf32>
    %cst_59 = arith.constant 5.000000e-01 : f32
    %243 = vector.broadcast %cst_59 : f32 to vector<1x384xf32>
    %244 = arith.addf %242, %243 : vector<1x384xf32>
    %245 = vector.extract_strided_slice %236 {offsets = [0, 384], sizes = [1, 128], strides = [1, 1]} : vector<1x512xf32> to vector<1x128xf32>
    %246 = math.tanh %245 : vector<1x128xf32>
    %247 = vector.extract_strided_slice %244 {offsets = [0, 0], sizes = [1, 128], strides = [1, 1]} : vector<1x384xf32> to vector<1x128xf32>
    %248 = vector.extract_strided_slice %244 {offsets = [0, 128], sizes = [1, 128], strides = [1, 1]} : vector<1x384xf32> to vector<1x128xf32>
    %249 = vector.extract_strided_slice %244 {offsets = [0, 256], sizes = [1, 128], strides = [1, 1]} : vector<1x384xf32> to vector<1x128xf32>
    %250 = arith.mulf %248, %228 : vector<1x128xf32>
    %251 = arith.mulf %247, %246 : vector<1x128xf32>
    %252 = arith.addf %250, %251 : vector<1x128xf32>
    %253 = math.tanh %252 : vector<1x128xf32>
    %254 = arith.mulf %249, %253 : vector<1x128xf32>
    %255 = vector.extract_strided_slice %84 {offsets = [7, 0], sizes = [1, 512], strides = [1, 1]} : vector<8x512xf32> to vector<1x512xf32>
    %256 = vector.extract_strided_slice %84 {offsets = [0, 0], sizes = [1, 512], strides = [1, 1]} : vector<8x512xf32> to vector<1x512xf32>
    %257 = arith.select %71, %255, %256 : vector<1x512xi1>, vector<1x512xf32>
    %258 = arith.truncf %254 : vector<1x128xf32> to vector<1x128xbf16>
    %cst_60 = arith.constant dense<0.000000e+00> : vector<1x512xf32>
    %259 = tpu.matmul %258, %76, %cst_60 {dimension_numbers = #tpu.dot_dimension_numbers<[1], [0], [0], [1], [0, 0, 1, 1], [], []>} : vector<1x128xbf16>, vector<128x512xbf16>, vector<1x512xf32> -> vector<1x512xf32>
    %260 = arith.addf %257, %259 : vector<1x512xf32>
    %261 = vector.extract_strided_slice %260 {offsets = [0, 0], sizes = [1, 384], strides = [1, 1]} : vector<1x512xf32> to vector<1x384xf32>
    %cst_61 = arith.constant 5.000000e-01 : f32
    %262 = vector.broadcast %cst_61 : f32 to vector<1x384xf32>
    %263 = arith.mulf %262, %261 : vector<1x384xf32>
    %264 = math.tanh %263 : vector<1x384xf32>
    %cst_62 = arith.constant 5.000000e-01 : f32
    %265 = vector.broadcast %cst_62 : f32 to vector<1x384xf32>
    %266 = arith.mulf %265, %264 : vector<1x384xf32>
    %cst_63 = arith.constant 5.000000e-01 : f32
    %267 = vector.broadcast %cst_63 : f32 to vector<1x384xf32>
    %268 = arith.addf %266, %267 : vector<1x384xf32>
    %269 = vector.extract_strided_slice %260 {offsets = [0, 384], sizes = [1, 128], strides = [1, 1]} : vector<1x512xf32> to vector<1x128xf32>
    %270 = math.tanh %269 : vector<1x128xf32>
    %271 = vector.extract_strided_slice %268 {offsets = [0, 0], sizes = [1, 128], strides = [1, 1]} : vector<1x384xf32> to vector<1x128xf32>
    %272 = vector.extract_strided_slice %268 {offsets = [0, 128], sizes = [1, 128], strides = [1, 1]} : vector<1x384xf32> to vector<1x128xf32>
    %273 = vector.extract_strided_slice %268 {offsets = [0, 256], sizes = [1, 128], strides = [1, 1]} : vector<1x384xf32> to vector<1x128xf32>
    %274 = arith.mulf %272, %252 : vector<1x128xf32>
    %275 = arith.mulf %271, %270 : vector<1x128xf32>
    %276 = arith.addf %274, %275 : vector<1x128xf32>
    %277 = math.tanh %276 : vector<1x128xf32>
    %278 = arith.mulf %273, %277 : vector<1x128xf32>
    %279 = tpu.concatenate %110, %134, %158, %182, %206, %230, %254, %278 in 0 : vector<1x128xf32>, vector<1x128xf32>, vector<1x128xf32>, vector<1x128xf32>, vector<1x128xf32>, vector<1x128xf32>, vector<1x128xf32>, vector<1x128xf32> -> vector<8x128xf32>
    %280 = tpu.concatenate %278, %254, %230, %206, %182, %158, %134, %110 in 0 : vector<1x128xf32>, vector<1x128xf32>, vector<1x128xf32>, vector<1x128xf32>, vector<1x128xf32>, vector<1x128xf32>, vector<1x128xf32>, vector<1x128xf32> -> vector<8x128xf32>
    %281 = arith.select %74, %279, %280 : vector<8x128xi1>, vector<8x128xf32>
    %c1 = arith.constant 1 : index
    %c0_64 = arith.constant 0 : index
    %c0_65 = arith.constant 0 : index
    %282 = vector.load %arg4[%c1, %c0_64, %c0_65] : memref<2x128x512xbf16, #tpu.memory_space<vmem>>, vector<1x128x512xbf16>
    %283 = vector.shape_cast %282 : vector<1x128x512xbf16> to vector<128x512xbf16>
    %284 = arith.truncf %281 : vector<8x128xf32> to vector<8x128xbf16>
    %c1_66 = arith.constant 1 : index
    %c0_67 = arith.constant 0 : index
    %c0_68 = arith.constant 0 : index
    %285 = vector.load %arg3[%c1_66, %c0_67, %c0_68] : memref<2x128x512xbf16, #tpu.memory_space<vmem>>, vector<1x128x512xbf16>
    %286 = vector.shape_cast %285 : vector<1x128x512xbf16> to vector<128x512xbf16>
    %cst_69 = arith.constant dense<0.000000e+00> : vector<8x512xf32>
    %287 = tpu.matmul %284, %286, %cst_69 {dimension_numbers = #tpu.dot_dimension_numbers<[1], [0], [0], [1], [0, 0, 1, 1], [], []>} : vector<8x128xbf16>, vector<128x512xbf16>, vector<8x512xf32> -> vector<8x512xf32>
    %c1_70 = arith.constant 1 : index
    %c0_71 = arith.constant 0 : index
    %c0_72 = arith.constant 0 : index
    %288 = vector.load %arg5[%c1_70, %c0_71, %c0_72] : memref<2x1x512xf32, #tpu.memory_space<vmem>>, vector<1x1x512xf32>
    %289 = vector.shape_cast %288 : vector<1x1x512xf32> to vector<1x512xf32>
    %290 = vector.broadcast %289 : vector<1x512xf32> to vector<8x512xf32>
    %291 = arith.addf %287, %290 : vector<8x512xf32>
    %292 = vector.extract_strided_slice %0 {offsets = [8, 0], sizes = [1, 128], strides = [1, 1]} : vector<11x128xf32> to vector<1x128xf32>
    %293 = vector.extract_strided_slice %0 {offsets = [10, 0], sizes = [1, 128], strides = [1, 1]} : vector<11x128xf32> to vector<1x128xf32>
    %294 = vector.extract_strided_slice %291 {offsets = [0, 0], sizes = [1, 512], strides = [1, 1]} : vector<8x512xf32> to vector<1x512xf32>
    %295 = vector.extract_strided_slice %291 {offsets = [7, 0], sizes = [1, 512], strides = [1, 1]} : vector<8x512xf32> to vector<1x512xf32>
    %296 = arith.select %71, %294, %295 : vector<1x512xi1>, vector<1x512xf32>
    %297 = arith.truncf %292 : vector<1x128xf32> to vector<1x128xbf16>
    %cst_73 = arith.constant dense<0.000000e+00> : vector<1x512xf32>
    %298 = tpu.matmul %297, %283, %cst_73 {dimension_numbers = #tpu.dot_dimension_numbers<[1], [0], [0], [1], [0, 0, 1, 1], [], []>} : vector<1x128xbf16>, vector<128x512xbf16>, vector<1x512xf32> -> vector<1x512xf32>
    %299 = arith.addf %296, %298 : vector<1x512xf32>
    %300 = vector.extract_strided_slice %299 {offsets = [0, 0], sizes = [1, 384], strides = [1, 1]} : vector<1x512xf32> to vector<1x384xf32>
    %cst_74 = arith.constant 5.000000e-01 : f32
    %301 = vector.broadcast %cst_74 : f32 to vector<1x384xf32>
    %302 = arith.mulf %301, %300 : vector<1x384xf32>
    %303 = math.tanh %302 : vector<1x384xf32>
    %cst_75 = arith.constant 5.000000e-01 : f32
    %304 = vector.broadcast %cst_75 : f32 to vector<1x384xf32>
    %305 = arith.mulf %304, %303 : vector<1x384xf32>
    %cst_76 = arith.constant 5.000000e-01 : f32
    %306 = vector.broadcast %cst_76 : f32 to vector<1x384xf32>
    %307 = arith.addf %305, %306 : vector<1x384xf32>
    %308 = vector.extract_strided_slice %299 {offsets = [0, 384], sizes = [1, 128], strides = [1, 1]} : vector<1x512xf32> to vector<1x128xf32>
    %309 = math.tanh %308 : vector<1x128xf32>
    %310 = vector.extract_strided_slice %307 {offsets = [0, 0], sizes = [1, 128], strides = [1, 1]} : vector<1x384xf32> to vector<1x128xf32>
    %311 = vector.extract_strided_slice %307 {offsets = [0, 128], sizes = [1, 128], strides = [1, 1]} : vector<1x384xf32> to vector<1x128xf32>
    %312 = vector.extract_strided_slice %307 {offsets = [0, 256], sizes = [1, 128], strides = [1, 1]} : vector<1x384xf32> to vector<1x128xf32>
    %313 = arith.mulf %311, %293 : vector<1x128xf32>
    %314 = arith.mulf %310, %309 : vector<1x128xf32>
    %315 = arith.addf %313, %314 : vector<1x128xf32>
    %316 = math.tanh %315 : vector<1x128xf32>
    %317 = arith.mulf %312, %316 : vector<1x128xf32>
    %318 = vector.extract_strided_slice %291 {offsets = [1, 0], sizes = [1, 512], strides = [1, 1]} : vector<8x512xf32> to vector<1x512xf32>
    %319 = vector.extract_strided_slice %291 {offsets = [6, 0], sizes = [1, 512], strides = [1, 1]} : vector<8x512xf32> to vector<1x512xf32>
    %320 = arith.select %71, %318, %319 : vector<1x512xi1>, vector<1x512xf32>
    %321 = arith.truncf %317 : vector<1x128xf32> to vector<1x128xbf16>
    %cst_77 = arith.constant dense<0.000000e+00> : vector<1x512xf32>
    %322 = tpu.matmul %321, %283, %cst_77 {dimension_numbers = #tpu.dot_dimension_numbers<[1], [0], [0], [1], [0, 0, 1, 1], [], []>} : vector<1x128xbf16>, vector<128x512xbf16>, vector<1x512xf32> -> vector<1x512xf32>
    %323 = arith.addf %320, %322 : vector<1x512xf32>
    %324 = vector.extract_strided_slice %323 {offsets = [0, 0], sizes = [1, 384], strides = [1, 1]} : vector<1x512xf32> to vector<1x384xf32>
    %cst_78 = arith.constant 5.000000e-01 : f32
    %325 = vector.broadcast %cst_78 : f32 to vector<1x384xf32>
    %326 = arith.mulf %325, %324 : vector<1x384xf32>
    %327 = math.tanh %326 : vector<1x384xf32>
    %cst_79 = arith.constant 5.000000e-01 : f32
    %328 = vector.broadcast %cst_79 : f32 to vector<1x384xf32>
    %329 = arith.mulf %328, %327 : vector<1x384xf32>
    %cst_80 = arith.constant 5.000000e-01 : f32
    %330 = vector.broadcast %cst_80 : f32 to vector<1x384xf32>
    %331 = arith.addf %329, %330 : vector<1x384xf32>
    %332 = vector.extract_strided_slice %323 {offsets = [0, 384], sizes = [1, 128], strides = [1, 1]} : vector<1x512xf32> to vector<1x128xf32>
    %333 = math.tanh %332 : vector<1x128xf32>
    %334 = vector.extract_strided_slice %331 {offsets = [0, 0], sizes = [1, 128], strides = [1, 1]} : vector<1x384xf32> to vector<1x128xf32>
    %335 = vector.extract_strided_slice %331 {offsets = [0, 128], sizes = [1, 128], strides = [1, 1]} : vector<1x384xf32> to vector<1x128xf32>
    %336 = vector.extract_strided_slice %331 {offsets = [0, 256], sizes = [1, 128], strides = [1, 1]} : vector<1x384xf32> to vector<1x128xf32>
    %337 = arith.mulf %335, %315 : vector<1x128xf32>
    %338 = arith.mulf %334, %333 : vector<1x128xf32>
    %339 = arith.addf %337, %338 : vector<1x128xf32>
    %340 = math.tanh %339 : vector<1x128xf32>
    %341 = arith.mulf %336, %340 : vector<1x128xf32>
    %342 = vector.extract_strided_slice %291 {offsets = [2, 0], sizes = [1, 512], strides = [1, 1]} : vector<8x512xf32> to vector<1x512xf32>
    %343 = vector.extract_strided_slice %291 {offsets = [5, 0], sizes = [1, 512], strides = [1, 1]} : vector<8x512xf32> to vector<1x512xf32>
    %344 = arith.select %71, %342, %343 : vector<1x512xi1>, vector<1x512xf32>
    %345 = arith.truncf %341 : vector<1x128xf32> to vector<1x128xbf16>
    %cst_81 = arith.constant dense<0.000000e+00> : vector<1x512xf32>
    %346 = tpu.matmul %345, %283, %cst_81 {dimension_numbers = #tpu.dot_dimension_numbers<[1], [0], [0], [1], [0, 0, 1, 1], [], []>} : vector<1x128xbf16>, vector<128x512xbf16>, vector<1x512xf32> -> vector<1x512xf32>
    %347 = arith.addf %344, %346 : vector<1x512xf32>
    %348 = vector.extract_strided_slice %347 {offsets = [0, 0], sizes = [1, 384], strides = [1, 1]} : vector<1x512xf32> to vector<1x384xf32>
    %cst_82 = arith.constant 5.000000e-01 : f32
    %349 = vector.broadcast %cst_82 : f32 to vector<1x384xf32>
    %350 = arith.mulf %349, %348 : vector<1x384xf32>
    %351 = math.tanh %350 : vector<1x384xf32>
    %cst_83 = arith.constant 5.000000e-01 : f32
    %352 = vector.broadcast %cst_83 : f32 to vector<1x384xf32>
    %353 = arith.mulf %352, %351 : vector<1x384xf32>
    %cst_84 = arith.constant 5.000000e-01 : f32
    %354 = vector.broadcast %cst_84 : f32 to vector<1x384xf32>
    %355 = arith.addf %353, %354 : vector<1x384xf32>
    %356 = vector.extract_strided_slice %347 {offsets = [0, 384], sizes = [1, 128], strides = [1, 1]} : vector<1x512xf32> to vector<1x128xf32>
    %357 = math.tanh %356 : vector<1x128xf32>
    %358 = vector.extract_strided_slice %355 {offsets = [0, 0], sizes = [1, 128], strides = [1, 1]} : vector<1x384xf32> to vector<1x128xf32>
    %359 = vector.extract_strided_slice %355 {offsets = [0, 128], sizes = [1, 128], strides = [1, 1]} : vector<1x384xf32> to vector<1x128xf32>
    %360 = vector.extract_strided_slice %355 {offsets = [0, 256], sizes = [1, 128], strides = [1, 1]} : vector<1x384xf32> to vector<1x128xf32>
    %361 = arith.mulf %359, %339 : vector<1x128xf32>
    %362 = arith.mulf %358, %357 : vector<1x128xf32>
    %363 = arith.addf %361, %362 : vector<1x128xf32>
    %364 = math.tanh %363 : vector<1x128xf32>
    %365 = arith.mulf %360, %364 : vector<1x128xf32>
    %366 = vector.extract_strided_slice %291 {offsets = [3, 0], sizes = [1, 512], strides = [1, 1]} : vector<8x512xf32> to vector<1x512xf32>
    %367 = vector.extract_strided_slice %291 {offsets = [4, 0], sizes = [1, 512], strides = [1, 1]} : vector<8x512xf32> to vector<1x512xf32>
    %368 = arith.select %71, %366, %367 : vector<1x512xi1>, vector<1x512xf32>
    %369 = arith.truncf %365 : vector<1x128xf32> to vector<1x128xbf16>
    %cst_85 = arith.constant dense<0.000000e+00> : vector<1x512xf32>
    %370 = tpu.matmul %369, %283, %cst_85 {dimension_numbers = #tpu.dot_dimension_numbers<[1], [0], [0], [1], [0, 0, 1, 1], [], []>} : vector<1x128xbf16>, vector<128x512xbf16>, vector<1x512xf32> -> vector<1x512xf32>
    %371 = arith.addf %368, %370 : vector<1x512xf32>
    %372 = vector.extract_strided_slice %371 {offsets = [0, 0], sizes = [1, 384], strides = [1, 1]} : vector<1x512xf32> to vector<1x384xf32>
    %cst_86 = arith.constant 5.000000e-01 : f32
    %373 = vector.broadcast %cst_86 : f32 to vector<1x384xf32>
    %374 = arith.mulf %373, %372 : vector<1x384xf32>
    %375 = math.tanh %374 : vector<1x384xf32>
    %cst_87 = arith.constant 5.000000e-01 : f32
    %376 = vector.broadcast %cst_87 : f32 to vector<1x384xf32>
    %377 = arith.mulf %376, %375 : vector<1x384xf32>
    %cst_88 = arith.constant 5.000000e-01 : f32
    %378 = vector.broadcast %cst_88 : f32 to vector<1x384xf32>
    %379 = arith.addf %377, %378 : vector<1x384xf32>
    %380 = vector.extract_strided_slice %371 {offsets = [0, 384], sizes = [1, 128], strides = [1, 1]} : vector<1x512xf32> to vector<1x128xf32>
    %381 = math.tanh %380 : vector<1x128xf32>
    %382 = vector.extract_strided_slice %379 {offsets = [0, 0], sizes = [1, 128], strides = [1, 1]} : vector<1x384xf32> to vector<1x128xf32>
    %383 = vector.extract_strided_slice %379 {offsets = [0, 128], sizes = [1, 128], strides = [1, 1]} : vector<1x384xf32> to vector<1x128xf32>
    %384 = vector.extract_strided_slice %379 {offsets = [0, 256], sizes = [1, 128], strides = [1, 1]} : vector<1x384xf32> to vector<1x128xf32>
    %385 = arith.mulf %383, %363 : vector<1x128xf32>
    %386 = arith.mulf %382, %381 : vector<1x128xf32>
    %387 = arith.addf %385, %386 : vector<1x128xf32>
    %388 = math.tanh %387 : vector<1x128xf32>
    %389 = arith.mulf %384, %388 : vector<1x128xf32>
    %390 = vector.extract_strided_slice %291 {offsets = [4, 0], sizes = [1, 512], strides = [1, 1]} : vector<8x512xf32> to vector<1x512xf32>
    %391 = vector.extract_strided_slice %291 {offsets = [3, 0], sizes = [1, 512], strides = [1, 1]} : vector<8x512xf32> to vector<1x512xf32>
    %392 = arith.select %71, %390, %391 : vector<1x512xi1>, vector<1x512xf32>
    %393 = arith.truncf %389 : vector<1x128xf32> to vector<1x128xbf16>
    %cst_89 = arith.constant dense<0.000000e+00> : vector<1x512xf32>
    %394 = tpu.matmul %393, %283, %cst_89 {dimension_numbers = #tpu.dot_dimension_numbers<[1], [0], [0], [1], [0, 0, 1, 1], [], []>} : vector<1x128xbf16>, vector<128x512xbf16>, vector<1x512xf32> -> vector<1x512xf32>
    %395 = arith.addf %392, %394 : vector<1x512xf32>
    %396 = vector.extract_strided_slice %395 {offsets = [0, 0], sizes = [1, 384], strides = [1, 1]} : vector<1x512xf32> to vector<1x384xf32>
    %cst_90 = arith.constant 5.000000e-01 : f32
    %397 = vector.broadcast %cst_90 : f32 to vector<1x384xf32>
    %398 = arith.mulf %397, %396 : vector<1x384xf32>
    %399 = math.tanh %398 : vector<1x384xf32>
    %cst_91 = arith.constant 5.000000e-01 : f32
    %400 = vector.broadcast %cst_91 : f32 to vector<1x384xf32>
    %401 = arith.mulf %400, %399 : vector<1x384xf32>
    %cst_92 = arith.constant 5.000000e-01 : f32
    %402 = vector.broadcast %cst_92 : f32 to vector<1x384xf32>
    %403 = arith.addf %401, %402 : vector<1x384xf32>
    %404 = vector.extract_strided_slice %395 {offsets = [0, 384], sizes = [1, 128], strides = [1, 1]} : vector<1x512xf32> to vector<1x128xf32>
    %405 = math.tanh %404 : vector<1x128xf32>
    %406 = vector.extract_strided_slice %403 {offsets = [0, 0], sizes = [1, 128], strides = [1, 1]} : vector<1x384xf32> to vector<1x128xf32>
    %407 = vector.extract_strided_slice %403 {offsets = [0, 128], sizes = [1, 128], strides = [1, 1]} : vector<1x384xf32> to vector<1x128xf32>
    %408 = vector.extract_strided_slice %403 {offsets = [0, 256], sizes = [1, 128], strides = [1, 1]} : vector<1x384xf32> to vector<1x128xf32>
    %409 = arith.mulf %407, %387 : vector<1x128xf32>
    %410 = arith.mulf %406, %405 : vector<1x128xf32>
    %411 = arith.addf %409, %410 : vector<1x128xf32>
    %412 = math.tanh %411 : vector<1x128xf32>
    %413 = arith.mulf %408, %412 : vector<1x128xf32>
    %414 = vector.extract_strided_slice %291 {offsets = [5, 0], sizes = [1, 512], strides = [1, 1]} : vector<8x512xf32> to vector<1x512xf32>
    %415 = vector.extract_strided_slice %291 {offsets = [2, 0], sizes = [1, 512], strides = [1, 1]} : vector<8x512xf32> to vector<1x512xf32>
    %416 = arith.select %71, %414, %415 : vector<1x512xi1>, vector<1x512xf32>
    %417 = arith.truncf %413 : vector<1x128xf32> to vector<1x128xbf16>
    %cst_93 = arith.constant dense<0.000000e+00> : vector<1x512xf32>
    %418 = tpu.matmul %417, %283, %cst_93 {dimension_numbers = #tpu.dot_dimension_numbers<[1], [0], [0], [1], [0, 0, 1, 1], [], []>} : vector<1x128xbf16>, vector<128x512xbf16>, vector<1x512xf32> -> vector<1x512xf32>
    %419 = arith.addf %416, %418 : vector<1x512xf32>
    %420 = vector.extract_strided_slice %419 {offsets = [0, 0], sizes = [1, 384], strides = [1, 1]} : vector<1x512xf32> to vector<1x384xf32>
    %cst_94 = arith.constant 5.000000e-01 : f32
    %421 = vector.broadcast %cst_94 : f32 to vector<1x384xf32>
    %422 = arith.mulf %421, %420 : vector<1x384xf32>
    %423 = math.tanh %422 : vector<1x384xf32>
    %cst_95 = arith.constant 5.000000e-01 : f32
    %424 = vector.broadcast %cst_95 : f32 to vector<1x384xf32>
    %425 = arith.mulf %424, %423 : vector<1x384xf32>
    %cst_96 = arith.constant 5.000000e-01 : f32
    %426 = vector.broadcast %cst_96 : f32 to vector<1x384xf32>
    %427 = arith.addf %425, %426 : vector<1x384xf32>
    %428 = vector.extract_strided_slice %419 {offsets = [0, 384], sizes = [1, 128], strides = [1, 1]} : vector<1x512xf32> to vector<1x128xf32>
    %429 = math.tanh %428 : vector<1x128xf32>
    %430 = vector.extract_strided_slice %427 {offsets = [0, 0], sizes = [1, 128], strides = [1, 1]} : vector<1x384xf32> to vector<1x128xf32>
    %431 = vector.extract_strided_slice %427 {offsets = [0, 128], sizes = [1, 128], strides = [1, 1]} : vector<1x384xf32> to vector<1x128xf32>
    %432 = vector.extract_strided_slice %427 {offsets = [0, 256], sizes = [1, 128], strides = [1, 1]} : vector<1x384xf32> to vector<1x128xf32>
    %433 = arith.mulf %431, %411 : vector<1x128xf32>
    %434 = arith.mulf %430, %429 : vector<1x128xf32>
    %435 = arith.addf %433, %434 : vector<1x128xf32>
    %436 = math.tanh %435 : vector<1x128xf32>
    %437 = arith.mulf %432, %436 : vector<1x128xf32>
    %438 = vector.extract_strided_slice %291 {offsets = [6, 0], sizes = [1, 512], strides = [1, 1]} : vector<8x512xf32> to vector<1x512xf32>
    %439 = vector.extract_strided_slice %291 {offsets = [1, 0], sizes = [1, 512], strides = [1, 1]} : vector<8x512xf32> to vector<1x512xf32>
    %440 = arith.select %71, %438, %439 : vector<1x512xi1>, vector<1x512xf32>
    %441 = arith.truncf %437 : vector<1x128xf32> to vector<1x128xbf16>
    %cst_97 = arith.constant dense<0.000000e+00> : vector<1x512xf32>
    %442 = tpu.matmul %441, %283, %cst_97 {dimension_numbers = #tpu.dot_dimension_numbers<[1], [0], [0], [1], [0, 0, 1, 1], [], []>} : vector<1x128xbf16>, vector<128x512xbf16>, vector<1x512xf32> -> vector<1x512xf32>
    %443 = arith.addf %440, %442 : vector<1x512xf32>
    %444 = vector.extract_strided_slice %443 {offsets = [0, 0], sizes = [1, 384], strides = [1, 1]} : vector<1x512xf32> to vector<1x384xf32>
    %cst_98 = arith.constant 5.000000e-01 : f32
    %445 = vector.broadcast %cst_98 : f32 to vector<1x384xf32>
    %446 = arith.mulf %445, %444 : vector<1x384xf32>
    %447 = math.tanh %446 : vector<1x384xf32>
    %cst_99 = arith.constant 5.000000e-01 : f32
    %448 = vector.broadcast %cst_99 : f32 to vector<1x384xf32>
    %449 = arith.mulf %448, %447 : vector<1x384xf32>
    %cst_100 = arith.constant 5.000000e-01 : f32
    %450 = vector.broadcast %cst_100 : f32 to vector<1x384xf32>
    %451 = arith.addf %449, %450 : vector<1x384xf32>
    %452 = vector.extract_strided_slice %443 {offsets = [0, 384], sizes = [1, 128], strides = [1, 1]} : vector<1x512xf32> to vector<1x128xf32>
    %453 = math.tanh %452 : vector<1x128xf32>
    %454 = vector.extract_strided_slice %451 {offsets = [0, 0], sizes = [1, 128], strides = [1, 1]} : vector<1x384xf32> to vector<1x128xf32>
    %455 = vector.extract_strided_slice %451 {offsets = [0, 128], sizes = [1, 128], strides = [1, 1]} : vector<1x384xf32> to vector<1x128xf32>
    %456 = vector.extract_strided_slice %451 {offsets = [0, 256], sizes = [1, 128], strides = [1, 1]} : vector<1x384xf32> to vector<1x128xf32>
    %457 = arith.mulf %455, %435 : vector<1x128xf32>
    %458 = arith.mulf %454, %453 : vector<1x128xf32>
    %459 = arith.addf %457, %458 : vector<1x128xf32>
    %460 = math.tanh %459 : vector<1x128xf32>
    %461 = arith.mulf %456, %460 : vector<1x128xf32>
    %462 = vector.extract_strided_slice %291 {offsets = [7, 0], sizes = [1, 512], strides = [1, 1]} : vector<8x512xf32> to vector<1x512xf32>
    %463 = vector.extract_strided_slice %291 {offsets = [0, 0], sizes = [1, 512], strides = [1, 1]} : vector<8x512xf32> to vector<1x512xf32>
    %464 = arith.select %71, %462, %463 : vector<1x512xi1>, vector<1x512xf32>
    %465 = arith.truncf %461 : vector<1x128xf32> to vector<1x128xbf16>
    %cst_101 = arith.constant dense<0.000000e+00> : vector<1x512xf32>
    %466 = tpu.matmul %465, %283, %cst_101 {dimension_numbers = #tpu.dot_dimension_numbers<[1], [0], [0], [1], [0, 0, 1, 1], [], []>} : vector<1x128xbf16>, vector<128x512xbf16>, vector<1x512xf32> -> vector<1x512xf32>
    %467 = arith.addf %464, %466 : vector<1x512xf32>
    %468 = vector.extract_strided_slice %467 {offsets = [0, 0], sizes = [1, 384], strides = [1, 1]} : vector<1x512xf32> to vector<1x384xf32>
    %cst_102 = arith.constant 5.000000e-01 : f32
    %469 = vector.broadcast %cst_102 : f32 to vector<1x384xf32>
    %470 = arith.mulf %469, %468 : vector<1x384xf32>
    %471 = math.tanh %470 : vector<1x384xf32>
    %cst_103 = arith.constant 5.000000e-01 : f32
    %472 = vector.broadcast %cst_103 : f32 to vector<1x384xf32>
    %473 = arith.mulf %472, %471 : vector<1x384xf32>
    %cst_104 = arith.constant 5.000000e-01 : f32
    %474 = vector.broadcast %cst_104 : f32 to vector<1x384xf32>
    %475 = arith.addf %473, %474 : vector<1x384xf32>
    %476 = vector.extract_strided_slice %467 {offsets = [0, 384], sizes = [1, 128], strides = [1, 1]} : vector<1x512xf32> to vector<1x128xf32>
    %477 = math.tanh %476 : vector<1x128xf32>
    %478 = vector.extract_strided_slice %475 {offsets = [0, 0], sizes = [1, 128], strides = [1, 1]} : vector<1x384xf32> to vector<1x128xf32>
    %479 = vector.extract_strided_slice %475 {offsets = [0, 128], sizes = [1, 128], strides = [1, 1]} : vector<1x384xf32> to vector<1x128xf32>
    %480 = vector.extract_strided_slice %475 {offsets = [0, 256], sizes = [1, 128], strides = [1, 1]} : vector<1x384xf32> to vector<1x128xf32>
    %481 = arith.mulf %479, %459 : vector<1x128xf32>
    %482 = arith.mulf %478, %477 : vector<1x128xf32>
    %483 = arith.addf %481, %482 : vector<1x128xf32>
    %484 = math.tanh %483 : vector<1x128xf32>
    %485 = arith.mulf %480, %484 : vector<1x128xf32>
    %486 = tpu.concatenate %317, %341, %365, %389, %413, %437, %461, %485 in 0 : vector<1x128xf32>, vector<1x128xf32>, vector<1x128xf32>, vector<1x128xf32>, vector<1x128xf32>, vector<1x128xf32>, vector<1x128xf32>, vector<1x128xf32> -> vector<8x128xf32>
    %487 = tpu.concatenate %485, %461, %437, %413, %389, %365, %341, %317 in 0 : vector<1x128xf32>, vector<1x128xf32>, vector<1x128xf32>, vector<1x128xf32>, vector<1x128xf32>, vector<1x128xf32>, vector<1x128xf32>, vector<1x128xf32> -> vector<8x128xf32>
    %488 = arith.select %74, %486, %487 : vector<8x128xi1>, vector<8x128xf32>
    %489 = arith.truncf %488 : vector<8x128xf32> to vector<8x128xbf16>
    %c0_105 = arith.constant 0 : index
    %c0_106 = arith.constant 0 : index
    %490 = vector.load %arg6[%c0_105, %c0_106] : memref<128x128xbf16, #tpu.memory_space<vmem>>, vector<128x128xbf16>
    %cst_107 = arith.constant dense<0.000000e+00> : vector<8x128xf32>
    %491 = tpu.matmul %489, %490, %cst_107 {dimension_numbers = #tpu.dot_dimension_numbers<[1], [0], [0], [1], [0, 0, 1, 1], [], []>} : vector<8x128xbf16>, vector<128x128xbf16>, vector<8x128xf32> -> vector<8x128xf32>
    %492 = vector.broadcast %7 : vector<1x128xf32> to vector<8x128xf32>
    %493 = arith.addf %491, %492 : vector<8x128xf32>
    %c0_108 = arith.constant 0 : index
    %c0_109 = arith.constant 0 : index
    %494 = vector.load %arg8[%c0_108, %c0_109] : memref<8x128xf32, #tpu.memory_space<vmem>>, vector<8x128xf32>
    tpu.vector_store %arg8[%c0_108, %c0_109], %493 {strides = array<i32>} : memref<8x128xf32, #tpu.memory_space<vmem>>, vector<8x128xf32>,
    return
  }
}

</mosaic_0001>

<bundles_post_ra>
// kernel: mlp_forward.1
= control target key start
LH: loop header
LB: loop body
LE: loop exit
PB: predicated region body
PF: predicated region fallthrough
CT: control target
= control target key end

     0   :  { %13 = vsyncpa [#allocation3], 0  ;;  %s5851_s0 = inlined_call_operand.hbm [shape: f32[8,40], index: 0, kind: input, shape index: {}]   ;;  %s5852_s1 = inlined_call_operand.hbm [shape: bf16[40,64], index: 1, kind: input, shape index: {}]   ;;  %s5853_s2 = inlined_call_operand.hbm [shape: bf16[64,128], index: 2, kind: input, shape index: {}]   ;;  %s5854_s3 = inlined_call_operand.hbm [shape: bf16[2,128,512], index: 3, kind: input, shape index: {}]   ;;  %s5855_s4 = inlined_call_operand.hbm [shape: bf16[2,128,512], index: 4, kind: input, shape index: {}]   ;;  %s5856_s5 = inlined_call_operand.vmem [shape: f32[2,1,512], index: 5, kind: input, shape index: {}]   ;;  %s5857_s6 = inlined_call_operand.hbm [shape: bf16[128,128], index: 6, kind: input, shape index: {}]   ;;  %s5858_s7 = inlined_call_operand.vmem [shape: f32[11,128], index: 7, kind: input, shape index: {}]   ;;  %s5859_s8 = inlined_call_operand.hbm [shape: f32[8,128], index: 8, kind: output, shape index: {}]  }
   0x1   :  { %14 = vsyncpa [#allocation6], 0 }
   0x2   :  { %15 = vsyncpa [#allocation9], 0 }
   0x3   :  { %16 = vsyncpa [#allocation12], 0 }
   0x4   :  { %17 = vsyncpa [#allocation4], 0  ;;  %s4421_s27 = smov [#allocation5]   ;;  %s4257_s9 = scalar_lea.hbm %s5852_s1, 320 }
   0x5   :  { %s33_s28 = sshll.u32 %s4421_s27, 4  ;;  %p4258_p0 = scmp.ne.s32.totalorder %s5852_s1, %s4257_s9  ;;  %s34_s28 = int_to_ptr.vmem [resolvable:$true] %s33_s28 }
   0x6   :  { %p4261_p1 = scmp.lt.u32.totalorder %s4257_s9, %s5852_s1 }
   0x8   :  { %p4263_p2 = pnand %p4261_p1, %p4258_p0 }
   0xa   :  { %4266 = shalt.err (!%p4263_p2)
}
   0xb   :  { %s4267_s14 = scalar_lea.vmem %s34_s28, 320  ;;  %p4272_p4 = scmp.lt.s32.totalorder %s34_s28, %s34_s28 }
   0xc   :  { %p4268_p3 = scmp.ne.s32.totalorder %s34_s28, %s4267_s14  ;;  %p4273_p5 = scmp.lt.s32.totalorder %s4267_s14, %s4267_s14 }
   0xe   :  { %p4274_p6 = por %p4273_p5, %p4272_p4 }
  0x10   :  { %p4275_p7 = pnand %p4274_p6, %p4268_p3 }
  0x12   :  { %4278 = shalt.err (!%p4275_p7)
}
  0x13   :  { %s4422_s15 = smov 64   ;;  %s4423_s16 = smov 4  }
  0x14   :  { %39 = dma.hbm_to_vmem [thread:$0]  %s5852_s1, 320, %s34_s28, [#allocation6], %s4422_s15, %s4422_s15, %s4423_s16  }
  0x15   :  { %s4424_s19 = smov [#allocation8]   ;;  %s4279_s23 = scalar_lea.hbm %s5854_s3, 8192 }
  0x16   :  { %s57_s20 = sshll.u32 %s4424_s19, 4  ;;  %p4280_p8 = scmp.ne.s32.totalorder %s5854_s3, %s4279_s23  ;;  %s58_s20 = int_to_ptr.vmem [resolvable:$true] %s57_s20 }
  0x17   :  { %p4283_p9 = scmp.lt.u32.totalorder %s4279_s23, %s5854_s3 }
  0x19   :  { %p4285_p10 = pnand %p4283_p9, %p4280_p8 }
  0x1b   :  { %4288 = shalt.err (!%p4285_p10)
}
  0x1c   :  { %s4289_s29 = scalar_lea.vmem %s58_s20, 8192  ;;  %p4294_p12 = scmp.lt.s32.totalorder %s58_s20, %s58_s20 }
  0x1d   :  { %p4290_p11 = scmp.ne.s32.totalorder %s58_s20, %s4289_s29  ;;  %p4295_p13 = scmp.lt.s32.totalorder %s4289_s29, %s4289_s29 }
  0x1f   :  { %p4296_p0 = por %p4295_p13, %p4294_p12 }
  0x21   :  { %p4297_p1 = pnand %p4296_p0, %p4290_p11 }
  0x23   :  { %4300 = shalt.err (!%p4297_p1)
}
  0x24   :  { %s4425_s1 = smov 256   ;;  %s4426_s28 = smov 16  }
  0x25   :  { %63 = dma.hbm_to_vmem [thread:$0]  %s5854_s3, 8192, %s58_s20, [#allocation9], %s4425_s1, %s4425_s1, %s4426_s28  }
  0x26   :  { %s4427_s10 = smov [#allocation2]   ;;  %s4428_s12 = smov [#allocation7]  }
  0x27   :  { %s24_s11 = sshll.u32 %s4427_s10, 4  ;;  %s45_s13 = sshll.u32 %s4428_s12, 4  ;;  %s25_s11 = int_to_ptr.vmem [resolvable:$true] %s24_s11  ;;  %s4510_s13 = int_to_ptr.vmem [resolvable:$true] %s45_s13 }
  0x28   :  { %s4301_s18 = scalar_lea.hbm %s5851_s0, 128 }
  0x29   :  { %p4302_p2 = scmp.ne.s32.totalorder %s5851_s0, %s4301_s18  ;;  %p4305_p3 = scmp.lt.u32.totalorder %s4301_s18, %s5851_s0 }
  0x2b   :  { %p4307_p4 = pnand %p4305_p3, %p4302_p2 }
  0x2d   :  { %4310 = shalt.err (!%p4307_p4)
}
  0x2e   :  { %s4311_s3 = scalar_lea.vmem %s25_s11, 128  ;;  %p4316_p6 = scmp.lt.s32.totalorder %s25_s11, %s25_s11 }
  0x2f   :  { %p4312_p5 = scmp.ne.s32.totalorder %s25_s11, %s4311_s3  ;;  %p4317_p7 = scmp.lt.s32.totalorder %s4311_s3, %s4311_s3 }
  0x31   :  { %p4318_p8 = por %p4317_p7, %p4316_p6 }
  0x33   :  { %p4319_p9 = pnand %p4318_p8, %p4312_p5 }
  0x35   :  { %4322 = shalt.err (!%p4319_p9)
}
  0x36   :  { %27 = dma.hbm_to_vmem [thread:$0]  %s5851_s0, 128, %s25_s11, [#allocation3]  }
  0x37   :  { %s4323_s27 = scalar_lea.hbm %s5853_s2, 512 }
  0x38   :  { %p4324_p10 = scmp.ne.s32.totalorder %s5853_s2, %s4323_s27  ;;  %p4327_p11 = scmp.lt.u32.totalorder %s4323_s27, %s5853_s2 }
  0x3a   :  { %p4329_p12 = pnand %p4327_p11, %p4324_p10 }
  0x3c   :  { %4332 = shalt.err (!%p4329_p12)
}
  0x3d   :  { %s4333_s12 = scalar_lea.vmem %s4510_s13, 512  ;;  %p4338_p0 = scmp.lt.s32.totalorder %s4510_s13, %s4510_s13 }
  0x3e   :  { %p4334_p13 = scmp.ne.s32.totalorder %s4510_s13, %s4333_s12  ;;  %p4339_p1 = scmp.lt.s32.totalorder %s4333_s12, %s4333_s12 }
  0x40   :  { %p4340_p2 = por %p4339_p1, %p4338_p0 }
  0x42   :  { %p4341_p3 = pnand %p4340_p2, %p4334_p13 }
  0x44   :  { %4344 = shalt.err (!%p4341_p3)
}
  0x45   :  { %51 = dma.hbm_to_vmem [thread:$0]  %s5853_s2, 512, %s4510_s13, [#allocation6], %s4422_s15, %s4422_s15, %s4423_s16  }
  0x46   :  { %s4429_s14 = smov [#allocation10]   ;;  %s4430_s18 = smov [#allocation11]  }
  0x47   :  { %s69_s17 = sshll.u32 %s4429_s14, 4  ;;  %s83_s19 = sshll.u32 %s4430_s18, 4  ;;  %s70_s17 = int_to_ptr.vmem [resolvable:$true] %s69_s17  ;;  %s4544_s19 = int_to_ptr.vmem [resolvable:$true] %s83_s19 }
  0x48   :  { %s4345_s23 = scalar_lea.hbm %s5855_s4, 8192 }
  0x49   :  { %p4346_p4 = scmp.ne.s32.totalorder %s5855_s4, %s4345_s23  ;;  %p4349_p5 = scmp.lt.u32.totalorder %s4345_s23, %s5855_s4 }
  0x4b   :  { %p4351_p6 = pnand %p4349_p5, %p4346_p4 }
  0x4d   :  { %4354 = shalt.err (!%p4351_p6)
}
  0x4e   :  { %s4355_s2 = scalar_lea.vmem %s70_s17, 8192  ;;  %p4360_p8 = scmp.lt.s32.totalorder %s70_s17, %s70_s17 }
  0x4f   :  { %p4356_p7 = scmp.ne.s32.totalorder %s70_s17, %s4355_s2  ;;  %p4361_p9 = scmp.lt.s32.totalorder %s4355_s2, %s4355_s2 }
  0x51   :  { %p4362_p10 = por %p4361_p9, %p4360_p8 }
  0x53   :  { %p4363_p11 = pnand %p4362_p10, %p4356_p7 }
  0x55   :  { %4366 = shalt.err (!%p4363_p11)
}
  0x56   :  { %75 = dma.hbm_to_vmem [thread:$0]  %s5855_s4, 8192, %s70_s17, [#allocation9], %s4425_s1, %s4425_s1, %s4426_s28  }
  0x57   :  { %s4367_s30 = scalar_lea.hbm %s5857_s6, 1024 }
  0x58   :  { %p4368_p12 = scmp.ne.s32.totalorder %s5857_s6, %s4367_s30  ;;  %p4371_p13 = scmp.lt.u32.totalorder %s4367_s30, %s5857_s6 }
  0x5a   :  { %p4373_p0 = pnand %p4371_p13, %p4368_p12 }
  0x5c   :  { %4376 = shalt.err (!%p4373_p0)
}
  0x5d   :  { %s4377_s11 = scalar_lea.vmem %s4544_s19, 1024  ;;  %p4382_p2 = scmp.lt.s32.totalorder %s4544_s19, %s4544_s19 }
  0x5e   :  { %p4378_p1 = scmp.ne.s32.totalorder %s4544_s19, %s4377_s11  ;;  %p4383_p3 = scmp.lt.s32.totalorder %s4377_s11, %s4377_s11 }
  0x60   :  { %p4384_p4 = por %p4383_p3, %p4382_p2 }
  0x62   :  { %p4385_p5 = pnand %p4384_p4, %p4378_p1 }
  0x64   :  { %4388 = shalt.err (!%p4385_p5)
}
  0x65   :  { %89 = dma.hbm_to_vmem [thread:$0]  %s5857_s6, 1024, %s4544_s19, [#allocation12], %s4422_s15, %s4422_s15, %s4423_s16  }
  0x66   :  { %4411 = dma.done.wait [#allocation3], 128  }
  0x67   :  { %4412 = vsyncadd [#allocation3], 4294967168 }
  0x68   :  { %4413 = dma.done.wait [#allocation6], 832  }
  0x69   :  { %4414 = vsyncadd [#allocation6], 4294966464 }
  0x6a   :  { %4415 = dma.done.wait [#allocation9], 16384  }
  0x6b   :  { %4416 = vsyncadd [#allocation9], 4294950912 }
  0x6c   :  { %4417 = dma.done.wait [#allocation12], 1024  }
  0x6d   :  { %4418 = vsyncadd [#allocation12], 4294966272  ;;  %v5860_v0 = vmov 0.0   ;;  %vm4432_vm0 = vmmov 0   ;;  %v3820_v1 = vld [vmem:[#allocation5] sm:$0xff]   ;;  %v3821_v2 = vld [vmem:[#allocation5 + $0x8] sm:$0xff]   ;;  %v120_v11 = vlaneseq }
  0x6e   :  { %3764 = vmatprep.subr.bf16.mxu1 %v5860_v0  ;;  %3770 = vmatprep.mubr.msk.bf16.mxu1 %vm4432_vm0, %v5860_v0  ;;  %v3822_v3 = vld [vmem:[#allocation5 + $0x10] ss:$0 sps:$4 sm:$0xff]   ;;  %vm143_vm1 = vcmask 1043456   ;;  %v113_v4 = vld [vmem:[#allocation2] sm:$0xff]  ;;  %vm139_vm2 = vcmask 326656   ;;  %v3825_v9 = vld [vmem:[#allocation7 + $0x10] sm:$0xff]  }
  0x6f   :  { %3765 = vmatpush3.bf16.msra.mxu1 %v3820_v1  ;;  %v145_v5 = vsel %vm143_vm1, %v3822_v3, 0  ;;  %v114_v6 = vpack.c.bf16 %v113_v4, %v113_v4  ;;  %v3823_v7 = vld [vmem:[#allocation7] sm:$0xff]   ;;  %v3824_v8 = vld [vmem:[#allocation7 + $0x8] sm:$0xff]   ;;  %v3826_v10 = vld [vmem:[#allocation7 + $0x18] sm:$0xff]   ;;  %v4594_v12 = vshrl.u32 %v120_v11, 7  ;;  %vm187_vm3 = vcmask 523264  }
  0x70   :  { %3766 = vmatprep.subr.bf16.mxu1 %v5860_v0  ;;  %v4602_v14 = vld [vmem:[%s5858_s7] sm:$0xff]  ;;  %v3831_v56 = vld [vmem:[#allocation8 + $0xc] ss:$16 sps:$4 sm:$0xff]   ;;  %v3832_v58 = vld [vmem:[#allocation8] ss:$16 sps:$4 sm:$0xff]   ;;  %vm1874_vm8 = vcmask 1040384  }
  0x71   :  { %5894 = vst [vmem:[#allocation19_spill] sm:$0xff] %v4594_v12  ;;  %v4597_v13 = vsub.s32 0, %v4594_v12  ;;  %v4610_v44 = vsub.s32 1, %v4594_v12  ;;  %v4614_v48 = vsub.s32 2, %v4594_v12  ;;  %v3827_v55 = vld [vmem:[#allocation8 + $0x4] ss:$16 sps:$4 sm:$0xff]  }
  0x72   :  { %v3829_v57 = vld [vmem:[#allocation8 + $0x8] ss:$16 sps:$4 sm:$0xff]   ;;  %604 = vmatprep.subr.bf16.mxu0 %v3827_v55  ;;  %v3833_v59 = vld [vmem:[#allocation8 + $0x24] ss:$16 sps:$4 sm:$0xff]   ;;  %v3837_v60 = vld [vmem:[#allocation8 + $0x2c] ss:$16 sps:$4 sm:$0xff]  }
  0x73   :  { %3767 = vmatpush3.bf16.msra.mxu1 %v3821_v2  ;;  %5895 = vst [vmem:[#allocation20_spill] sm:$0xff] %v4597_v13  ;;  %v123_v15 = vrot.slane %v4602_v14, %v4597_v13  ;;  %5896 = vst [vmem:[#allocation21_spill] sm:$0xff] %v4610_v44  ;;  %605 = vmatpush1.bf16.msra.mxu0 %v3832_v58  ;;  %v3835_v61 = vld [vmem:[#allocation8 + $0x28] ss:$16 sps:$4 sm:$0xff]   ;;  %v3838_v62 = vld [vmem:[#allocation8 + $0x20] ss:$16 sps:$4 sm:$0xff]  }
  0x74   :  { %3768 = vmatprep.subr.bf16.mxu1 %v5860_v0  ;;  %5897 = vst [vmem:[#allocation22_spill] sm:$0xff] %v4614_v48  ;;  %606 = vmatprep.subr.bf16.mxu0 %v3833_v59  ;;  %v3839_v63 = vld [vmem:[#allocation8 + $0x44] ss:$16 sps:$4 sm:$0xff]   ;;  %v3843_v1 = vld [vmem:[#allocation8 + $0x4c] ss:$16 sps:$4 sm:$0xff]   ;;  %vm1876_vm9 = vcmask 1041408  }
  0x75   :  { %v3841_v2 = vld [vmem:[#allocation8 + $0x48] ss:$16 sps:$4 sm:$0xff]   ;;  %v3844_v3 = vld [vmem:[#allocation8 + $0x40] ss:$16 sps:$4 sm:$0xff]   ;;  %v3845_v4 = vld [vmem:[#allocation8 + $0x64] ss:$16 sps:$4 sm:$0xff]  }
  0x76   :  { %vm1878_vm10 = vcmask 1042432   ;;  %vm1881_vm11 = vcmask 1044480   ;;  %vm1883_vm12 = vcmask 1045504   ;;  %vm1885_vm13 = vcmask 1046528   ;;  %s4434_s3 = smov [#allocation13]  }
  0x77   :  { %3769 = vmatpush3.bf16.msra.mxu1 %v145_v5  ;;  %607 = vmatpush1.bf16.msra.mxu0 %v3838_v62  ;;  %v3849_v5 = vld [vmem:[#allocation8 + $0x6c] ss:$16 sps:$4 sm:$0xff]   ;;  %s3588_s20 = sshll.u32 %s4434_s3, 4  ;;  %s3589_s20 = int_to_ptr.vmem [resolvable:$true] %s3588_s20 }
  0x78   :  { %3774 = vmatprep.subr.bf16.mxu1 %v5860_v0  ;;  %608 = vmatprep.subr.bf16.mxu0 %v3839_v63  ;;  %s4389_s24 = scalar_lea.vmem %s3589_s20, 128  ;;  %p4394_p7 = scmp.lt.s32.totalorder %s3589_s20, %s3589_s20 }
  0x79   :  { %p4390_p6 = scmp.ne.s32.totalorder %s3589_s20, %s4389_s24  ;;  %p4395_p8 = scmp.lt.s32.totalorder %s4389_s24, %s4389_s24 }
  0x7a   :  { %3771 = vmatmul.mubr.msk.bf16.vlgmr.msra.gmra.mrb[0].mxu1 %vm139_vm2, %v114_v6  ;;  %v3847_v6 = vld [vmem:[#allocation8 + $0x68] ss:$16 sps:$4 sm:$0xff]  }
  0x7b   :  { %3782 = vmatprep.mubr.msk.bf16.mxu1 %vm4432_vm0, %v5860_v0  ;;  %3775 = vmatpush3.bf16.msra.mxu1 %v3823_v7  ;;  %v3850_v7 = vld [vmem:[#allocation8 + $0x60] ss:$16 sps:$4 sm:$0xff]   ;;  %p4396_p9 = por %p4395_p8, %p4394_p7 }
  0x7c   :  { %3776 = vmatprep.subr.bf16.mxu1 %v5860_v0  ;;  %609 = vmatpush1.bf16.msra.mxu0 %v3844_v3 }
  0x7d   :  { %610 = vmatprep.subr.bf16.mxu0 %v3845_v4  ;;  %p4397_p10 = pnand %p4396_p9, %p4390_p6 }
  0x7f   :  { %3777 = vmatpush3.bf16.msra.mxu1 %v3824_v8  ;;  %v3851_v8 = vld [vmem:[#allocation8 + $0x84] ss:$16 sps:$4 sm:$0xff]  }
  0x80   :  { %3778 = vmatprep.subr.bf16.mxu1 %v5860_v0  ;;  %611 = vmatpush1.bf16.msra.mxu0 %v3850_v7  ;;  %v4636_v7 = vld [vmem:[#allocation10] ss:$16 sps:$4 sm:$0xff]  }
  0x81   :  { %612 = vmatprep.subr.bf16.mxu0 %v3851_v8  ;;  %v4638_v8 = vld [vmem:[#allocation10 + $0x8] ss:$16 sps:$4 sm:$0xff]  }
  0x83   :  { %3779 = vmatpush3.bf16.msra.mxu1 %v3825_v9  ;;  %v3855_v9 = vld [vmem:[#allocation8 + $0x8c] ss:$16 sps:$4 sm:$0xff]  }
  0x84   :  { %3780 = vmatprep.subr.bf16.mxu1 %v5860_v0 }
  0x87   :  { %3781 = vmatpush3.bf16.msra.mxu1 %v3826_v10  ;;  %v5862_v10 = vmov 0  }
  0x88   :  { %645 = vmatprep.subr.bf16.mxu1 %v3831_v56  ;;  %636 = vmatprep.mubr.bf16.mxu0 %v5862_v10 }
 0x14d   :  { %v181_v16 = vpop.f32.mrb[0].mxu1 }
 0x14e   :  { %v182_v17 = vadd.f32 %v181_v16, %v123_v15  ;;  %v3772_v18 = vpop.f32.mrb[1].mxu1  ;;  %v3853_v15 = vld [vmem:[#allocation8 + $0x88] ss:$16 sps:$4 sm:$0xff]   ;;  %v3856_v16 = vld [vmem:[#allocation8 + $0x80] ss:$16 sps:$4 sm:$0xff]  }
 0x14f   :  { %v184_v19 = vpop.f32.mrb[2].mxu1  ;;  %v3861_v18 = vld [vmem:[#allocation8 + $0xac] ss:$16 sps:$4 sm:$0xff]   ;;  %613 = vmatpush1.bf16.msra.mxu0 %v3856_v16 }
 0x150   :  { %v188_v20 = vsel %vm187_vm3, %v182_v17, 0.0  ;;  %v196_v21 = vmul.f32 %v182_v17, %v182_v17  ;;  %v3773_v22 = vpop.f32.mrb[3].mxu1  ;;  %v3859_v19 = vld [vmem:[#allocation8 + $0xa8] ss:$16 sps:$4 sm:$0xff]   ;;  %v4642_v16 = vld [vmem:[#allocation10 + $0x2c] ss:$16 sps:$4 sm:$0xff]  }
 0x151   :  { %v189_v23 = vrot.slane %v188_v20, 4  ;;  %v3867_v22 = vld [vmem:[#allocation8 + $0xcc] ss:$16 sps:$4 sm:$0xff]  }
 0x152   :  { %v197_v24 = vsel %vm187_vm3, %v196_v21, 0.0  ;;  %v3863_v21 = vld [vmem:[#allocation8 + $0xc4] ss:$16 sps:$4 sm:$0xff]  }
 0x153   :  { %v190_v25 = vadd.f32 %v189_v23, %v188_v20  ;;  %v198_v26 = vrot.slane %v197_v24, 4  ;;  %v3862_v20 = vld [vmem:[#allocation8 + $0xa0] ss:$16 sps:$4 sm:$0xff]   ;;  %v3865_v23 = vld [vmem:[#allocation8 + $0xc8] ss:$16 sps:$4 sm:$0xff]  }
 0x155   :  { %v191_v27 = vrot.slane %v190_v25, 2  ;;  %v199_v28 = vadd.f32 %v198_v26, %v197_v24  ;;  %v3868_v24 = vld [vmem:[#allocation8 + $0xc0] ss:$16 sps:$4 sm:$0xff]   ;;  %v3873_v26 = vld [vmem:[#allocation8 + $0xec] ss:$16 sps:$4 sm:$0xff]  }
 0x157   :  { %v192_v29 = vadd.f32 %v191_v27, %v190_v25  ;;  %v200_v30 = vrot.slane %v199_v28, 2  ;;  %v3869_v25 = vld [vmem:[#allocation8 + $0xe4] ss:$16 sps:$4 sm:$0xff]   ;;  %v3871_v27 = vld [vmem:[#allocation8 + $0xe8] ss:$16 sps:$4 sm:$0xff]  }
 0x159   :  { %v193_v31 = vrot.slane %v192_v29, 1  ;;  %v201_v32 = vadd.f32 %v200_v30, %v199_v28  ;;  %v3874_v28 = vld [vmem:[#allocation8 + $0xe0] ss:$16 sps:$4 sm:$0xff]   ;;  %v4623_v30 = vld [vmem:[#allocation10 + $0xc] ss:$16 sps:$4 sm:$0xff]  }
 0x15b   :  { %v194_v33 = vadd.f32 %v193_v31, %v192_v29  ;;  %v202_v34 = vrot.slane %v201_v32, 1  ;;  %v4621_v29 = vld [vmem:[#allocation10 + $0x4] ss:$16 sps:$4 sm:$0xff]   ;;  %v4628_v31 = vsub.s32 3, %v4594_v12 }
 0x15d   :  { %v195_v35 = vmul.f32 0.125, %v194_v33  ;;  %v203_v36 = vadd.f32 %v202_v34, %v201_v32  ;;  %5898 = vst [vmem:[#allocation23_spill] sm:$0xff] %v4628_v31  ;;  %v239_v32 = vrot.slane %v4602_v14, %v4628_v31 }
 0x15f   :  { %v204_v37 = vmul.f32 0.125, %v203_v36  ;;  %v205_v38 = vmul.f32 %v195_v35, %v195_v35 }
 0x161   :  { %v206_v39 = vsub.f32 %v204_v37, %v205_v38 }
 0x163   :  { %v207_v40 = vmax.f32 %v206_v39, 0.0 }
 0x165   :  { %v208_v41 = vadd.f32 1e-05, %v207_v40 }
 0x167   :  { %4027 = vrsqrt.f32 %v208_v41 }
 0x171   :  { %v4028_v42 = vpop.eup %4027 }
 0x172   :  { %v210_v43 = vmul.f32 %v4028_v42, %v4602_v14 }
 0x174   :  { %v216_v45 = vmul.f32 %v210_v43, %v195_v35  ;;  %v214_v46 = vrot.slane %v210_v43, %v4610_v44 }
 0x176   :  { %v218_v47 = vrot.slane %v216_v45, 7  ;;  %v215_v50 = vmul.f32 %v214_v46, %v182_v17  ;;  %v3857_v17 = vld [vmem:[#allocation8 + $0xa4] ss:$16 sps:$4 sm:$0xff]  }
 0x177   :  { %614 = vmatprep.subr.bf16.mxu0 %v3857_v17  ;;  %v4646_v17 = vld [vmem:[#allocation10 + $0x20] ss:$16 sps:$4 sm:$0xff]  }
 0x178   :  { %v220_v49 = vsub.f32 %v4602_v14, %v218_v47  ;;  %615 = vmatpush1.bf16.msra.mxu0 %v3862_v20  ;;  %v4654_v20 = vld [vmem:[#allocation10 + $0x4c] ss:$16 sps:$4 sm:$0xff]  }
 0x179   :  { %616 = vmatprep.subr.bf16.mxu0 %v3863_v21  ;;  %v4660_v21 = vld [vmem:[#allocation10 + $0x40] ss:$16 sps:$4 sm:$0xff]  }
 0x17a   :  { %v224_v51 = vrot.slane %v220_v49, %v4614_v48 }
 0x17c   :  { %v225_v52 = vadd.f32 %v224_v51, %v215_v50  ;;  %617 = vmatpush1.bf16.msra.mxu0 %v3868_v24  ;;  %v4668_v24 = vld [vmem:[#allocation10 + $0x6c] ss:$16 sps:$4 sm:$0xff]  }
 0x17d   :  { %618 = vmatprep.subr.bf16.mxu0 %v3869_v25  ;;  %v4672_v25 = vld [vmem:[#allocation10 + $0x60] ss:$16 sps:$4 sm:$0xff]  }
 0x17e   :  { %v226_v53 = vmax.f32 %v225_v52, 0.0 }
 0x180   :  { %v227_v54 = vpack.c.bf16 %v226_v53, %v226_v53  ;;  %619 = vmatpush1.bf16.msra.mxu0 %v3874_v28  ;;  %v4680_v28 = vld [vmem:[#allocation10 + $0x8c] ss:$16 sps:$4 sm:$0xff]  }
 0x181   :  { %868 = vmatprep.subr.bf16.mxu0 %v4621_v29 }
 0x182   :  { %3783 = vmatmul.mubr.msk.bf16.vlgmr.msra.gmra.mrb[4].mxu1 %vm187_vm3, %v227_v54 }
 0x183   :  { %646 = vmatpush1.bf16.msra.mxu1 %v3829_v57  ;;  %677 = vmatprep.mubr.bf16.mxu1 %v5862_v10 }
 0x184   :  { %647 = vmatprep.subr.bf16.mxu1 %v3837_v60 }
 0x187   :  { %648 = vmatpush1.bf16.msra.mxu1 %v3835_v61  ;;  %v330_v61 = vsub.s32 4, %v4594_v12 }
 0x188   :  { %649 = vmatprep.subr.bf16.mxu1 %v3843_v1 }
 0x18b   :  { %650 = vmatpush1.bf16.msra.mxu1 %v3841_v2  ;;  %v340_v2 = vsub.s32 5, %v4594_v12 }
 0x18c   :  { %651 = vmatprep.subr.bf16.mxu1 %v3849_v5 }
 0x18f   :  { %652 = vmatpush1.bf16.msra.mxu1 %v3847_v6 }
 0x190   :  { %653 = vmatprep.subr.bf16.mxu1 %v3855_v9 }
 0x193   :  { %654 = vmatpush1.bf16.msra.mxu1 %v3853_v15  ;;  %v4640_v15 = vld [vmem:[#allocation10 + $0x24] ss:$16 sps:$4 sm:$0xff]  }
 0x194   :  { %655 = vmatprep.subr.bf16.mxu1 %v3861_v18  ;;  %v4648_v18 = vld [vmem:[#allocation10 + $0x28] ss:$16 sps:$4 sm:$0xff]  }
 0x197   :  { %656 = vmatpush1.bf16.msra.mxu1 %v3859_v19  ;;  %v4652_v19 = vld [vmem:[#allocation10 + $0x44] ss:$16 sps:$4 sm:$0xff]  }
 0x198   :  { %657 = vmatprep.subr.bf16.mxu1 %v3867_v22  ;;  %v4662_v22 = vld [vmem:[#allocation10 + $0x48] ss:$16 sps:$4 sm:$0xff]  }
 0x19b   :  { %658 = vmatpush1.bf16.msra.mxu1 %v3865_v23  ;;  %v4666_v23 = vld [vmem:[#allocation10 + $0x64] ss:$16 sps:$4 sm:$0xff]  }
 0x19c   :  { %659 = vmatprep.subr.bf16.mxu1 %v3873_v26  ;;  %v4674_v26 = vld [vmem:[#allocation10 + $0x68] ss:$16 sps:$4 sm:$0xff]  }
 0x19f   :  { %660 = vmatpush1.bf16.msra.mxu1 %v3871_v27  ;;  %v4678_v27 = vld [vmem:[#allocation10 + $0x84] ss:$16 sps:$4 sm:$0xff]  }
 0x1a0   :  { %909 = vmatprep.subr.bf16.mxu1 %v4623_v30 }
 0x255   :  { %v301_v33 = vpop.f32.mrb[4].mxu1 }
 0x256   :  { %v302_v34 = vadd.f32 %v301_v33, %v239_v32  ;;  %v3784_v35 = vpop.f32.mrb[5].mxu1  ;;  %v4684_v32 = vld [vmem:[#allocation10 + $0x80] ss:$16 sps:$4 sm:$0xff]   ;;  %v4686_v33 = vld [vmem:[#allocation10 + $0x88] ss:$16 sps:$4 sm:$0xff]  }
 0x257   :  { %v304_v36 = vpop.f32.mrb[6].mxu1  ;;  %v4692_v35 = vld [vmem:[#allocation10 + $0xac] ss:$16 sps:$4 sm:$0xff]  }
 0x258   :  { %v307_v37 = vrot.slane %v302_v34, 4  ;;  %v314_v38 = vmul.f32 %v302_v34, %v302_v34  ;;  %v3785_v39 = vpop.f32.mrb[7].mxu1  ;;  %v4696_v36 = vld [vmem:[#allocation10 + $0xa0] ss:$16 sps:$4 sm:$0xff]  }
 0x259   :  { %v4704_v39 = vld [vmem:[#allocation10 + $0xcc] ss:$16 sps:$4 sm:$0xff]  }
 0x25a   :  { %v308_v40 = vadd.f32 %v307_v37, %v302_v34  ;;  %v315_v41 = vrot.slane %v314_v38, 4  ;;  %v4698_v37 = vld [vmem:[#allocation10 + $0xa8] ss:$16 sps:$4 sm:$0xff]  }
 0x25c   :  { %v309_v42 = vrot.slane %v308_v40, 2  ;;  %v316_v43 = vadd.f32 %v315_v41, %v314_v38  ;;  %v4702_v38 = vld [vmem:[#allocation10 + $0xc4] ss:$16 sps:$4 sm:$0xff]   ;;  %v4710_v41 = vld [vmem:[#allocation10 + $0xc0] ss:$16 sps:$4 sm:$0xff]  }
 0x25e   :  { %v310_v45 = vadd.f32 %v309_v42, %v308_v40  ;;  %v317_v46 = vrot.slane %v316_v43, 2  ;;  %v702_v40 = vpack.c.bf16 %v4602_v14, %v4602_v14  ;;  %v4712_v42 = vld [vmem:[#allocation10 + $0xc8] ss:$16 sps:$4 sm:$0xff]  }
 0x260   :  { %v311_v47 = vrot.slane %v310_v45, 1  ;;  %v318_v49 = vadd.f32 %v317_v46, %v316_v43  ;;  %v4716_v43 = vld [vmem:[#allocation10 + $0xe4] ss:$16 sps:$4 sm:$0xff]   ;;  %v704_v46 = vshrl.u32 %v702_v40, 16  ;;  %v5900_v40 = vmov 0 }
 0x262   :  { %v312_v50 = vadd.f32 %v311_v47, %v310_v45  ;;  %v319_v51 = vrot.slane %v318_v49, 1  ;;  %v4718_v45 = vld [vmem:[#allocation10 + $0xec] ss:$16 sps:$4 sm:$0xff]   ;;  %v4724_v47 = vld [vmem:[#allocation10 + $0xe8] ss:$16 sps:$4 sm:$0xff]  }
 0x264   :  { %v320_v52 = vadd.f32 %v319_v51, %v318_v49  ;;  %v313_v53 = vmul.f32 0.125, %v312_v50  ;;  %v706_v49 = vrot.slane %v704_v46, 3 }
 0x266   :  { %v321_v54 = vmul.f32 0.125, %v320_v52  ;;  %v322_v55 = vmul.f32 %v313_v53, %v313_v53 }
 0x268   :  { %v323_v56 = vsub.f32 %v321_v54, %v322_v55 }
 0x26a   :  { %v324_v57 = vmax.f32 %v323_v56, 0.0 }
 0x26c   :  { %v325_v58 = vadd.f32 1e-05, %v324_v57 }
 0x26e   :  { %4029 = vrsqrt.f32 %v325_v58  ;;  %v422_v58 = vld [vmem:[%s5856_s5] sm:$0xf] }
 0x278   :  { %v4030_v59 = vpop.eup %4029 }
 0x279   :  { %v327_v60 = vmul.f32 %v4030_v59, %v4602_v14  ;;  %v4770_v59 = vand.u32 127, %v120_v11 }
 0x27b   :  { %v333_v62 = vmul.f32 %v327_v60, %v313_v53  ;;  %v331_v63 = vrot.slane %v327_v60, %v330_v61  ;;  %5899 = vst [vmem:[#allocation24_spill] sm:$0xff] %v4770_v59  ;;  %v427_v60 = vrot.slane %v422_v58, %v4597_v13  ;;  %v431_v61 = vrot.slane %v422_v58, %v4610_v44 }
 0x27d   :  { %v335_v1 = vrot.slane %v333_v62, 7  ;;  %v332_v4 = vmul.f32 %v331_v63, %v302_v34  ;;  %v4690_v34 = vld [vmem:[#allocation10 + $0xa4] ss:$16 sps:$4 sm:$0xff]   ;;  %v345_v62 = vadd.s32 128, %v4770_v59 }
 0x27f   :  { %v337_v3 = vsub.f32 %v4602_v14, %v335_v1  ;;  %v4722_v14 = vld [vmem:[#allocation10 + $0xe0] ss:$16 sps:$4 sm:$0xff]   ;;  %v439_v1 = vrot.slane %v422_v58, %v4628_v31 }
 0x281   :  { %v341_v5 = vrot.slane %v337_v3, %v340_v2  ;;  %v348_v3 = vand.u32 64, %v4770_v59 }
 0x283   :  { %v342_v6 = vadd.f32 %v341_v5, %v332_v4  ;;  %v347_v4 = vadd.s32 384, %v4770_v59  ;;  %v349_v5 = vand.u32 64, %v345_v62  ;;  %vm4786_vm4 = vcmp.eq.s32.totalorder %v348_v3, 0 }
 0x284   :  { %v5901_v40 = vsel %vm4786_vm4, 4294967295, %v5900_v40 }
 0x285   :  { %v389_v9 = vpack.c.bf16 %v342_v6, %v342_v6  ;;  %5902 = vst [vmem:[#allocation25_spill] sm:$0xff] %v5901_v40  ;;  %vm4792_vm5 = vcmp.eq.s32.totalorder %v349_v5, 0 }
 0x287   :  { %637 = vmatmul.mubr.bf16.vlgmr.msra.gmra.mrb[0].mxu0 %v389_v9  ;;  %678 = vmatmul.mubr.bf16.vlgmr.msra.gmra.mrb[8].mxu1 %v389_v9  ;;  %v435_v9 = vrot.slane %v422_v58, %v4614_v48 }
 0x288   :  { %869 = vmatpush1.bf16.msra.mxu0 %v4636_v7  ;;  %910 = vmatpush1.bf16.msra.mxu1 %v4638_v8 }
 0x289   :  { %870 = vmatprep.subr.bf16.mxu0 %v4640_v15  ;;  %911 = vmatprep.subr.bf16.mxu1 %v4642_v16 }
 0x28a   :  { %900 = vmatprep.mubr.bf16.mxu0 %v5862_v10  ;;  %941 = vmatprep.mubr.bf16.mxu1 %v5862_v10 }
 0x28c   :  { %871 = vmatpush1.bf16.msra.mxu0 %v4646_v17  ;;  %912 = vmatpush1.bf16.msra.mxu1 %v4648_v18 }
 0x28d   :  { %872 = vmatprep.subr.bf16.mxu0 %v4652_v19  ;;  %913 = vmatprep.subr.bf16.mxu1 %v4654_v20 }
 0x290   :  { %873 = vmatpush1.bf16.msra.mxu0 %v4660_v21  ;;  %914 = vmatpush1.bf16.msra.mxu1 %v4662_v22 }
 0x291   :  { %874 = vmatprep.subr.bf16.mxu0 %v4666_v23  ;;  %915 = vmatprep.subr.bf16.mxu1 %v4668_v24 }
 0x294   :  { %875 = vmatpush1.bf16.msra.mxu0 %v4672_v25  ;;  %916 = vmatpush1.bf16.msra.mxu1 %v4674_v26 }
 0x295   :  { %876 = vmatprep.subr.bf16.mxu0 %v4678_v27  ;;  %917 = vmatprep.subr.bf16.mxu1 %v4680_v28 }
 0x298   :  { %877 = vmatpush1.bf16.msra.mxu0 %v4684_v32  ;;  %918 = vmatpush1.bf16.msra.mxu1 %v4686_v33 }
 0x299   :  { %878 = vmatprep.subr.bf16.mxu0 %v4690_v34  ;;  %919 = vmatprep.subr.bf16.mxu1 %v4692_v35 }
 0x29c   :  { %879 = vmatpush1.bf16.msra.mxu0 %v4696_v36  ;;  %920 = vmatpush1.bf16.msra.mxu1 %v4698_v37 }
 0x29d   :  { %880 = vmatprep.subr.bf16.mxu0 %v4702_v38  ;;  %921 = vmatprep.subr.bf16.mxu1 %v4704_v39 }
 0x2a0   :  { %881 = vmatpush1.bf16.msra.mxu0 %v4710_v41  ;;  %922 = vmatpush1.bf16.msra.mxu1 %v4712_v42 }
 0x2a1   :  { %882 = vmatprep.subr.bf16.mxu0 %v4716_v43  ;;  %923 = vmatprep.subr.bf16.mxu1 %v4718_v45 }
 0x2a4   :  { %883 = vmatpush1.bf16.msra.mxu0 %v4722_v14  ;;  %924 = vmatpush1.bf16.msra.mxu1 %v4724_v47 }
 0x2a5   :  { %988 = vmatprep.subr.bf16.mxu0 %v4621_v29  ;;  %1029 = vmatprep.subr.bf16.mxu1 %v4623_v30 }
 0x2a7   :  { %901 = vmatmul.mubr.bf16.vlgmr.msra.gmra.mrb[4].mxu0 %v706_v49  ;;  %942 = vmatmul.mubr.bf16.vlgmr.msra.gmra.mrb[12].mxu1 %v706_v49  ;;  %v351_v49 = vand.u32 64, %v347_v4 }
 0x2a8   :  { %989 = vmatpush1.bf16.msra.mxu0 %v4636_v7  ;;  %1030 = vmatpush1.bf16.msra.mxu1 %v4638_v8 }
 0x2a9   :  { %990 = vmatprep.subr.bf16.mxu0 %v4640_v15  ;;  %1031 = vmatprep.subr.bf16.mxu1 %v4642_v16  ;;  %vm4810_vm6 = vcmp.eq.s32.totalorder %v351_v49, 0 }
 0x2aa   :  { %1020 = vmatprep.mubr.bf16.mxu0 %v5862_v10  ;;  %1061 = vmatprep.mubr.bf16.mxu1 %v5862_v10 }
 0x2ac   :  { %991 = vmatpush1.bf16.msra.mxu0 %v4646_v17  ;;  %1032 = vmatpush1.bf16.msra.mxu1 %v4648_v18 }
 0x2ad   :  { %992 = vmatprep.subr.bf16.mxu0 %v4652_v19  ;;  %1033 = vmatprep.subr.bf16.mxu1 %v4654_v20 }
 0x2b0   :  { %993 = vmatpush1.bf16.msra.mxu0 %v4660_v21  ;;  %1034 = vmatpush1.bf16.msra.mxu1 %v4662_v22 }
 0x2b1   :  { %994 = vmatprep.subr.bf16.mxu0 %v4666_v23  ;;  %1035 = vmatprep.subr.bf16.mxu1 %v4668_v24 }
 0x2b4   :  { %995 = vmatpush1.bf16.msra.mxu0 %v4672_v25  ;;  %1036 = vmatpush1.bf16.msra.mxu1 %v4674_v26 }
 0x2b5   :  { %996 = vmatprep.subr.bf16.mxu0 %v4678_v27  ;;  %1037 = vmatprep.subr.bf16.mxu1 %v4680_v28 }
 0x2b8   :  { %997 = vmatpush1.bf16.msra.mxu0 %v4684_v32  ;;  %1038 = vmatpush1.bf16.msra.mxu1 %v4686_v33 }
 0x2b9   :  { %998 = vmatprep.subr.bf16.mxu0 %v4690_v34  ;;  %1039 = vmatprep.subr.bf16.mxu1 %v4692_v35 }
 0x2bc   :  { %999 = vmatpush1.bf16.msra.mxu0 %v4696_v36  ;;  %1040 = vmatpush1.bf16.msra.mxu1 %v4698_v37 }
 0x2bd   :  { %1000 = vmatprep.subr.bf16.mxu0 %v4702_v38  ;;  %1041 = vmatprep.subr.bf16.mxu1 %v4704_v39 }
 0x2c0   :  { %1001 = vmatpush1.bf16.msra.mxu0 %v4710_v41  ;;  %1042 = vmatpush1.bf16.msra.mxu1 %v4712_v42 }
 0x2c1   :  { %1002 = vmatprep.subr.bf16.mxu0 %v4716_v43  ;;  %1043 = vmatprep.subr.bf16.mxu1 %v4718_v45 }
 0x2c4   :  { %1003 = vmatpush1.bf16.msra.mxu0 %v4722_v14  ;;  %1044 = vmatpush1.bf16.msra.mxu1 %v4724_v47 }
 0x2c5   :  { %1124 = vmatprep.subr.bf16.mxu0 %v4621_v29  ;;  %1165 = vmatprep.subr.bf16.mxu1 %v4623_v30 }
 0x35a   :  { %v638_v50 = vpop.f32.mrb[0].mxu0  ;;  %v679_v51 = vpop.f32.mrb[8].mxu1 }
 0x35b   :  { %v640_v52 = vpop.f32.mrb[1].mxu0  ;;  %v681_v53 = vpop.f32.mrb[9].mxu1  ;;  %v4775_v63 = vadd.f32 %v638_v50, %v427_v60  ;;  %v346_v50 = vadd.s32 256, %v4770_v59 }
 0x35c   :  { %v642_v54 = vpop.f32.mrb[2].mxu0  ;;  %v683_v55 = vpop.f32.mrb[10].mxu1  ;;  %v4778_v2 = vadd.f32 %v640_v52, %v431_v61  ;;  %v4782_v6 = vadd.f32 %v681_v53, %v439_v1 }
 0x35d   :  { %v643_v56 = vpop.f32.mrb[3].mxu0  ;;  %v684_v57 = vpop.f32.mrb[11].mxu1  ;;  %v690_v11 = vrot.slane %v4775_v63, 7  ;;  %v350_v3 = vand.u32 64, %v346_v50 }
 0x35e   :  { %v691_v46 = vrot.slane %v4778_v2, 7  ;;  %v693_v56 = vrot.slane %v4782_v6, 7  ;;  %v4802_v57 = vadd.f32 %v679_v51, %v435_v9 }
 0x35f   :  { %v4799_v53 = vsel %vm4786_vm4, %v4775_v63, %v690_v11  ;;  %vm4822_vm7 = vcmp.eq.s32.totalorder %v350_v3, 0 }
 0x360   :  { %v4808_v60 = vsel %vm4792_vm5, %v4778_v2, %v691_v46  ;;  %v4818_v46 = vsel %vm4810_vm6, %v4782_v6, %v693_v56  ;;  %v692_v49 = vrot.slane %v4802_v57, 7 }
 0x361   :  { %5907 = vst [vmem:[#allocation26_spill] sm:$0xff] %v4818_v46 }
 0x37a   :  { %v902_v54 = vpop.f32.mrb[4].mxu0  ;;  %v943_v55 = vpop.f32.mrb[12].mxu1 }
 0x37b   :  { %v950_v58 = vadd.f32 %v902_v54, %v4799_v53  ;;  %v904_v61 = vpop.f32.mrb[5].mxu0  ;;  %v945_v1 = vpop.f32.mrb[13].mxu1 }
 0x37c   :  { %v951_v4 = vadd.f32 %v904_v61, %v4808_v60  ;;  %v906_v5 = vpop.f32.mrb[6].mxu0  ;;  %v947_v11 = vpop.f32.mrb[14].mxu1  ;;  %v953_v10 = vadd.f32 %v945_v1, %v4818_v46 }
 0x37d   :  { %v954_v51 = vmul.f32 0.5, %v950_v58  ;;  %v907_v9 = vpop.f32.mrb[7].mxu0  ;;  %v948_v0 = vpop.f32.mrb[15].mxu1 }
 0x37e   :  { %v955_v54 = vmul.f32 0.5, %v951_v4  ;;  %v4829_v0 = vsel %vm4822_vm7, %v4802_v57, %v692_v49  ;;  %v112_v4 = vld [vmem:[%s5858_s7 + $0x8] sm:$0x7] }
 0x37f   :  { %4031 = vtanh.f32 %v954_v51  ;;  %5910 = vst [vmem:[#allocation27_spill] sm:$0xff] %v4829_v0  ;;  %v952_v58 = vadd.f32 %v943_v55, %v4829_v0  ;;  %v968_v51 = vrot.slane %v112_v4, 1 }
 0x380   :  { %4033 = vtanh.f32 %v955_v54 }
 0x381   :  { %4035 = vtanh.f32 %v953_v10  ;;  %v956_v56 = vmul.f32 0.5, %v952_v58 }
 0x383   :  { %4037 = vtanh.f32 %v956_v56  ;;  %v976_v56 = vrot.slane %v4778_v2, 5 }
 0x389   :  { %v4032_v61 = vpop.eup %4031 }
 0x38a   :  { %v960_v1 = vmul.f32 0.5, %v4032_v61  ;;  %v4034_v3 = vpop.eup %4033 }
 0x38b   :  { %v961_v11 = vmul.f32 0.5, %v4034_v3  ;;  %v4036_v9 = vpop.eup %4035 }
 0x38c   :  { %v963_v5 = vadd.f32 0.5, %v960_v1 }
 0x38d   :  { %v964_v54 = vadd.f32 0.5, %v961_v11  ;;  %v4038_v10 = vpop.eup %4037 }
 0x38e   :  { %v971_v12 = vmul.f32 %v4036_v9, %v963_v5  ;;  %v962_v55 = vmul.f32 0.5, %v4038_v10 }
 0x38f   :  { %v970_v49 = vmul.f32 %v968_v51, %v964_v54  ;;  %v978_v54 = vrot.slane %v4782_v6, 5 }
 0x390   :  { %v965_v58 = vadd.f32 0.5, %v962_v55 }
 0x391   :  { %v4835_v48 = vadd.f32 %v971_v12, %v970_v49  ;;  %v5912_v12 = vmov 0  }
 0x393   :  { %4039 = vtanh.f32 %v4835_v48 }
 0x39d   :  { %v4040_v31 = vpop.eup %4039 }
 0x39e   :  { %v4838_v44 = vmul.f32 %v4040_v31, %v965_v58  ;;  %v975_v31 = vrot.slane %v4775_v63, 5  ;;  %v4888_v58 = vsel %vm4792_vm5, %v4778_v2, %v976_v56 }
 0x39f   :  { %5914 = vst [vmem:[#allocation30_spill] sm:$0xff] %v4888_v58 }
 0x3a0   :  { %5911 = vst [vmem:[#allocation28_spill] sm:$0xff] %v4838_v44  ;;  %v987_v61 = vpack.c.bf16 %v4838_v44, %v4838_v44  ;;  %v4881_v51 = vsel %vm4786_vm4, %v4775_v63, %v975_v31 }
 0x3a1   :  { %5913 = vst [vmem:[#allocation29_spill] sm:$0xff] %v4881_v51 }
 0x3a2   :  { %1021 = vmatmul.mubr.bf16.vlgmr.msra.gmra.mrb[8].mxu0 %v987_v61  ;;  %1062 = vmatmul.mubr.bf16.vlgmr.msra.gmra.mrb[16].mxu1 %v987_v61 }
 0x3a3   :  { %1125 = vmatpush1.bf16.msra.mxu0 %v4636_v7  ;;  %1166 = vmatpush1.bf16.msra.mxu1 %v4638_v8 }
 0x3a4   :  { %1126 = vmatprep.subr.bf16.mxu0 %v4640_v15  ;;  %1167 = vmatprep.subr.bf16.mxu1 %v4642_v16 }
 0x3a5   :  { %1156 = vmatprep.mubr.bf16.mxu0 %v5912_v12  ;;  %1197 = vmatprep.mubr.bf16.mxu1 %v5912_v12 }
 0x3a7   :  { %1127 = vmatpush1.bf16.msra.mxu0 %v4646_v17  ;;  %1168 = vmatpush1.bf16.msra.mxu1 %v4648_v18 }
 0x3a8   :  { %1128 = vmatprep.subr.bf16.mxu0 %v4652_v19  ;;  %1169 = vmatprep.subr.bf16.mxu1 %v4654_v20 }
 0x3ab   :  { %1129 = vmatpush1.bf16.msra.mxu0 %v4660_v21  ;;  %1170 = vmatpush1.bf16.msra.mxu1 %v4662_v22 }
 0x3ac   :  { %1130 = vmatprep.subr.bf16.mxu0 %v4666_v23  ;;  %1171 = vmatprep.subr.bf16.mxu1 %v4668_v24 }
 0x3af   :  { %1131 = vmatpush1.bf16.msra.mxu0 %v4672_v25  ;;  %1172 = vmatpush1.bf16.msra.mxu1 %v4674_v26 }
 0x3b0   :  { %1132 = vmatprep.subr.bf16.mxu0 %v4678_v27  ;;  %1173 = vmatprep.subr.bf16.mxu1 %v4680_v28 }
 0x3b3   :  { %1133 = vmatpush1.bf16.msra.mxu0 %v4684_v32  ;;  %1174 = vmatpush1.bf16.msra.mxu1 %v4686_v33 }
 0x3b4   :  { %1134 = vmatprep.subr.bf16.mxu0 %v4690_v34  ;;  %1175 = vmatprep.subr.bf16.mxu1 %v4692_v35 }
 0x3b7   :  { %1135 = vmatpush1.bf16.msra.mxu0 %v4696_v36  ;;  %1176 = vmatpush1.bf16.msra.mxu1 %v4698_v37 }
 0x3b8   :  { %1136 = vmatprep.subr.bf16.mxu0 %v4702_v38  ;;  %1177 = vmatprep.subr.bf16.mxu1 %v4704_v39 }
 0x3bb   :  { %1137 = vmatpush1.bf16.msra.mxu0 %v4710_v41  ;;  %1178 = vmatpush1.bf16.msra.mxu1 %v4712_v42 }
 0x3bc   :  { %1138 = vmatprep.subr.bf16.mxu0 %v4716_v43  ;;  %1179 = vmatprep.subr.bf16.mxu1 %v4718_v45 }
 0x3bf   :  { %1139 = vmatpush1.bf16.msra.mxu0 %v4722_v14  ;;  %1180 = vmatpush1.bf16.msra.mxu1 %v4724_v47 }
 0x3c0   :  { %1259 = vmatprep.subr.bf16.mxu0 %v4621_v29  ;;  %1300 = vmatprep.subr.bf16.mxu1 %v4623_v30 }
 0x475   :  { %v1022_v4 = vpop.f32.mrb[8].mxu0  ;;  %v1063_v1 = vpop.f32.mrb[16].mxu1 }
 0x476   :  { %v1074_v3 = vrot.slane %v1022_v4, 7  ;;  %v1024_v5 = vpop.f32.mrb[9].mxu0  ;;  %v1065_v11 = vpop.f32.mrb[17].mxu1 }
 0x477   :  { %v1075_v9 = vrot.slane %v1024_v5, 7  ;;  %v1026_v49 = vpop.f32.mrb[10].mxu0  ;;  %v1067_v10 = vpop.f32.mrb[18].mxu1  ;;  %v1077_v61 = vrot.slane %v1065_v11, 7  ;;  %v4894_v5 = vsel %vm4810_vm6, %v4782_v6, %v978_v54 }
 0x478   :  { %v1082_v55 = vadd.f32 %v1074_v3, %v4881_v51  ;;  %v1027_v4 = vpop.f32.mrb[11].mxu0  ;;  %v1068_v13 = vpop.f32.mrb[19].mxu1  ;;  %5915 = vst [vmem:[#allocation31_spill] sm:$0xff] %v4894_v5  ;;  %v977_v3 = vrot.slane %v4802_v57, 5  ;;  %v1076_v10 = vrot.slane %v1063_v1, 7  ;;  %v1100_v1 = vrot.slane %v4835_v48, 7 }
 0x479   :  { %v1083_v59 = vadd.f32 %v1075_v9, %v4888_v58  ;;  %v1085_v49 = vadd.f32 %v1077_v61, %v4894_v5  ;;  %v1107_v48 = vrot.slane %v4775_v63, 3 }
 0x47a   :  { %v1086_v0 = vmul.f32 0.5, %v1082_v55  ;;  %v4901_v13 = vsel %vm4822_vm7, %v4802_v57, %v977_v3 }
 0x47b   :  { %v1087_v31 = vmul.f32 0.5, %v1083_v59  ;;  %5916 = vst [vmem:[#allocation32_spill] sm:$0xff] %v4901_v13  ;;  %v1084_v59 = vadd.f32 %v1076_v10, %v4901_v13 }
 0x47c   :  { %4041 = vtanh.f32 %v1086_v0 }
 0x47d   :  { %4043 = vtanh.f32 %v1087_v31  ;;  %v1088_v56 = vmul.f32 0.5, %v1084_v59 }
 0x47e   :  { %4045 = vtanh.f32 %v1085_v49 }
 0x47f   :  { %4047 = vtanh.f32 %v1088_v56 }
 0x486   :  { %v4042_v11 = vpop.eup %4041 }
 0x487   :  { %v1092_v9 = vmul.f32 0.5, %v4042_v11  ;;  %v4044_v54 = vpop.eup %4043 }
 0x488   :  { %v1093_v0 = vmul.f32 0.5, %v4044_v54  ;;  %v4046_v4 = vpop.eup %4045 }
 0x489   :  { %v1095_v55 = vadd.f32 0.5, %v1092_v9  ;;  %v4048_v3 = vpop.eup %4047 }
 0x48a   :  { %v1096_v58 = vadd.f32 0.5, %v1093_v0  ;;  %v1094_v49 = vmul.f32 0.5, %v4048_v3 }
 0x48b   :  { %v1103_v61 = vmul.f32 %v4046_v4, %v1095_v55 }
 0x48c   :  { %v1102_v31 = vmul.f32 %v1100_v1, %v1096_v58  ;;  %v1097_v10 = vadd.f32 0.5, %v1094_v49  ;;  %v1108_v58 = vrot.slane %v4778_v2, 3  ;;  %v4951_v1 = vsel %vm4786_vm4, %v4775_v63, %v1107_v48 }
 0x48e   :  { %v4905_v5 = vadd.f32 %v1103_v61, %v1102_v31  ;;  %v1110_v31 = vrot.slane %v4782_v6, 3 }
 0x490   :  { %4049 = vtanh.f32 %v4905_v5 }
 0x49a   :  { %v4050_v59 = vpop.eup %4049 }
 0x49b   :  { %v4908_v13 = vmul.f32 %v4050_v59, %v1097_v10  ;;  %v4958_v59 = vsel %vm4792_vm5, %v4778_v2, %v1108_v58 }
 0x49c   :  { %5917 = vst [vmem:[#allocation33_spill] sm:$0xff] %v4958_v59 }
 0x49d   :  { %v1119_v56 = vpack.c.bf16 %v4908_v13, %v4908_v13 }
 0x49f   :  { %v1121_v11 = vshrl.u32 %v1119_v56, 16 }
 0x4a1   :  { %1157 = vmatmul.mubr.bf16.vlgmr.msra.gmra.mrb[12].mxu0 %v1121_v11  ;;  %1198 = vmatmul.mubr.bf16.vlgmr.msra.gmra.mrb[20].mxu1 %v1121_v11 }
 0x4a2   :  { %1260 = vmatpush1.bf16.msra.mxu0 %v4636_v7  ;;  %1301 = vmatpush1.bf16.msra.mxu1 %v4638_v8 }
 0x4a3   :  { %1261 = vmatprep.subr.bf16.mxu0 %v4640_v15  ;;  %1302 = vmatprep.subr.bf16.mxu1 %v4642_v16 }
 0x4a4   :  { %1291 = vmatprep.mubr.bf16.mxu0 %v5912_v12  ;;  %1332 = vmatprep.mubr.bf16.mxu1 %v5912_v12 }
 0x4a6   :  { %1262 = vmatpush1.bf16.msra.mxu0 %v4646_v17  ;;  %1303 = vmatpush1.bf16.msra.mxu1 %v4648_v18 }
 0x4a7   :  { %1263 = vmatprep.subr.bf16.mxu0 %v4652_v19  ;;  %1304 = vmatprep.subr.bf16.mxu1 %v4654_v20 }
 0x4aa   :  { %1264 = vmatpush1.bf16.msra.mxu0 %v4660_v21  ;;  %1305 = vmatpush1.bf16.msra.mxu1 %v4662_v22 }
 0x4ab   :  { %1265 = vmatprep.subr.bf16.mxu0 %v4666_v23  ;;  %1306 = vmatprep.subr.bf16.mxu1 %v4668_v24 }
 0x4ae   :  { %1266 = vmatpush1.bf16.msra.mxu0 %v4672_v25  ;;  %1307 = vmatpush1.bf16.msra.mxu1 %v4674_v26 }
 0x4af   :  { %1267 = vmatprep.subr.bf16.mxu0 %v4678_v27  ;;  %1308 = vmatprep.subr.bf16.mxu1 %v4680_v28 }
 0x4b2   :  { %1268 = vmatpush1.bf16.msra.mxu0 %v4684_v32  ;;  %1309 = vmatpush1.bf16.msra.mxu1 %v4686_v33 }
 0x4b3   :  { %1269 = vmatprep.subr.bf16.mxu0 %v4690_v34  ;;  %1310 = vmatprep.subr.bf16.mxu1 %v4692_v35 }
 0x4b6   :  { %1270 = vmatpush1.bf16.msra.mxu0 %v4696_v36  ;;  %1311 = vmatpush1.bf16.msra.mxu1 %v4698_v37 }
 0x4b7   :  { %1271 = vmatprep.subr.bf16.mxu0 %v4702_v38  ;;  %1312 = vmatprep.subr.bf16.mxu1 %v4704_v39 }
 0x4ba   :  { %1272 = vmatpush1.bf16.msra.mxu0 %v4710_v41  ;;  %1313 = vmatpush1.bf16.msra.mxu1 %v4712_v42 }
 0x4bb   :  { %1273 = vmatprep.subr.bf16.mxu0 %v4716_v43  ;;  %1314 = vmatprep.subr.bf16.mxu1 %v4718_v45 }
 0x4be   :  { %1274 = vmatpush1.bf16.msra.mxu0 %v4722_v14  ;;  %1315 = vmatpush1.bf16.msra.mxu1 %v4724_v47 }
 0x4bf   :  { %1384 = vmatprep.subr.bf16.mxu0 %v4621_v29  ;;  %1425 = vmatprep.subr.bf16.mxu1 %v4623_v30 }
 0x574   :  { %v1158_v9 = vpop.f32.mrb[12].mxu0  ;;  %v1199_v54 = vpop.f32.mrb[20].mxu1 }
 0x575   :  { %v1210_v55 = vrot.slane %v1158_v9, 6  ;;  %v1160_v0 = vpop.f32.mrb[13].mxu0  ;;  %v1201_v4 = vpop.f32.mrb[21].mxu1 }
 0x576   :  { %v1211_v61 = vrot.slane %v1160_v0, 6  ;;  %v1162_v3 = vpop.f32.mrb[14].mxu0  ;;  %v1203_v49 = vpop.f32.mrb[22].mxu1  ;;  %v1213_v56 = vrot.slane %v1201_v4, 6  ;;  %v4964_v0 = vsel %vm4810_vm6, %v4782_v6, %v1110_v31 }
 0x577   :  { %v1218_v10 = vadd.f32 %v1210_v55, %v4951_v1  ;;  %v1163_v11 = vpop.f32.mrb[15].mxu0  ;;  %v1204_v9 = vpop.f32.mrb[23].mxu1  ;;  %5918 = vst [vmem:[#allocation34_spill] sm:$0xff] %v4964_v0  ;;  %v1109_v55 = vrot.slane %v4802_v57, 3  ;;  %v1212_v49 = vrot.slane %v1199_v54, 6  ;;  %v1236_v54 = vrot.slane %v4905_v5, 7 }
 0x578   :  { %v1219_v51 = vadd.f32 %v1211_v61, %v4958_v59  ;;  %v1221_v3 = vadd.f32 %v1213_v56, %v4964_v0 }
 0x579   :  { %v1222_v46 = vmul.f32 0.5, %v1218_v10  ;;  %v4971_v58 = vsel %vm4822_vm7, %v4802_v57, %v1109_v55 }
 0x57a   :  { %v1223_v48 = vmul.f32 0.5, %v1219_v51  ;;  %v1220_v51 = vadd.f32 %v1212_v49, %v4971_v58 }
 0x57b   :  { %4051 = vtanh.f32 %v1222_v46 }
 0x57c   :  { %4053 = vtanh.f32 %v1223_v48  ;;  %v1224_v4 = vmul.f32 0.5, %v1220_v51 }
 0x57d   :  { %4055 = vtanh.f32 %v1221_v3 }
 0x57e   :  { %4057 = vtanh.f32 %v1224_v4  ;;  %v1875_v4 = vsel %vm1874_vm8, %v4838_v44, %v4908_v13 }
 0x585   :  { %v4052_v61 = vpop.eup %4051 }
 0x586   :  { %v1228_v10 = vmul.f32 0.5, %v4052_v61  ;;  %v4054_v31 = vpop.eup %4053 }
 0x587   :  { %v1229_v46 = vmul.f32 0.5, %v4054_v31  ;;  %v4056_v9 = vpop.eup %4055  ;;  %v1243_v31 = vrot.slane %v4775_v63, 1 }
 0x588   :  { %v1231_v11 = vadd.f32 0.5, %v1228_v10  ;;  %v4058_v55 = vpop.eup %4057 }
 0x589   :  { %v1232_v59 = vadd.f32 0.5, %v1229_v46  ;;  %v1230_v3 = vmul.f32 0.5, %v4058_v55  ;;  %v5028_v55 = vsel %vm4786_vm4, %v4775_v63, %v1243_v31 }
 0x58a   :  { %v1239_v56 = vmul.f32 %v4056_v9, %v1231_v11  ;;  %v1244_v11 = vrot.slane %v4778_v2, 1 }
 0x58b   :  { %v1238_v48 = vmul.f32 %v1236_v54, %v1232_v59  ;;  %v1233_v49 = vadd.f32 0.5, %v1230_v3 }
 0x58d   :  { %v4975_v0 = vadd.f32 %v1239_v56, %v1238_v48 }
 0x58f   :  { %4059 = vtanh.f32 %v4975_v0 }
 0x599   :  { %v4060_v51 = vpop.eup %4059 }
 0x59a   :  { %v4978_v61 = vmul.f32 %v4060_v51, %v1233_v49  ;;  %v1246_v49 = vrot.slane %v4782_v6, 1 }
 0x59c   :  { %v1255_v5 = vpack.c.bf16 %v4978_v61, %v4978_v61  ;;  %v4987_v59 = vsel %vm1876_vm9, %v1875_v4, %v4978_v61  ;;  %v5035_v4 = vsel %vm4792_vm5, %v4778_v2, %v1244_v11  ;;  %v5041_v31 = vsel %vm4810_vm6, %v4782_v6, %v1246_v49 }
 0x59e   :  { %v1257_v10 = vrot.slane %v1255_v5, 1 }
 0x5a0   :  { %1292 = vmatmul.mubr.bf16.vlgmr.msra.gmra.mrb[16].mxu0 %v1257_v10  ;;  %1333 = vmatmul.mubr.bf16.vlgmr.msra.gmra.mrb[24].mxu1 %v1257_v10 }
 0x5a1   :  { %1385 = vmatpush1.bf16.msra.mxu0 %v4636_v7  ;;  %1426 = vmatpush1.bf16.msra.mxu1 %v4638_v8 }
 0x5a2   :  { %1386 = vmatprep.subr.bf16.mxu0 %v4640_v15  ;;  %1427 = vmatprep.subr.bf16.mxu1 %v4642_v16 }
 0x5a3   :  { %1416 = vmatprep.mubr.bf16.mxu0 %v5912_v12  ;;  %1457 = vmatprep.mubr.bf16.mxu1 %v5912_v12 }
 0x5a5   :  { %1387 = vmatpush1.bf16.msra.mxu0 %v4646_v17  ;;  %1428 = vmatpush1.bf16.msra.mxu1 %v4648_v18 }
 0x5a6   :  { %1388 = vmatprep.subr.bf16.mxu0 %v4652_v19  ;;  %1429 = vmatprep.subr.bf16.mxu1 %v4654_v20 }
 0x5a9   :  { %1389 = vmatpush1.bf16.msra.mxu0 %v4660_v21  ;;  %1430 = vmatpush1.bf16.msra.mxu1 %v4662_v22 }
 0x5aa   :  { %1390 = vmatprep.subr.bf16.mxu0 %v4666_v23  ;;  %1431 = vmatprep.subr.bf16.mxu1 %v4668_v24 }
 0x5ad   :  { %1391 = vmatpush1.bf16.msra.mxu0 %v4672_v25  ;;  %1432 = vmatpush1.bf16.msra.mxu1 %v4674_v26 }
 0x5ae   :  { %1392 = vmatprep.subr.bf16.mxu0 %v4678_v27  ;;  %1433 = vmatprep.subr.bf16.mxu1 %v4680_v28 }
 0x5b1   :  { %1393 = vmatpush1.bf16.msra.mxu0 %v4684_v32  ;;  %1434 = vmatpush1.bf16.msra.mxu1 %v4686_v33 }
 0x5b2   :  { %1394 = vmatprep.subr.bf16.mxu0 %v4690_v34  ;;  %1435 = vmatprep.subr.bf16.mxu1 %v4692_v35 }
 0x5b5   :  { %1395 = vmatpush1.bf16.msra.mxu0 %v4696_v36  ;;  %1436 = vmatpush1.bf16.msra.mxu1 %v4698_v37 }
 0x5b6   :  { %1396 = vmatprep.subr.bf16.mxu0 %v4702_v38  ;;  %1437 = vmatprep.subr.bf16.mxu1 %v4704_v39 }
 0x5b9   :  { %1397 = vmatpush1.bf16.msra.mxu0 %v4710_v41  ;;  %1438 = vmatpush1.bf16.msra.mxu1 %v4712_v42 }
 0x5ba   :  { %1398 = vmatprep.subr.bf16.mxu0 %v4716_v43  ;;  %1439 = vmatprep.subr.bf16.mxu1 %v4718_v45 }
 0x5bd   :  { %1399 = vmatpush1.bf16.msra.mxu0 %v4722_v14  ;;  %1440 = vmatpush1.bf16.msra.mxu1 %v4724_v47 }
 0x5be   :  { %1507 = vmatprep.subr.bf16.mxu0 %v4621_v29  ;;  %1548 = vmatprep.subr.bf16.mxu1 %v4623_v30 }
 0x673   :  { %v1293_v46 = vpop.f32.mrb[16].mxu0  ;;  %v1334_v9 = vpop.f32.mrb[24].mxu1 }
 0x674   :  { %v1345_v54 = vrot.slane %v1293_v46, 5  ;;  %v1295_v56 = vpop.f32.mrb[17].mxu0  ;;  %v1336_v48 = vpop.f32.mrb[25].mxu1 }
 0x675   :  { %v1346_v3 = vrot.slane %v1295_v56, 5  ;;  %v1297_v29 = vpop.f32.mrb[18].mxu0  ;;  %v1338_v51 = vpop.f32.mrb[26].mxu1  ;;  %v1348_v5 = vrot.slane %v1336_v48, 5 }
 0x676   :  { %v1353_v30 = vadd.f32 %v1345_v54, %v5028_v55  ;;  %v1298_v10 = vpop.f32.mrb[19].mxu0  ;;  %v1339_v46 = vpop.f32.mrb[27].mxu1  ;;  %v1245_v54 = vrot.slane %v4802_v57, 1  ;;  %v1347_v29 = vrot.slane %v1334_v9, 5  ;;  %v1371_v9 = vrot.slane %v4975_v0, 7 }
 0x677   :  { %v1354_v44 = vadd.f32 %v1346_v3, %v5035_v4  ;;  %v1356_v56 = vadd.f32 %v1348_v5, %v5041_v31 }
 0x678   :  { %v1357_v40 = vmul.f32 0.5, %v1353_v30  ;;  %v5048_v2 = vsel %vm4822_vm7, %v4802_v57, %v1245_v54 }
 0x679   :  { %v1358_v63 = vmul.f32 0.5, %v1354_v44  ;;  %v1355_v44 = vadd.f32 %v1347_v29, %v5048_v2 }
 0x67a   :  { %4061 = vtanh.f32 %v1357_v40 }
 0x67b   :  { %4063 = vtanh.f32 %v1358_v63  ;;  %v1359_v11 = vmul.f32 0.5, %v1355_v44 }
 0x67c   :  { %4065 = vtanh.f32 %v1356_v56 }
 0x67d   :  { %4067 = vtanh.f32 %v1359_v11 }
 0x684   :  { %v4062_v48 = vpop.eup %4061 }
 0x685   :  { %v1363_v3 = vmul.f32 0.5, %v4062_v48  ;;  %v4064_v6 = vpop.eup %4063 }
 0x686   :  { %v1364_v40 = vmul.f32 0.5, %v4064_v6  ;;  %v4066_v51 = vpop.eup %4065 }
 0x687   :  { %v1366_v49 = vadd.f32 0.5, %v1363_v3  ;;  %v4068_v57 = vpop.eup %4067  ;;  %v5919_v3 = vld [vmem:[#allocation26_spill] sm:$0xff] }
 0x688   :  { %v1367_v30 = vadd.f32 0.5, %v1364_v40  ;;  %v1365_v63 = vmul.f32 0.5, %v4068_v57  ;;  %v5920_v40 = vld [vmem:[#allocation27_spill] sm:$0xff] }
 0x689   :  { %v1374_v5 = vmul.f32 %v4066_v51, %v1366_v49 }
 0x68a   :  { %v1373_v10 = vmul.f32 %v1371_v9, %v1367_v30  ;;  %v1368_v54 = vadd.f32 0.5, %v1365_v63 }
 0x68c   :  { %v5052_v46 = vadd.f32 %v1374_v5, %v1373_v10 }
 0x68e   :  { %4069 = vtanh.f32 %v5052_v46 }
 0x698   :  { %v4070_v56 = vpop.eup %4069 }
 0x699   :  { %v5055_v29 = vmul.f32 %v4070_v56, %v1368_v54 }
 0x69b   :  { %v1378_v44 = vpack.c.bf16 %v5055_v29, %v5055_v29  ;;  %v5062_v0 = vsel %vm1878_vm10, %v4987_v59, %v5055_v29 }
 0x69d   :  { %v1380_v11 = vshrl.u32 %v1378_v44, 16 }
 0x69f   :  { %v1382_v48 = vrot.slane %v1380_v11, 1 }
 0x6a1   :  { %1417 = vmatmul.mubr.bf16.vlgmr.msra.gmra.mrb[20].mxu0 %v1382_v48  ;;  %1458 = vmatmul.mubr.bf16.vlgmr.msra.gmra.mrb[28].mxu1 %v1382_v48 }
 0x6a2   :  { %1508 = vmatpush1.bf16.msra.mxu0 %v4636_v7  ;;  %1549 = vmatpush1.bf16.msra.mxu1 %v4638_v8  ;;  %v5096_v7 = vld [vmem:[#allocation10 + $0x4] ss:$16 sps:$4 sm:$0xff]   ;;  %v5099_v8 = vld [vmem:[#allocation10 + $0xc] ss:$16 sps:$4 sm:$0xff]  }
 0x6a3   :  { %1509 = vmatprep.subr.bf16.mxu0 %v4640_v15  ;;  %1550 = vmatprep.subr.bf16.mxu1 %v4642_v16 }
 0x6a4   :  { %1539 = vmatprep.mubr.bf16.mxu0 %v5912_v12  ;;  %1580 = vmatprep.mubr.bf16.mxu1 %v5912_v12 }
 0x6a6   :  { %1510 = vmatpush1.bf16.msra.mxu0 %v4646_v17  ;;  %1551 = vmatpush1.bf16.msra.mxu1 %v4648_v18 }
 0x6a7   :  { %1511 = vmatprep.subr.bf16.mxu0 %v4652_v19  ;;  %1552 = vmatprep.subr.bf16.mxu1 %v4654_v20 }
 0x6aa   :  { %1512 = vmatpush1.bf16.msra.mxu0 %v4660_v21  ;;  %1553 = vmatpush1.bf16.msra.mxu1 %v4662_v22 }
 0x6ab   :  { %1513 = vmatprep.subr.bf16.mxu0 %v4666_v23  ;;  %1554 = vmatprep.subr.bf16.mxu1 %v4668_v24 }
 0x6ae   :  { %1514 = vmatpush1.bf16.msra.mxu0 %v4672_v25  ;;  %1555 = vmatpush1.bf16.msra.mxu1 %v4674_v26 }
 0x6af   :  { %1515 = vmatprep.subr.bf16.mxu0 %v4678_v27  ;;  %1556 = vmatprep.subr.bf16.mxu1 %v4680_v28 }
 0x6b2   :  { %1516 = vmatpush1.bf16.msra.mxu0 %v4684_v32  ;;  %1557 = vmatpush1.bf16.msra.mxu1 %v4686_v33 }
 0x6b3   :  { %1517 = vmatprep.subr.bf16.mxu0 %v4690_v34  ;;  %1558 = vmatprep.subr.bf16.mxu1 %v4692_v35 }
 0x6b6   :  { %1518 = vmatpush1.bf16.msra.mxu0 %v4696_v36  ;;  %1559 = vmatpush1.bf16.msra.mxu1 %v4698_v37 }
 0x6b7   :  { %1519 = vmatprep.subr.bf16.mxu0 %v4702_v38  ;;  %1560 = vmatprep.subr.bf16.mxu1 %v4704_v39 }
 0x6ba   :  { %1520 = vmatpush1.bf16.msra.mxu0 %v4710_v41  ;;  %1561 = vmatpush1.bf16.msra.mxu1 %v4712_v42 }
 0x6bb   :  { %1521 = vmatprep.subr.bf16.mxu0 %v4716_v43  ;;  %1562 = vmatprep.subr.bf16.mxu1 %v4718_v45 }
 0x6be   :  { %1522 = vmatpush1.bf16.msra.mxu0 %v4722_v14  ;;  %1563 = vmatpush1.bf16.msra.mxu1 %v4724_v47 }
 0x6bf   :  { %1632 = vmatprep.subr.bf16.mxu0 %v5096_v7  ;;  %1673 = vmatprep.subr.bf16.mxu1 %v5099_v8 }
 0x774   :  { %v1418_v15 = vpop.f32.mrb[20].mxu0  ;;  %v1459_v16 = vpop.f32.mrb[28].mxu1 }
 0x775   :  { %v1470_v17 = vrot.slane %v1418_v15, 4  ;;  %v1420_v18 = vpop.f32.mrb[21].mxu0  ;;  %v1461_v19 = vpop.f32.mrb[29].mxu1  ;;  %v1472_v49 = vrot.slane %v1459_v16, 4 }
 0x776   :  { %v1471_v20 = vrot.slane %v1420_v18, 4  ;;  %v1422_v21 = vpop.f32.mrb[22].mxu0  ;;  %v1463_v22 = vpop.f32.mrb[30].mxu1  ;;  %v1473_v24 = vrot.slane %v1461_v19, 4 }
 0x777   :  { %v1478_v23 = vadd.f32 %v1470_v17, %v4799_v53  ;;  %v1423_v25 = vpop.f32.mrb[23].mxu0  ;;  %v1464_v26 = vpop.f32.mrb[31].mxu1  ;;  %v1480_v51 = vadd.f32 %v1472_v49, %v5920_v40  ;;  %v5119_v21 = vld [vmem:[#allocation10] ss:$16 sps:$4 sm:$0xff]   ;;  %v5122_v22 = vld [vmem:[#allocation10 + $0x8] ss:$16 sps:$4 sm:$0xff]  }
 0x778   :  { %v1479_v27 = vadd.f32 %v1471_v20, %v4808_v60  ;;  %v1481_v6 = vadd.f32 %v1473_v24, %v5919_v3  ;;  %v1496_v60 = vrot.slane %v5052_v46, 7  ;;  %v5128_v24 = vld [vmem:[#allocation10 + $0x2c] ss:$16 sps:$4 sm:$0xff]   ;;  %v5136_v25 = vld [vmem:[#allocation10 + $0x28] ss:$16 sps:$4 sm:$0xff]  }
 0x779   :  { %v1482_v28 = vmul.f32 0.5, %v1478_v23  ;;  %v1484_v30 = vmul.f32 0.5, %v1480_v51  ;;  %v5125_v23 = vld [vmem:[#allocation10 + $0x24] ss:$16 sps:$4 sm:$0xff]   ;;  %v5157_v49 = vld [vmem:[#allocation10 + $0x60] ss:$16 sps:$4 sm:$0xff]  }
 0x77a   :  { %v1483_v59 = vmul.f32 0.5, %v1479_v27  ;;  %v5139_v26 = vld [vmem:[#allocation10 + $0x44] ss:$16 sps:$4 sm:$0xff]   ;;  %v5142_v27 = vld [vmem:[#allocation10 + $0x4c] ss:$16 sps:$4 sm:$0xff]  }
 0x77b   :  { %4071 = vtanh.f32 %v1482_v28  ;;  %v5145_v28 = vld [vmem:[#allocation10 + $0x40] ss:$16 sps:$4 sm:$0xff]   ;;  %v5151_v3 = vld [vmem:[#allocation10 + $0x64] ss:$16 sps:$4 sm:$0xff]   ;;  %v5160_v40 = vld [vmem:[#allocation10 + $0x68] ss:$16 sps:$4 sm:$0xff]  }
 0x77c   :  { %4073 = vtanh.f32 %v1483_v59  ;;  %v5148_v59 = vld [vmem:[#allocation10 + $0x48] ss:$16 sps:$4 sm:$0xff]   ;;  %v5163_v51 = vld [vmem:[#allocation10 + $0x84] ss:$16 sps:$4 sm:$0xff]  }
 0x77d   :  { %4075 = vtanh.f32 %v1481_v6  ;;  %v5154_v6 = vld [vmem:[#allocation10 + $0x6c] ss:$16 sps:$4 sm:$0xff]  }
 0x77e   :  { %4077 = vtanh.f32 %v1484_v30  ;;  %v5166_v30 = vld [vmem:[#allocation10 + $0x8c] ss:$16 sps:$4 sm:$0xff]  }
 0x785   :  { %v4072_v9 = vpop.eup %4071 }
 0x786   :  { %v1488_v5 = vmul.f32 0.5, %v4072_v9  ;;  %v4074_v10 = vpop.eup %4073 }
 0x787   :  { %v1489_v57 = vmul.f32 0.5, %v4074_v10  ;;  %v4076_v63 = vpop.eup %4075 }
 0x788   :  { %v1491_v53 = vadd.f32 0.5, %v1488_v5  ;;  %v4078_v48 = vpop.eup %4077 }
 0x789   :  { %v1492_v54 = vadd.f32 0.5, %v1489_v57  ;;  %v1490_v15 = vmul.f32 0.5, %v4078_v48  ;;  %v5924_v57 = vld [vmem:[#allocation32_spill] sm:$0xff] }
 0x78a   :  { %v1499_v56 = vmul.f32 %v4076_v63, %v1491_v53 }
 0x78b   :  { %v1498_v44 = vmul.f32 %v1496_v60, %v1492_v54  ;;  %v1493_v16 = vadd.f32 0.5, %v1490_v15 }
 0x78d   :  { %v5107_v11 = vadd.f32 %v1499_v56, %v1498_v44 }
 0x78f   :  { %4079 = vtanh.f32 %v5107_v11 }
 0x799   :  { %v4080_v17 = vpop.eup %4079 }
 0x79a   :  { %v5110_v18 = vmul.f32 %v4080_v17, %v1493_v16 }
 0x79c   :  { %v1503_v19 = vpack.c.bf16 %v5110_v18, %v5110_v18  ;;  %v5117_v20 = vsel %vm143_vm1, %v5062_v0, %v5110_v18  ;;  %v5133_v0 = vld [vmem:[#allocation10 + $0x20] ss:$16 sps:$4 sm:$0xff]  }
 0x79e   :  { %v1505_v46 = vrot.slane %v1503_v19, 2  ;;  %v1619_v19 = vrot.slane %v5107_v11, 7 }
 0x7a0   :  { %1540 = vmatmul.mubr.bf16.vlgmr.msra.gmra.mrb[24].mxu0 %v1505_v46  ;;  %1581 = vmatmul.mubr.bf16.vlgmr.msra.gmra.mrb[32].mxu1 %v1505_v46 }
 0x7a1   :  { %1633 = vmatpush1.bf16.msra.mxu0 %v5119_v21  ;;  %1674 = vmatpush1.bf16.msra.mxu1 %v5122_v22 }
 0x7a2   :  { %1634 = vmatprep.subr.bf16.mxu0 %v5125_v23  ;;  %1675 = vmatprep.subr.bf16.mxu1 %v5128_v24 }
 0x7a3   :  { %1664 = vmatprep.mubr.bf16.mxu0 %v5912_v12  ;;  %1705 = vmatprep.mubr.bf16.mxu1 %v5912_v12 }
 0x7a5   :  { %1635 = vmatpush1.bf16.msra.mxu0 %v5133_v0  ;;  %1676 = vmatpush1.bf16.msra.mxu1 %v5136_v25 }
 0x7a6   :  { %1636 = vmatprep.subr.bf16.mxu0 %v5139_v26  ;;  %1677 = vmatprep.subr.bf16.mxu1 %v5142_v27 }
 0x7a9   :  { %1637 = vmatpush1.bf16.msra.mxu0 %v5145_v28  ;;  %1678 = vmatpush1.bf16.msra.mxu1 %v5148_v59 }
 0x7aa   :  { %1638 = vmatprep.subr.bf16.mxu0 %v5151_v3  ;;  %1679 = vmatprep.subr.bf16.mxu1 %v5154_v6 }
 0x7ad   :  { %1639 = vmatpush1.bf16.msra.mxu0 %v5157_v49  ;;  %1680 = vmatpush1.bf16.msra.mxu1 %v5160_v40 }
 0x7ae   :  { %1640 = vmatprep.subr.bf16.mxu0 %v5163_v51  ;;  %1681 = vmatprep.subr.bf16.mxu1 %v5166_v30 }
 0x7b1   :  { %1641 = vmatpush1.bf16.msra.mxu0 %v4684_v32  ;;  %1682 = vmatpush1.bf16.msra.mxu1 %v4686_v33 }
 0x7b2   :  { %1642 = vmatprep.subr.bf16.mxu0 %v4690_v34  ;;  %1683 = vmatprep.subr.bf16.mxu1 %v4692_v35 }
 0x7b5   :  { %1643 = vmatpush1.bf16.msra.mxu0 %v4696_v36  ;;  %1684 = vmatpush1.bf16.msra.mxu1 %v4698_v37 }
 0x7b6   :  { %1644 = vmatprep.subr.bf16.mxu0 %v4702_v38  ;;  %1685 = vmatprep.subr.bf16.mxu1 %v4704_v39 }
 0x7b9   :  { %1645 = vmatpush1.bf16.msra.mxu0 %v4710_v41  ;;  %1686 = vmatpush1.bf16.msra.mxu1 %v4712_v42  ;;  %v5921_v41 = vld [vmem:[#allocation29_spill] sm:$0xff] }
 0x7ba   :  { %1646 = vmatprep.subr.bf16.mxu0 %v4716_v43  ;;  %1687 = vmatprep.subr.bf16.mxu1 %v4718_v45 }
 0x7bd   :  { %1647 = vmatpush1.bf16.msra.mxu0 %v4722_v14  ;;  %1688 = vmatpush1.bf16.msra.mxu1 %v4724_v47  ;;  %v5922_v14 = vld [vmem:[#allocation30_spill] sm:$0xff] }
 0x7be   :  { %1755 = vmatprep.subr.bf16.mxu0 %v5096_v7  ;;  %1796 = vmatprep.subr.bf16.mxu1 %v5099_v8  ;;  %v5923_v7 = vld [vmem:[#allocation31_spill] sm:$0xff] }
 0x873   :  { %v1541_v32 = vpop.f32.mrb[24].mxu0  ;;  %v1582_v33 = vpop.f32.mrb[32].mxu1 }
 0x874   :  { %v1593_v34 = vrot.slane %v1541_v32, 3  ;;  %v1543_v35 = vpop.f32.mrb[25].mxu0  ;;  %v1584_v36 = vpop.f32.mrb[33].mxu1  ;;  %v1595_v53 = vrot.slane %v1582_v33, 3 }
 0x875   :  { %v1594_v37 = vrot.slane %v1543_v35, 3  ;;  %v1545_v38 = vpop.f32.mrb[26].mxu0  ;;  %v1586_v39 = vpop.f32.mrb[34].mxu1  ;;  %v1596_v43 = vrot.slane %v1584_v36, 3 }
 0x876   :  { %v1601_v42 = vadd.f32 %v1593_v34, %v5921_v41  ;;  %v1546_v45 = vpop.f32.mrb[27].mxu0  ;;  %v1587_v9 = vpop.f32.mrb[35].mxu1  ;;  %v1603_v63 = vadd.f32 %v1595_v53, %v5924_v57  ;;  %v5925_v53 = vld [vmem:[#allocation33_spill] sm:$0xff] }
 0x877   :  { %v1602_v5 = vadd.f32 %v1594_v37, %v5922_v14  ;;  %v1604_v8 = vadd.f32 %v1596_v43, %v5923_v7 }
 0x878   :  { %v1605_v47 = vmul.f32 0.5, %v1601_v42  ;;  %v1607_v54 = vmul.f32 0.5, %v1603_v63 }
 0x879   :  { %v1606_v10 = vmul.f32 0.5, %v1602_v5 }
 0x87a   :  { %4081 = vtanh.f32 %v1605_v47 }
 0x87b   :  { %4083 = vtanh.f32 %v1606_v10 }
 0x87c   :  { %4085 = vtanh.f32 %v1604_v8 }
 0x87d   :  { %4087 = vtanh.f32 %v1607_v54 }
 0x884   :  { %v4082_v60 = vpop.eup %4081 }
 0x885   :  { %v1611_v56 = vmul.f32 0.5, %v4082_v60  ;;  %v4084_v44 = vpop.eup %4083  ;;  %v5926_v60 = vld [vmem:[#allocation34_spill] sm:$0xff] }
 0x886   :  { %v1612_v15 = vmul.f32 0.5, %v4084_v44  ;;  %v4086_v16 = vpop.eup %4085 }
 0x887   :  { %v1614_v48 = vadd.f32 0.5, %v1611_v56  ;;  %v4088_v33 = vpop.eup %4087 }
 0x888   :  { %v1615_v17 = vadd.f32 0.5, %v1612_v15  ;;  %v1613_v35 = vmul.f32 0.5, %v4088_v33 }
 0x889   :  { %v1622_v46 = vmul.f32 %v4086_v16, %v1614_v48 }
 0x88a   :  { %v1621_v32 = vmul.f32 %v1619_v19, %v1615_v17  ;;  %v1616_v36 = vadd.f32 0.5, %v1613_v35 }
 0x88c   :  { %v5190_v34 = vadd.f32 %v1622_v46, %v1621_v32 }
 0x88e   :  { %4089 = vtanh.f32 %v5190_v34  ;;  %v1744_v35 = vrot.slane %v5190_v34, 7 }
 0x898   :  { %v4090_v37 = vpop.eup %4089 }
 0x899   :  { %v5193_v38 = vmul.f32 %v4090_v37, %v1616_v36 }
 0x89b   :  { %v1626_v39 = vpack.c.bf16 %v5193_v38, %v5193_v38  ;;  %v5200_v11 = vsel %vm1881_vm11, %v5117_v20, %v5193_v38  ;;  %v4209_v20 = vld [vmem:[#allocation10 + $0x80] ss:$16 sps:$4 sm:$0xff]  }
 0x89d   :  { %v1628_v41 = vshrl.u32 %v1626_v39, 16 }
 0x89f   :  { %v1630_v42 = vrot.slane %v1628_v41, 2 }
 0x8a1   :  { %1665 = vmatmul.mubr.bf16.vlgmr.msra.gmra.mrb[28].mxu0 %v1630_v42  ;;  %1706 = vmatmul.mubr.bf16.vlgmr.msra.gmra.mrb[36].mxu1 %v1630_v42 }
 0x8a2   :  { %1756 = vmatpush1.bf16.msra.mxu0 %v5119_v21  ;;  %1797 = vmatpush1.bf16.msra.mxu1 %v5122_v22  ;;  %v4210_v21 = vld [vmem:[#allocation10 + $0x88] ss:$16 sps:$4 sm:$0xff]   ;;  %v4211_v22 = vld [vmem:[#allocation10 + $0xa4] ss:$16 sps:$4 sm:$0xff]  }
 0x8a3   :  { %1757 = vmatprep.subr.bf16.mxu0 %v5125_v23  ;;  %1798 = vmatprep.subr.bf16.mxu1 %v5128_v24  ;;  %v4212_v23 = vld [vmem:[#allocation10 + $0xac] ss:$16 sps:$4 sm:$0xff]   ;;  %v4213_v24 = vld [vmem:[#allocation10 + $0xa0] ss:$16 sps:$4 sm:$0xff]  }
 0x8a4   :  { %1787 = vmatprep.mubr.bf16.mxu0 %v5912_v12  ;;  %1828 = vmatprep.mubr.bf16.mxu1 %v5912_v12 }
 0x8a6   :  { %1758 = vmatpush1.bf16.msra.mxu0 %v5133_v0  ;;  %1799 = vmatpush1.bf16.msra.mxu1 %v5136_v25  ;;  %v4214_v0 = vld [vmem:[#allocation10 + $0xa8] ss:$16 sps:$4 sm:$0xff]   ;;  %v4215_v25 = vld [vmem:[#allocation10 + $0xc4] ss:$16 sps:$4 sm:$0xff]  }
 0x8a7   :  { %1759 = vmatprep.subr.bf16.mxu0 %v5139_v26  ;;  %1800 = vmatprep.subr.bf16.mxu1 %v5142_v27  ;;  %v4216_v26 = vld [vmem:[#allocation10 + $0xcc] ss:$16 sps:$4 sm:$0xff]   ;;  %v4217_v27 = vld [vmem:[#allocation10 + $0xc0] ss:$16 sps:$4 sm:$0xff]  }
 0x8aa   :  { %1760 = vmatpush1.bf16.msra.mxu0 %v5145_v28  ;;  %1801 = vmatpush1.bf16.msra.mxu1 %v5148_v59  ;;  %v4218_v28 = vld [vmem:[#allocation10 + $0xc8] ss:$16 sps:$4 sm:$0xff]   ;;  %v4219_v59 = vld [vmem:[#allocation10 + $0xe4] ss:$16 sps:$4 sm:$0xff]  }
 0x8ab   :  { %1761 = vmatprep.subr.bf16.mxu0 %v5151_v3  ;;  %1802 = vmatprep.subr.bf16.mxu1 %v5154_v6  ;;  %v4220_v3 = vld [vmem:[#allocation10 + $0xec] ss:$16 sps:$4 sm:$0xff]   ;;  %v4221_v6 = vld [vmem:[#allocation10 + $0xe0] ss:$16 sps:$4 sm:$0xff]  }
 0x8ae   :  { %1762 = vmatpush1.bf16.msra.mxu0 %v5157_v49  ;;  %1803 = vmatpush1.bf16.msra.mxu1 %v5160_v40  ;;  %v4222_v49 = vld [vmem:[#allocation10 + $0xe8] ss:$16 sps:$4 sm:$0xff]  }
 0x8af   :  { %1763 = vmatprep.subr.bf16.mxu0 %v5163_v51  ;;  %1804 = vmatprep.subr.bf16.mxu1 %v5166_v30 }
 0x8b2   :  { %1764 = vmatpush1.bf16.msra.mxu0 %v4209_v20  ;;  %1805 = vmatpush1.bf16.msra.mxu1 %v4210_v21 }
 0x8b3   :  { %1765 = vmatprep.subr.bf16.mxu0 %v4211_v22  ;;  %1806 = vmatprep.subr.bf16.mxu1 %v4212_v23 }
 0x8b6   :  { %1766 = vmatpush1.bf16.msra.mxu0 %v4213_v24  ;;  %1807 = vmatpush1.bf16.msra.mxu1 %v4214_v0  ;;  %v3925_v24 = vld [vmem:[#allocation8 + $0x104] ss:$16 sps:$4 sm:$0xff]   ;;  %v3928_v0 = vld [vmem:[#allocation8 + $0x10c] ss:$16 sps:$4 sm:$0xff]  }
 0x8b7   :  { %1767 = vmatprep.subr.bf16.mxu0 %v4215_v25  ;;  %1808 = vmatprep.subr.bf16.mxu1 %v4216_v26  ;;  %v3923_v25 = vld [vmem:[#allocation8 + $0x100] ss:$16 sps:$4 sm:$0xff]   ;;  %v3926_v26 = vld [vmem:[#allocation8 + $0x108] ss:$16 sps:$4 sm:$0xff]  }
 0x8ba   :  { %1768 = vmatpush1.bf16.msra.mxu0 %v4217_v27  ;;  %1809 = vmatpush1.bf16.msra.mxu1 %v4218_v28  ;;  %v3931_v27 = vld [vmem:[#allocation8 + $0x124] ss:$16 sps:$4 sm:$0xff]   ;;  %v3934_v28 = vld [vmem:[#allocation8 + $0x12c] ss:$16 sps:$4 sm:$0xff]  }
 0x8bb   :  { %1769 = vmatprep.subr.bf16.mxu0 %v4219_v59  ;;  %1810 = vmatprep.subr.bf16.mxu1 %v4220_v3  ;;  %v3929_v59 = vld [vmem:[#allocation8 + $0x120] ss:$16 sps:$4 sm:$0xff]   ;;  %v3937_v3 = vld [vmem:[#allocation8 + $0x144] ss:$16 sps:$4 sm:$0xff]  }
 0x8be   :  { %1770 = vmatpush1.bf16.msra.mxu0 %v4221_v6  ;;  %1811 = vmatpush1.bf16.msra.mxu1 %v4222_v49  ;;  %v3940_v6 = vld [vmem:[#allocation8 + $0x14c] ss:$16 sps:$4 sm:$0xff]   ;;  %v3935_v49 = vld [vmem:[#allocation8 + $0x140] ss:$16 sps:$4 sm:$0xff]  }
 0x8bf   :  { %2169 = vmatprep.subr.bf16.mxu0 %v3925_v24  ;;  %2210 = vmatprep.subr.bf16.mxu1 %v3928_v0 }
 0x974   :  { %v1666_v40 = vpop.f32.mrb[28].mxu0  ;;  %v1707_v51 = vpop.f32.mrb[36].mxu1 }
 0x975   :  { %v1718_v30 = vrot.slane %v1666_v40, 2  ;;  %v1668_v43 = vpop.f32.mrb[29].mxu0  ;;  %v1709_v45 = vpop.f32.mrb[37].mxu1  ;;  %v1720_v44 = vrot.slane %v1707_v51, 2  ;;  %v3938_v40 = vld [vmem:[#allocation8 + $0x148] ss:$16 sps:$4 sm:$0xff]  }
 0x976   :  { %v1719_v9 = vrot.slane %v1668_v43, 2  ;;  %v1670_v14 = vpop.f32.mrb[30].mxu0  ;;  %v1711_v5 = vpop.f32.mrb[38].mxu1  ;;  %v1721_v10 = vrot.slane %v1709_v45, 2  ;;  %v3943_v51 = vld [vmem:[#allocation8 + $0x164] ss:$16 sps:$4 sm:$0xff]  }
 0x977   :  { %v1726_v47 = vadd.f32 %v1718_v30, %v4951_v1  ;;  %v1671_v7 = vpop.f32.mrb[31].mxu0  ;;  %v1712_v8 = vpop.f32.mrb[39].mxu1  ;;  %v1728_v48 = vadd.f32 %v1720_v44, %v4971_v58  ;;  %v3941_v30 = vld [vmem:[#allocation8 + $0x160] ss:$16 sps:$4 sm:$0xff]   ;;  %v3944_v43 = vld [vmem:[#allocation8 + $0x168] ss:$16 sps:$4 sm:$0xff]  }
 0x978   :  { %v1727_v57 = vadd.f32 %v1719_v9, %v5925_v53  ;;  %v1729_v56 = vadd.f32 %v1721_v10, %v5926_v60  ;;  %v3946_v45 = vld [vmem:[#allocation8 + $0x16c] ss:$16 sps:$4 sm:$0xff]   ;;  %v3949_v9 = vld [vmem:[#allocation8 + $0x184] ss:$16 sps:$4 sm:$0xff]   ;;  %v3947_v5 = vld [vmem:[#allocation8 + $0x180] ss:$16 sps:$4 sm:$0xff]  }
 0x979   :  { %v1730_v63 = vmul.f32 0.5, %v1726_v47  ;;  %v1732_v15 = vmul.f32 0.5, %v1728_v48  ;;  %v3952_v14 = vld [vmem:[#allocation8 + $0x18c] ss:$16 sps:$4 sm:$0xff]   ;;  %v3950_v47 = vld [vmem:[#allocation8 + $0x188] ss:$16 sps:$4 sm:$0xff]  }
 0x97a   :  { %v1731_v54 = vmul.f32 0.5, %v1727_v57  ;;  %v3955_v10 = vld [vmem:[#allocation8 + $0x1a4] ss:$16 sps:$4 sm:$0xff]   ;;  %v3958_v7 = vld [vmem:[#allocation8 + $0x1ac] ss:$16 sps:$4 sm:$0xff]  }
 0x97b   :  { %4091 = vtanh.f32 %v1730_v63  ;;  %v3953_v8 = vld [vmem:[#allocation8 + $0x1a0] ss:$16 sps:$4 sm:$0xff]   ;;  %v3956_v53 = vld [vmem:[#allocation8 + $0x1a8] ss:$16 sps:$4 sm:$0xff]   ;;  %v3961_v57 = vld [vmem:[#allocation8 + $0x1c4] ss:$16 sps:$4 sm:$0xff]  }
 0x97c   :  { %4093 = vtanh.f32 %v1731_v54  ;;  %v3964_v63 = vld [vmem:[#allocation8 + $0x1cc] ss:$16 sps:$4 sm:$0xff]   ;;  %v3959_v54 = vld [vmem:[#allocation8 + $0x1c0] ss:$16 sps:$4 sm:$0xff]   ;;  %v3962_v60 = vld [vmem:[#allocation8 + $0x1c8] ss:$16 sps:$4 sm:$0xff]  }
 0x97d   :  { %4095 = vtanh.f32 %v1729_v56  ;;  %v3967_v56 = vld [vmem:[#allocation8 + $0x1e4] ss:$16 sps:$4 sm:$0xff]   ;;  %v3970_v44 = vld [vmem:[#allocation8 + $0x1ec] ss:$16 sps:$4 sm:$0xff]   ;;  %v3965_v48 = vld [vmem:[#allocation8 + $0x1e0] ss:$16 sps:$4 sm:$0xff]  }
 0x97e   :  { %4097 = vtanh.f32 %v1732_v15  ;;  %v3968_v15 = vld [vmem:[#allocation8 + $0x1e8] ss:$16 sps:$4 sm:$0xff]  }
 0x985   :  { %v4092_v16 = vpop.eup %4091 }
 0x986   :  { %v1736_v17 = vmul.f32 0.5, %v4092_v16  ;;  %v4094_v19 = vpop.eup %4093  ;;  %v5239_v16 = vld [vmem:[#allocation10 + $0x104] ss:$16 sps:$4 sm:$0xff]  }
 0x987   :  { %v1737_v46 = vmul.f32 0.5, %v4094_v19  ;;  %v4096_v32 = vpop.eup %4095 }
 0x988   :  { %v1739_v1 = vadd.f32 0.5, %v1736_v17  ;;  %v4098_v41 = vpop.eup %4097  ;;  %v5241_v17 = vld [vmem:[#allocation10 + $0x10c] ss:$16 sps:$4 sm:$0xff]  }
 0x989   :  { %v1740_v33 = vadd.f32 0.5, %v1737_v46  ;;  %v1738_v42 = vmul.f32 0.5, %v4098_v41 }
 0x98a   :  { %v1747_v36 = vmul.f32 %v4096_v32, %v1739_v1 }
 0x98b   :  { %v1746_v37 = vmul.f32 %v1744_v35, %v1740_v33  ;;  %v1741_v58 = vadd.f32 0.5, %v1738_v42 }
 0x98d   :  { %v5225_v39 = vadd.f32 %v1747_v36, %v1746_v37 }
 0x98f   :  { %4099 = vtanh.f32 %v5225_v39 }
 0x999   :  { %v4100_v20 = vpop.eup %4099 }
 0x99a   :  { %v5228_v21 = vmul.f32 %v4100_v20, %v1741_v58 }
 0x99c   :  { %v1751_v22 = vpack.c.bf16 %v5228_v21, %v5228_v21  ;;  %v5235_v34 = vsel %vm1883_vm12, %v5200_v11, %v5228_v21  ;;  %v3932_v11 = vld [vmem:[#allocation8 + $0x128] ss:$16 sps:$4 sm:$0xff]  }
 0x99e   :  { %v1753_v23 = vrot.slane %v1751_v22, 3 }
 0x9a0   :  { %1788 = vmatmul.mubr.bf16.vlgmr.msra.gmra.mrb[32].mxu0 %v1753_v23  ;;  %1829 = vmatmul.mubr.bf16.vlgmr.msra.gmra.mrb[40].mxu1 %v1753_v23 }
 0x9a1   :  { %2201 = vmatprep.mubr.bf16.mxu0 %v5912_v12  ;;  %2242 = vmatprep.mubr.bf16.mxu1 %v5912_v12 }
 0x9a2   :  { %2170 = vmatpush1.bf16.msra.mxu0 %v3923_v25  ;;  %2211 = vmatpush1.bf16.msra.mxu1 %v3926_v26 }
 0x9a3   :  { %2171 = vmatprep.subr.bf16.mxu0 %v3931_v27  ;;  %2212 = vmatprep.subr.bf16.mxu1 %v3934_v28 }
 0x9a6   :  { %2172 = vmatpush1.bf16.msra.mxu0 %v3929_v59  ;;  %2213 = vmatpush1.bf16.msra.mxu1 %v3932_v11 }
 0x9a7   :  { %2173 = vmatprep.subr.bf16.mxu0 %v3937_v3  ;;  %2214 = vmatprep.subr.bf16.mxu1 %v3940_v6 }
 0x9aa   :  { %2174 = vmatpush1.bf16.msra.mxu0 %v3935_v49  ;;  %2215 = vmatpush1.bf16.msra.mxu1 %v3938_v40 }
 0x9ab   :  { %2175 = vmatprep.subr.bf16.mxu0 %v3943_v51  ;;  %2216 = vmatprep.subr.bf16.mxu1 %v3946_v45 }
 0x9ae   :  { %2176 = vmatpush1.bf16.msra.mxu0 %v3941_v30  ;;  %2217 = vmatpush1.bf16.msra.mxu1 %v3944_v43 }
 0x9af   :  { %2177 = vmatprep.subr.bf16.mxu0 %v3949_v9  ;;  %2218 = vmatprep.subr.bf16.mxu1 %v3952_v14  ;;  %v1891_v14 = vrot.slane %v5228_v21, 5  ;;  %v1906_v21 = vrot.slane %v4908_v13, 3 }
 0x9b2   :  { %2178 = vmatpush1.bf16.msra.mxu0 %v3947_v5  ;;  %2219 = vmatpush1.bf16.msra.mxu1 %v3950_v47 }
 0x9b3   :  { %2179 = vmatprep.subr.bf16.mxu0 %v3955_v10  ;;  %2220 = vmatprep.subr.bf16.mxu1 %v3958_v7  ;;  %v1894_v10 = vrot.slane %v5193_v38, 3 }
 0x9b6   :  { %2180 = vmatpush1.bf16.msra.mxu0 %v3953_v8  ;;  %2221 = vmatpush1.bf16.msra.mxu1 %v3956_v53  ;;  %v1900_v8 = vrot.slane %v5055_v29, 7 }
 0x9b7   :  { %2181 = vmatprep.subr.bf16.mxu0 %v3961_v57  ;;  %2222 = vmatprep.subr.bf16.mxu1 %v3964_v63  ;;  %v1903_v57 = vrot.slane %v4978_v61, 5  ;;  %v5269_v61 = vld [vmem:[#allocation10 + $0x100] ss:$16 sps:$4 sm:$0xff]  }
 0x9ba   :  { %2182 = vmatpush1.bf16.msra.mxu0 %v3959_v54  ;;  %2223 = vmatpush1.bf16.msra.mxu1 %v3962_v60  ;;  %v5928_v60 = vld [vmem:[#allocation28_spill] sm:$0xff] }
 0x9bb   :  { %2183 = vmatprep.subr.bf16.mxu0 %v3967_v56  ;;  %2224 = vmatprep.subr.bf16.mxu1 %v3970_v44  ;;  %v1909_v38 = vrot.slane %v5928_v60, 1 }
 0x9be   :  { %2184 = vmatpush1.bf16.msra.mxu0 %v3965_v48  ;;  %2225 = vmatpush1.bf16.msra.mxu1 %v3968_v15  ;;  %v5271_v48 = vld [vmem:[#allocation10 + $0x108] ss:$16 sps:$4 sm:$0xff]   ;;  %v5273_v15 = vld [vmem:[#allocation10 + $0x124] ss:$16 sps:$4 sm:$0xff]  }
 0x9bf   :  { %2428 = vmatprep.subr.bf16.mxu0 %v5239_v16  ;;  %2469 = vmatprep.subr.bf16.mxu1 %v5241_v17 }
 0xa73   :  { %v1789_v19 = vpop.f32.mrb[32].mxu0  ;;  %v1830_v1 = vpop.f32.mrb[40].mxu1 }
 0xa74   :  { %v1841_v46 = vrot.slane %v1789_v19, 1  ;;  %v1791_v32 = vpop.f32.mrb[33].mxu0  ;;  %v1832_v33 = vpop.f32.mrb[41].mxu1  ;;  %v1843_v25 = vrot.slane %v1830_v1, 1  ;;  %v5275_v19 = vld [vmem:[#allocation10 + $0x12c] ss:$16 sps:$4 sm:$0xff]  }
 0xa75   :  { %v1842_v35 = vrot.slane %v1791_v32, 1  ;;  %v1793_v36 = vpop.f32.mrb[34].mxu0  ;;  %v1834_v37 = vpop.f32.mrb[42].mxu1  ;;  %v1844_v42 = vrot.slane %v1832_v33, 1  ;;  %v5279_v1 = vld [vmem:[#allocation10 + $0x120] ss:$16 sps:$4 sm:$0xff]  }
 0xa76   :  { %v1849_v41 = vadd.f32 %v1841_v46, %v5028_v55  ;;  %v1794_v58 = vpop.f32.mrb[35].mxu0  ;;  %v1835_v20 = vpop.f32.mrb[43].mxu1  ;;  %v1851_v26 = vadd.f32 %v1843_v25, %v5048_v2  ;;  %v5281_v46 = vld [vmem:[#allocation10 + $0x128] ss:$16 sps:$4 sm:$0xff]   ;;  %v5285_v32 = vld [vmem:[#allocation10 + $0x144] ss:$16 sps:$4 sm:$0xff]  }
 0xa77   :  { %v1850_v22 = vadd.f32 %v1842_v35, %v5035_v4  ;;  %v1852_v0 = vadd.f32 %v1844_v42, %v5041_v31  ;;  %v1867_v4 = vrot.slane %v5225_v39, 7  ;;  %v1897_v39 = vrot.slane %v5110_v18, 1  ;;  %v5287_v33 = vld [vmem:[#allocation10 + $0x14c] ss:$16 sps:$4 sm:$0xff]   ;;  %v5293_v35 = vld [vmem:[#allocation10 + $0x140] ss:$16 sps:$4 sm:$0xff]  }
 0xa78   :  { %v1853_v23 = vmul.f32 0.5, %v1849_v41  ;;  %v1855_v27 = vmul.f32 0.5, %v1851_v26  ;;  %v5295_v36 = vld [vmem:[#allocation10 + $0x148] ss:$16 sps:$4 sm:$0xff]   ;;  %v5299_v37 = vld [vmem:[#allocation10 + $0x164] ss:$16 sps:$4 sm:$0xff]  }
 0xa79   :  { %v1854_v24 = vmul.f32 0.5, %v1850_v22  ;;  %v5301_v41 = vld [vmem:[#allocation10 + $0x16c] ss:$16 sps:$4 sm:$0xff]   ;;  %v5305_v42 = vld [vmem:[#allocation10 + $0x160] ss:$16 sps:$4 sm:$0xff]  }
 0xa7a   :  { %4101 = vtanh.f32 %v1853_v23  ;;  %v5307_v58 = vld [vmem:[#allocation10 + $0x168] ss:$16 sps:$4 sm:$0xff]   ;;  %v5311_v20 = vld [vmem:[#allocation10 + $0x184] ss:$16 sps:$4 sm:$0xff]   ;;  %v5313_v22 = vld [vmem:[#allocation10 + $0x18c] ss:$16 sps:$4 sm:$0xff]  }
 0xa7b   :  { %4103 = vtanh.f32 %v1854_v24  ;;  %v5317_v23 = vld [vmem:[#allocation10 + $0x180] ss:$16 sps:$4 sm:$0xff]   ;;  %v5319_v24 = vld [vmem:[#allocation10 + $0x188] ss:$16 sps:$4 sm:$0xff]   ;;  %v5325_v25 = vld [vmem:[#allocation10 + $0x1ac] ss:$16 sps:$4 sm:$0xff]  }
 0xa7c   :  { %4105 = vtanh.f32 %v1852_v0  ;;  %v5323_v0 = vld [vmem:[#allocation10 + $0x1a4] ss:$16 sps:$4 sm:$0xff]   ;;  %v5329_v26 = vld [vmem:[#allocation10 + $0x1a0] ss:$16 sps:$4 sm:$0xff]  }
 0xa7d   :  { %4107 = vtanh.f32 %v1855_v27  ;;  %v5331_v27 = vld [vmem:[#allocation10 + $0x1a8] ss:$16 sps:$4 sm:$0xff]  }
 0xa84   :  { %v4102_v28 = vpop.eup %4101 }
 0xa85   :  { %v1859_v59 = vmul.f32 0.5, %v4102_v28  ;;  %v4104_v11 = vpop.eup %4103  ;;  %v5335_v28 = vld [vmem:[#allocation10 + $0x1c4] ss:$16 sps:$4 sm:$0xff]  }
 0xa86   :  { %v1860_v3 = vmul.f32 0.5, %v4104_v11  ;;  %v4106_v6 = vpop.eup %4105  ;;  %v5341_v11 = vld [vmem:[#allocation10 + $0x1c0] ss:$16 sps:$4 sm:$0xff]  }
 0xa87   :  { %v1862_v55 = vadd.f32 0.5, %v1859_v59  ;;  %v4108_v31 = vpop.eup %4107  ;;  %v5337_v59 = vld [vmem:[#allocation10 + $0x1cc] ss:$16 sps:$4 sm:$0xff]  }
 0xa88   :  { %v1863_v49 = vadd.f32 0.5, %v1860_v3  ;;  %v1861_v43 = vmul.f32 0.5, %v4108_v31  ;;  %v5347_v3 = vld [vmem:[#allocation10 + $0x1e4] ss:$16 sps:$4 sm:$0xff]  }
 0xa89   :  { %v1870_v40 = vmul.f32 %v4106_v6, %v1862_v55  ;;  %v5343_v55 = vld [vmem:[#allocation10 + $0x1c8] ss:$16 sps:$4 sm:$0xff]   ;;  %v5349_v6 = vld [vmem:[#allocation10 + $0x1ec] ss:$16 sps:$4 sm:$0xff]  }
 0xa8a   :  { %v1869_v51 = vmul.f32 %v1867_v4, %v1863_v49  ;;  %v1864_v45 = vadd.f32 0.5, %v1861_v43  ;;  %v5353_v49 = vld [vmem:[#allocation10 + $0x1e0] ss:$16 sps:$4 sm:$0xff]   ;;  %v5355_v4 = vld [vmem:[#allocation10 + $0x1e8] ss:$16 sps:$4 sm:$0xff]  }
 0xa8c   :  { %v1871_v30 = vadd.f32 %v1870_v40, %v1869_v51  ;;  %v5362_v40 = vld [vmem:[%s5858_s7 + $0x8] sm:$0x7] }
 0xa8d   :  { %v2267_v51 = vpack.c.bf16 %v5362_v40, %v5362_v40 }
 0xa8e   :  { %4109 = vtanh.f32 %v1871_v30 }
 0xa98   :  { %v4110_v9 = vpop.eup %4109 }
 0xa99   :  { %v1873_v2 = vmul.f32 %v4110_v9, %v1864_v45 }
 0xa9b   :  { %v1886_v5 = vsel %vm1885_vm13, %v5235_v34, %v1873_v2  ;;  %v1888_v47 = vrot.slane %v1873_v2, 7  ;;  %v5927_v34 = vld [vmem:[#allocation24_spill] sm:$0xff] }
 0xa9c   :  { %vm356_vm14 = vcmp.lt.s32.totalorder %v5927_v34, 64 }
 0xa9d   :  { %v1911_v7 = vsel %vm1874_vm8, %v1888_v47, %v1891_v14  ;;  %v3673_v47 = vld [vmem:[%s5856_s5 + $0x4] sm:$0xf] }
 0xa9e   :  { %v1912_v53 = vsel %vm1876_vm9, %v1911_v7, %v1894_v10  ;;  %v5929_v10 = vld [vmem:[#allocation20_spill] sm:$0xff]  ;;  %v5930_v7 = vld [vmem:[#allocation21_spill] sm:$0xff] }
 0xa9f   :  { %v1913_v63 = vsel %vm1878_vm10, %v1912_v53, %v1897_v39  ;;  %v1992_v39 = vrot.slane %v3673_v47, %v5929_v10 }
 0xaa0   :  { %v1914_v54 = vsel %vm143_vm1, %v1913_v63, %v1900_v8  ;;  %v1996_v8 = vrot.slane %v3673_v47, %v5930_v7 }
 0xaa1   :  { %v1915_v18 = vsel %vm1881_vm11, %v1914_v54, %v1903_v57  ;;  %v5931_v57 = vld [vmem:[#allocation23_spill] sm:$0xff] }
 0xaa2   :  { %v1916_v56 = vsel %vm1883_vm12, %v1915_v18, %v1906_v21  ;;  %v2004_v63 = vrot.slane %v3673_v47, %v5931_v57 }
 0xaa3   :  { %v1917_v29 = vsel %vm1885_vm13, %v1916_v56, %v1909_v38  ;;  %v5932_v38 = vld [vmem:[#allocation22_spill] sm:$0xff] }
 0xaa4   :  { %v1918_v44 = vsel %vm356_vm14, %v1886_v5, %v1917_v29  ;;  %v2000_v18 = vrot.slane %v3673_v47, %v5932_v38 }
 0xaa5   :  { %v1952_v13 = vpack.c.bf16 %v1918_v44, %v1918_v44 }
 0xaa7   :  { %2202 = vmatmul.mubr.bf16.vlgmr.msra.gmra.mrb[36].mxu0 %v1952_v13  ;;  %2243 = vmatmul.mubr.bf16.vlgmr.msra.gmra.mrb[44].mxu1 %v1952_v13 }
 0xaa8   :  { %2429 = vmatpush1.bf16.msra.mxu0 %v5269_v61  ;;  %2470 = vmatpush1.bf16.msra.mxu1 %v5271_v48 }
 0xaa9   :  { %2430 = vmatprep.subr.bf16.mxu0 %v5273_v15  ;;  %2471 = vmatprep.subr.bf16.mxu1 %v5275_v19 }
 0xaaa   :  { %2460 = vmatprep.mubr.bf16.mxu0 %v5912_v12  ;;  %2501 = vmatprep.mubr.bf16.mxu1 %v5912_v12 }
 0xaac   :  { %2431 = vmatpush1.bf16.msra.mxu0 %v5279_v1  ;;  %2472 = vmatpush1.bf16.msra.mxu1 %v5281_v46 }
 0xaad   :  { %2432 = vmatprep.subr.bf16.mxu0 %v5285_v32  ;;  %2473 = vmatprep.subr.bf16.mxu1 %v5287_v33 }
 0xab0   :  { %2433 = vmatpush1.bf16.msra.mxu0 %v5293_v35  ;;  %2474 = vmatpush1.bf16.msra.mxu1 %v5295_v36 }
 0xab1   :  { %2434 = vmatprep.subr.bf16.mxu0 %v5299_v37  ;;  %2475 = vmatprep.subr.bf16.mxu1 %v5301_v41 }
 0xab4   :  { %2435 = vmatpush1.bf16.msra.mxu0 %v5305_v42  ;;  %2476 = vmatpush1.bf16.msra.mxu1 %v5307_v58 }
 0xab5   :  { %2436 = vmatprep.subr.bf16.mxu0 %v5311_v20  ;;  %2477 = vmatprep.subr.bf16.mxu1 %v5313_v22 }
 0xab8   :  { %2437 = vmatpush1.bf16.msra.mxu0 %v5317_v23  ;;  %2478 = vmatpush1.bf16.msra.mxu1 %v5319_v24 }
 0xab9   :  { %2438 = vmatprep.subr.bf16.mxu0 %v5323_v0  ;;  %2479 = vmatprep.subr.bf16.mxu1 %v5325_v25 }
 0xabc   :  { %2439 = vmatpush1.bf16.msra.mxu0 %v5329_v26  ;;  %2480 = vmatpush1.bf16.msra.mxu1 %v5331_v27 }
 0xabd   :  { %2440 = vmatprep.subr.bf16.mxu0 %v5335_v28  ;;  %2481 = vmatprep.subr.bf16.mxu1 %v5337_v59 }
 0xac0   :  { %2441 = vmatpush1.bf16.msra.mxu0 %v5341_v11  ;;  %2482 = vmatpush1.bf16.msra.mxu1 %v5343_v55 }
 0xac1   :  { %2442 = vmatprep.subr.bf16.mxu0 %v5347_v3  ;;  %2483 = vmatprep.subr.bf16.mxu1 %v5349_v6 }
 0xac4   :  { %2443 = vmatpush1.bf16.msra.mxu0 %v5353_v49  ;;  %2484 = vmatpush1.bf16.msra.mxu1 %v5355_v4 }
 0xac5   :  { %2547 = vmatprep.subr.bf16.mxu0 %v5239_v16  ;;  %2588 = vmatprep.subr.bf16.mxu1 %v5241_v17 }
 0xac7   :  { %2461 = vmatmul.mubr.bf16.vlgmr.msra.gmra.mrb[40].mxu0 %v2267_v51  ;;  %2502 = vmatmul.mubr.bf16.vlgmr.msra.gmra.mrb[48].mxu1 %v2267_v51 }
 0xac8   :  { %2548 = vmatpush1.bf16.msra.mxu0 %v5269_v61  ;;  %2589 = vmatpush1.bf16.msra.mxu1 %v5271_v48 }
 0xac9   :  { %2549 = vmatprep.subr.bf16.mxu0 %v5273_v15  ;;  %2590 = vmatprep.subr.bf16.mxu1 %v5275_v19 }
 0xaca   :  { %2579 = vmatprep.mubr.bf16.mxu0 %v5912_v12  ;;  %2620 = vmatprep.mubr.bf16.mxu1 %v5912_v12 }
 0xacc   :  { %2550 = vmatpush1.bf16.msra.mxu0 %v5279_v1  ;;  %2591 = vmatpush1.bf16.msra.mxu1 %v5281_v46 }
 0xacd   :  { %2551 = vmatprep.subr.bf16.mxu0 %v5285_v32  ;;  %2592 = vmatprep.subr.bf16.mxu1 %v5287_v33 }
 0xad0   :  { %2552 = vmatpush1.bf16.msra.mxu0 %v5293_v35  ;;  %2593 = vmatpush1.bf16.msra.mxu1 %v5295_v36 }
 0xad1   :  { %2553 = vmatprep.subr.bf16.mxu0 %v5299_v37  ;;  %2594 = vmatprep.subr.bf16.mxu1 %v5301_v41 }
 0xad4   :  { %2554 = vmatpush1.bf16.msra.mxu0 %v5305_v42  ;;  %2595 = vmatpush1.bf16.msra.mxu1 %v5307_v58 }
 0xad5   :  { %2555 = vmatprep.subr.bf16.mxu0 %v5311_v20  ;;  %2596 = vmatprep.subr.bf16.mxu1 %v5313_v22 }
 0xad8   :  { %2556 = vmatpush1.bf16.msra.mxu0 %v5317_v23  ;;  %2597 = vmatpush1.bf16.msra.mxu1 %v5319_v24 }
 0xad9   :  { %2557 = vmatprep.subr.bf16.mxu0 %v5323_v0  ;;  %2598 = vmatprep.subr.bf16.mxu1 %v5325_v25 }
 0xadc   :  { %2558 = vmatpush1.bf16.msra.mxu0 %v5329_v26  ;;  %2599 = vmatpush1.bf16.msra.mxu1 %v5331_v27 }
 0xadd   :  { %2559 = vmatprep.subr.bf16.mxu0 %v5335_v28  ;;  %2600 = vmatprep.subr.bf16.mxu1 %v5337_v59 }
 0xae0   :  { %2560 = vmatpush1.bf16.msra.mxu0 %v5341_v11  ;;  %2601 = vmatpush1.bf16.msra.mxu1 %v5343_v55 }
 0xae1   :  { %2561 = vmatprep.subr.bf16.mxu0 %v5347_v3  ;;  %2602 = vmatprep.subr.bf16.mxu1 %v5349_v6 }
 0xae4   :  { %2562 = vmatpush1.bf16.msra.mxu0 %v5353_v49  ;;  %2603 = vmatpush1.bf16.msra.mxu1 %v5355_v4 }
 0xae5   :  { %2683 = vmatprep.subr.bf16.mxu0 %v5239_v16  ;;  %2724 = vmatprep.subr.bf16.mxu1 %v5241_v17 }
 0xb7a   :  { %v2203_v30 = vpop.f32.mrb[36].mxu0  ;;  %v2244_v31 = vpop.f32.mrb[44].mxu1 }
 0xb7b   :  { %v2205_v43 = vpop.f32.mrb[37].mxu0  ;;  %v2246_v45 = vpop.f32.mrb[45].mxu1  ;;  %v5409_v53 = vadd.f32 %v2203_v30, %v1992_v39 }
 0xb7c   :  { %v2207_v9 = vpop.f32.mrb[38].mxu0  ;;  %v2248_v2 = vpop.f32.mrb[46].mxu1  ;;  %v5412_v21 = vadd.f32 %v2205_v43, %v1996_v8  ;;  %v5414_v54 = vadd.f32 %v2246_v45, %v2004_v63 }
 0xb7d   :  { %v2208_v14 = vpop.f32.mrb[39].mxu0  ;;  %v2249_v5 = vpop.f32.mrb[47].mxu1  ;;  %v2255_v60 = vrot.slane %v5409_v53, 7  ;;  %v5425_v9 = vadd.f32 %v2244_v31, %v2000_v18 }
 0xb7e   :  { %v2256_v56 = vrot.slane %v5412_v21, 7  ;;  %v2258_v30 = vrot.slane %v5414_v54, 7 }
 0xb7f   :  { %v5422_v44 = vsel %vm4786_vm4, %v5409_v53, %v2255_v60  ;;  %v2257_v63 = vrot.slane %v5425_v9, 7 }
 0xb80   :  { %v5431_v45 = vsel %vm4792_vm5, %v5412_v21, %v2256_v56  ;;  %v5437_v31 = vsel %vm4810_vm6, %v5414_v54, %v2258_v30 }
 0xb81   :  { %5934 = vst [vmem:[#allocation26_spill] sm:$0xff] %v5437_v31  ;;  %v5444_v38 = vsel %vm4822_vm7, %v5425_v9, %v2257_v63 }
 0xb82   :  { %5935 = vst [vmem:[#allocation27_spill] sm:$0xff] %v5444_v38 }
 0xb9a   :  { %v2462_v13 = vpop.f32.mrb[40].mxu0  ;;  %v2503_v51 = vpop.f32.mrb[48].mxu1 }
 0xb9b   :  { %v2510_v43 = vadd.f32 %v2462_v13, %v5422_v44  ;;  %v2464_v2 = vpop.f32.mrb[41].mxu0  ;;  %v2505_v14 = vpop.f32.mrb[49].mxu1  ;;  %v2512_v18 = vadd.f32 %v2503_v51, %v5444_v38 }
 0xb9c   :  { %v2511_v5 = vadd.f32 %v2464_v2, %v5431_v45  ;;  %v2466_v47 = vpop.f32.mrb[42].mxu0  ;;  %v2507_v10 = vpop.f32.mrb[50].mxu1  ;;  %v2513_v60 = vadd.f32 %v2505_v14, %v5437_v31 }
 0xb9d   :  { %v2514_v39 = vmul.f32 0.5, %v2510_v43  ;;  %v2467_v7 = vpop.f32.mrb[43].mxu0  ;;  %v2508_v8 = vpop.f32.mrb[51].mxu1  ;;  %v2516_v56 = vmul.f32 0.5, %v2512_v18  ;;  %v2527_v47 = vrot.slane %v5362_v40, 2  ;;  %v2534_v40 = vrot.slane %v5409_v53, 5 }
 0xb9e   :  { %v2515_v57 = vmul.f32 0.5, %v2511_v5 }
 0xb9f   :  { %4111 = vtanh.f32 %v2514_v39 }
 0xba0   :  { %4113 = vtanh.f32 %v2515_v57 }
 0xba1   :  { %4115 = vtanh.f32 %v2513_v60 }
 0xba2   :  { %4117 = vtanh.f32 %v2516_v56 }
 0xba9   :  { %v4112_v13 = vpop.eup %4111 }
 0xbaa   :  { %v2520_v43 = vmul.f32 0.5, %v4112_v13  ;;  %v4114_v2 = vpop.eup %4113  ;;  %v2535_v13 = vrot.slane %v5412_v21, 5 }
 0xbab   :  { %v2521_v5 = vmul.f32 0.5, %v4114_v2  ;;  %v4116_v10 = vpop.eup %4115 }
 0xbac   :  { %v2523_v30 = vadd.f32 0.5, %v2520_v43  ;;  %v4118_v57 = vpop.eup %4117 }
 0xbad   :  { %v2524_v14 = vadd.f32 0.5, %v2521_v5  ;;  %v2522_v63 = vmul.f32 0.5, %v4118_v57 }
 0xbae   :  { %v2530_v39 = vmul.f32 %v4116_v10, %v2523_v30  ;;  %v5494_v10 = vsel %vm4786_vm4, %v5409_v53, %v2534_v40 }
 0xbaf   :  { %v2529_v7 = vmul.f32 %v2527_v47, %v2524_v14  ;;  %v2525_v51 = vadd.f32 0.5, %v2522_v63  ;;  %5937 = vst [vmem:[#allocation30_spill] sm:$0xff] %v5494_v10 }
 0xbb1   :  { %v5448_v8 = vadd.f32 %v2530_v39, %v2529_v7  ;;  %v2537_v39 = vrot.slane %v5414_v54, 5 }
 0xbb3   :  { %4119 = vtanh.f32 %v5448_v8 }
 0xbbd   :  { %v4120_v60 = vpop.eup %4119 }
 0xbbe   :  { %v5451_v18 = vmul.f32 %v4120_v60, %v2525_v51  ;;  %v5501_v51 = vsel %vm4792_vm5, %v5412_v21, %v2535_v13 }
 0xbbf   :  { %5938 = vst [vmem:[#allocation31_spill] sm:$0xff] %v5501_v51 }
 0xbc0   :  { %5936 = vst [vmem:[#allocation29_spill] sm:$0xff] %v5451_v18  ;;  %v2546_v56 = vpack.c.bf16 %v5451_v18, %v5451_v18 }
 0xbc2   :  { %2580 = vmatmul.mubr.bf16.vlgmr.msra.gmra.mrb[44].mxu0 %v2546_v56  ;;  %2621 = vmatmul.mubr.bf16.vlgmr.msra.gmra.mrb[52].mxu1 %v2546_v56 }
 0xbc3   :  { %2684 = vmatpush1.bf16.msra.mxu0 %v5269_v61  ;;  %2725 = vmatpush1.bf16.msra.mxu1 %v5271_v48 }
 0xbc4   :  { %2685 = vmatprep.subr.bf16.mxu0 %v5273_v15  ;;  %2726 = vmatprep.subr.bf16.mxu1 %v5275_v19 }
 0xbc5   :  { %2715 = vmatprep.mubr.bf16.mxu0 %v5912_v12  ;;  %2756 = vmatprep.mubr.bf16.mxu1 %v5912_v12 }
 0xbc7   :  { %2686 = vmatpush1.bf16.msra.mxu0 %v5279_v1  ;;  %2727 = vmatpush1.bf16.msra.mxu1 %v5281_v46 }
 0xbc8   :  { %2687 = vmatprep.subr.bf16.mxu0 %v5285_v32  ;;  %2728 = vmatprep.subr.bf16.mxu1 %v5287_v33 }
 0xbcb   :  { %2688 = vmatpush1.bf16.msra.mxu0 %v5293_v35  ;;  %2729 = vmatpush1.bf16.msra.mxu1 %v5295_v36 }
 0xbcc   :  { %2689 = vmatprep.subr.bf16.mxu0 %v5299_v37  ;;  %2730 = vmatprep.subr.bf16.mxu1 %v5301_v41 }
 0xbcf   :  { %2690 = vmatpush1.bf16.msra.mxu0 %v5305_v42  ;;  %2731 = vmatpush1.bf16.msra.mxu1 %v5307_v58 }
 0xbd0   :  { %2691 = vmatprep.subr.bf16.mxu0 %v5311_v20  ;;  %2732 = vmatprep.subr.bf16.mxu1 %v5313_v22 }
 0xbd3   :  { %2692 = vmatpush1.bf16.msra.mxu0 %v5317_v23  ;;  %2733 = vmatpush1.bf16.msra.mxu1 %v5319_v24 }
 0xbd4   :  { %2693 = vmatprep.subr.bf16.mxu0 %v5323_v0  ;;  %2734 = vmatprep.subr.bf16.mxu1 %v5325_v25 }
 0xbd7   :  { %2694 = vmatpush1.bf16.msra.mxu0 %v5329_v26  ;;  %2735 = vmatpush1.bf16.msra.mxu1 %v5331_v27 }
 0xbd8   :  { %2695 = vmatprep.subr.bf16.mxu0 %v5335_v28  ;;  %2736 = vmatprep.subr.bf16.mxu1 %v5337_v59 }
 0xbdb   :  { %2696 = vmatpush1.bf16.msra.mxu0 %v5341_v11  ;;  %2737 = vmatpush1.bf16.msra.mxu1 %v5343_v55 }
 0xbdc   :  { %2697 = vmatprep.subr.bf16.mxu0 %v5347_v3  ;;  %2738 = vmatprep.subr.bf16.mxu1 %v5349_v6 }
 0xbdf   :  { %2698 = vmatpush1.bf16.msra.mxu0 %v5353_v49  ;;  %2739 = vmatpush1.bf16.msra.mxu1 %v5355_v4 }
 0xbe0   :  { %2818 = vmatprep.subr.bf16.mxu0 %v5239_v16  ;;  %2859 = vmatprep.subr.bf16.mxu1 %v5241_v17 }
 0xc95   :  { %v2581_v43 = vpop.f32.mrb[44].mxu0  ;;  %v2622_v2 = vpop.f32.mrb[52].mxu1 }
 0xc96   :  { %v2633_v30 = vrot.slane %v2581_v43, 7  ;;  %v2583_v5 = vpop.f32.mrb[45].mxu0  ;;  %v2624_v47 = vpop.f32.mrb[53].mxu1 }
 0xc97   :  { %v2634_v14 = vrot.slane %v2583_v5, 7  ;;  %v2585_v7 = vpop.f32.mrb[46].mxu0  ;;  %v2626_v57 = vpop.f32.mrb[54].mxu1  ;;  %v2636_v60 = vrot.slane %v2624_v47, 7  ;;  %v5507_v5 = vsel %vm4810_vm6, %v5414_v54, %v2537_v39 }
 0xc98   :  { %v2641_v63 = vadd.f32 %v2633_v30, %v5494_v10  ;;  %v2586_v56 = vpop.f32.mrb[47].mxu0  ;;  %v2627_v43 = vpop.f32.mrb[55].mxu1  ;;  %5939 = vst [vmem:[#allocation32_spill] sm:$0xff] %v5507_v5  ;;  %v2536_v30 = vrot.slane %v5425_v9, 5  ;;  %v2635_v57 = vrot.slane %v2622_v2, 7  ;;  %v2659_v2 = vrot.slane %v5448_v8, 7 }
 0xc99   :  { %v2642_v34 = vadd.f32 %v2634_v14, %v5501_v51  ;;  %v2644_v7 = vadd.f32 %v2636_v60, %v5507_v5  ;;  %v2666_v8 = vrot.slane %v5409_v53, 3 }
 0xc9a   :  { %v2645_v38 = vmul.f32 0.5, %v2641_v63  ;;  %v5514_v13 = vsel %vm4822_vm7, %v5425_v9, %v2536_v30 }
 0xc9b   :  { %v2646_v40 = vmul.f32 0.5, %v2642_v34  ;;  %5940 = vst [vmem:[#allocation33_spill] sm:$0xff] %v5514_v13  ;;  %v2643_v34 = vadd.f32 %v2635_v57, %v5514_v13 }
 0xc9c   :  { %4121 = vtanh.f32 %v2645_v38 }
 0xc9d   :  { %4123 = vtanh.f32 %v2646_v40  ;;  %v2647_v47 = vmul.f32 0.5, %v2643_v34 }
 0xc9e   :  { %4125 = vtanh.f32 %v2644_v7 }
 0xc9f   :  { %4127 = vtanh.f32 %v2647_v47 }
 0xca6   :  { %v4122_v14 = vpop.eup %4121 }
 0xca7   :  { %v2651_v63 = vmul.f32 0.5, %v4122_v14  ;;  %v4124_v39 = vpop.eup %4123 }
 0xca8   :  { %v2652_v38 = vmul.f32 0.5, %v4124_v39  ;;  %v4126_v43 = vpop.eup %4125 }
 0xca9   :  { %v2654_v56 = vadd.f32 0.5, %v2651_v63  ;;  %v4128_v30 = vpop.eup %4127 }
 0xcaa   :  { %v2655_v51 = vadd.f32 0.5, %v2652_v38  ;;  %v2653_v7 = vmul.f32 0.5, %v4128_v30 }
 0xcab   :  { %v2662_v60 = vmul.f32 %v4126_v43, %v2654_v56 }
 0xcac   :  { %v2661_v40 = vmul.f32 %v2659_v2, %v2655_v51  ;;  %v2656_v57 = vadd.f32 0.5, %v2653_v7  ;;  %v2667_v51 = vrot.slane %v5412_v21, 3  ;;  %v5564_v2 = vsel %vm4786_vm4, %v5409_v53, %v2666_v8 }
 0xcae   :  { %v5518_v5 = vadd.f32 %v2662_v60, %v2661_v40  ;;  %v2669_v40 = vrot.slane %v5414_v54, 3 }
 0xcb0   :  { %4129 = vtanh.f32 %v5518_v5 }
 0xcba   :  { %v4130_v34 = vpop.eup %4129 }
 0xcbb   :  { %v5521_v13 = vmul.f32 %v4130_v34, %v2656_v57  ;;  %v5571_v34 = vsel %vm4792_vm5, %v5412_v21, %v2667_v51 }
 0xcbc   :  { %5942 = vst [vmem:[#allocation28_spill] sm:$0xff] %v5571_v34 }
 0xcbd   :  { %5941 = vst [vmem:[#allocation34_spill] sm:$0xff] %v5521_v13  ;;  %v2678_v47 = vpack.c.bf16 %v5521_v13, %v5521_v13 }
 0xcbf   :  { %v2680_v14 = vshrl.u32 %v2678_v47, 16 }
 0xcc1   :  { %2716 = vmatmul.mubr.bf16.vlgmr.msra.gmra.mrb[48].mxu0 %v2680_v14  ;;  %2757 = vmatmul.mubr.bf16.vlgmr.msra.gmra.mrb[56].mxu1 %v2680_v14 }
 0xcc2   :  { %2819 = vmatpush1.bf16.msra.mxu0 %v5269_v61  ;;  %2860 = vmatpush1.bf16.msra.mxu1 %v5271_v48 }
 0xcc3   :  { %2820 = vmatprep.subr.bf16.mxu0 %v5273_v15  ;;  %2861 = vmatprep.subr.bf16.mxu1 %v5275_v19 }
 0xcc4   :  { %2850 = vmatprep.mubr.bf16.mxu0 %v5912_v12  ;;  %2891 = vmatprep.mubr.bf16.mxu1 %v5912_v12 }
 0xcc6   :  { %2821 = vmatpush1.bf16.msra.mxu0 %v5279_v1  ;;  %2862 = vmatpush1.bf16.msra.mxu1 %v5281_v46 }
 0xcc7   :  { %2822 = vmatprep.subr.bf16.mxu0 %v5285_v32  ;;  %2863 = vmatprep.subr.bf16.mxu1 %v5287_v33 }
 0xcca   :  { %2823 = vmatpush1.bf16.msra.mxu0 %v5293_v35  ;;  %2864 = vmatpush1.bf16.msra.mxu1 %v5295_v36 }
 0xccb   :  { %2824 = vmatprep.subr.bf16.mxu0 %v5299_v37  ;;  %2865 = vmatprep.subr.bf16.mxu1 %v5301_v41 }
 0xcce   :  { %2825 = vmatpush1.bf16.msra.mxu0 %v5305_v42  ;;  %2866 = vmatpush1.bf16.msra.mxu1 %v5307_v58 }
 0xccf   :  { %2826 = vmatprep.subr.bf16.mxu0 %v5311_v20  ;;  %2867 = vmatprep.subr.bf16.mxu1 %v5313_v22 }
 0xcd2   :  { %2827 = vmatpush1.bf16.msra.mxu0 %v5317_v23  ;;  %2868 = vmatpush1.bf16.msra.mxu1 %v5319_v24 }
 0xcd3   :  { %2828 = vmatprep.subr.bf16.mxu0 %v5323_v0  ;;  %2869 = vmatprep.subr.bf16.mxu1 %v5325_v25 }
 0xcd6   :  { %2829 = vmatpush1.bf16.msra.mxu0 %v5329_v26  ;;  %2870 = vmatpush1.bf16.msra.mxu1 %v5331_v27 }
 0xcd7   :  { %2830 = vmatprep.subr.bf16.mxu0 %v5335_v28  ;;  %2871 = vmatprep.subr.bf16.mxu1 %v5337_v59 }
 0xcda   :  { %2831 = vmatpush1.bf16.msra.mxu0 %v5341_v11  ;;  %2872 = vmatpush1.bf16.msra.mxu1 %v5343_v55 }
 0xcdb   :  { %2832 = vmatprep.subr.bf16.mxu0 %v5347_v3  ;;  %2873 = vmatprep.subr.bf16.mxu1 %v5349_v6 }
 0xcde   :  { %2833 = vmatpush1.bf16.msra.mxu0 %v5353_v49  ;;  %2874 = vmatpush1.bf16.msra.mxu1 %v5355_v4 }
 0xcdf   :  { %2943 = vmatprep.subr.bf16.mxu0 %v5239_v16  ;;  %2984 = vmatprep.subr.bf16.mxu1 %v5241_v17 }
 0xd94   :  { %v2717_v63 = vpop.f32.mrb[48].mxu0  ;;  %v2758_v39 = vpop.f32.mrb[56].mxu1 }
 0xd95   :  { %v2769_v56 = vrot.slane %v2717_v63, 6  ;;  %v2719_v38 = vpop.f32.mrb[49].mxu0  ;;  %v2760_v43 = vpop.f32.mrb[57].mxu1 }
 0xd96   :  { %v2770_v60 = vrot.slane %v2719_v38, 6  ;;  %v2721_v30 = vpop.f32.mrb[50].mxu0  ;;  %v2762_v7 = vpop.f32.mrb[58].mxu1  ;;  %v2772_v47 = vrot.slane %v2760_v43, 6  ;;  %v5577_v38 = vsel %vm4810_vm6, %v5414_v54, %v2669_v40 }
 0xd97   :  { %v2777_v57 = vadd.f32 %v2769_v56, %v5564_v2  ;;  %v2722_v14 = vpop.f32.mrb[51].mxu0  ;;  %v2763_v63 = vpop.f32.mrb[59].mxu1  ;;  %5943 = vst [vmem:[#allocation20_spill] sm:$0xff] %v5577_v38  ;;  %v2668_v56 = vrot.slane %v5425_v9, 3  ;;  %v2771_v7 = vrot.slane %v2758_v39, 6  ;;  %v2795_v39 = vrot.slane %v5518_v5, 7 }
 0xd98   :  { %v2778_v10 = vadd.f32 %v2770_v60, %v5571_v34  ;;  %v2780_v30 = vadd.f32 %v2772_v47, %v5577_v38 }
 0xd99   :  { %v2781_v31 = vmul.f32 0.5, %v2777_v57  ;;  %v5584_v51 = vsel %vm4822_vm7, %v5425_v9, %v2668_v56 }
 0xd9a   :  { %v2782_v8 = vmul.f32 0.5, %v2778_v10  ;;  %5944 = vst [vmem:[#allocation21_spill] sm:$0xff] %v5584_v51  ;;  %v2779_v10 = vadd.f32 %v2771_v7, %v5584_v51 }
 0xd9b   :  { %4131 = vtanh.f32 %v2781_v31 }
 0xd9c   :  { %4133 = vtanh.f32 %v2782_v8  ;;  %v2783_v43 = vmul.f32 0.5, %v2779_v10 }
 0xd9d   :  { %4135 = vtanh.f32 %v2780_v30 }
 0xd9e   :  { %4137 = vtanh.f32 %v2783_v43  ;;  %v3433_v43 = vsel %vm1874_vm8, %v5451_v18, %v5521_v13 }
 0xda5   :  { %v4132_v60 = vpop.eup %4131 }
 0xda6   :  { %v2787_v57 = vmul.f32 0.5, %v4132_v60  ;;  %v4134_v40 = vpop.eup %4133 }
 0xda7   :  { %v2788_v31 = vmul.f32 0.5, %v4134_v40  ;;  %v4136_v63 = vpop.eup %4135  ;;  %v2803_v40 = vrot.slane %v5412_v21, 1 }
 0xda8   :  { %v2790_v14 = vadd.f32 0.5, %v2787_v57  ;;  %v4138_v56 = vpop.eup %4137  ;;  %v2802_v57 = vrot.slane %v5409_v53, 1 }
 0xda9   :  { %v2791_v34 = vadd.f32 0.5, %v2788_v31  ;;  %v2789_v30 = vmul.f32 0.5, %v4138_v56 }
 0xdaa   :  { %v2798_v47 = vmul.f32 %v4136_v63, %v2790_v14 }
 0xdab   :  { %v2797_v8 = vmul.f32 %v2795_v39, %v2791_v34  ;;  %v2792_v7 = vadd.f32 0.5, %v2789_v30  ;;  %v2805_v30 = vrot.slane %v5414_v54, 1 }
 0xdad   :  { %v5588_v38 = vadd.f32 %v2798_v47, %v2797_v8  ;;  %v5641_v8 = vsel %vm4786_vm4, %v5409_v53, %v2802_v57  ;;  %v5654_v57 = vsel %vm4810_vm6, %v5414_v54, %v2805_v30 }
 0xdaf   :  { %4139 = vtanh.f32 %v5588_v38 }
 0xdb9   :  { %v4140_v10 = vpop.eup %4139 }
 0xdba   :  { %v5591_v51 = vmul.f32 %v4140_v10, %v2792_v7  ;;  %v5648_v10 = vsel %vm4792_vm5, %v5412_v21, %v2803_v40 }
 0xdbc   :  { %v2814_v60 = vpack.c.bf16 %v5591_v51, %v5591_v51  ;;  %v5600_v5 = vsel %vm1876_vm9, %v3433_v43, %v5591_v51 }
 0xdbe   :  { %v2816_v34 = vrot.slane %v2814_v60, 1 }
 0xdc0   :  { %2851 = vmatmul.mubr.bf16.vlgmr.msra.gmra.mrb[52].mxu0 %v2816_v34  ;;  %2892 = vmatmul.mubr.bf16.vlgmr.msra.gmra.mrb[60].mxu1 %v2816_v34 }
 0xdc1   :  { %2944 = vmatpush1.bf16.msra.mxu0 %v5269_v61  ;;  %2985 = vmatpush1.bf16.msra.mxu1 %v5271_v48 }
 0xdc2   :  { %2945 = vmatprep.subr.bf16.mxu0 %v5273_v15  ;;  %2986 = vmatprep.subr.bf16.mxu1 %v5275_v19 }
 0xdc3   :  { %2975 = vmatprep.mubr.bf16.mxu0 %v5912_v12  ;;  %3016 = vmatprep.mubr.bf16.mxu1 %v5912_v12 }
 0xdc5   :  { %2946 = vmatpush1.bf16.msra.mxu0 %v5279_v1  ;;  %2987 = vmatpush1.bf16.msra.mxu1 %v5281_v46 }
 0xdc6   :  { %2947 = vmatprep.subr.bf16.mxu0 %v5285_v32  ;;  %2988 = vmatprep.subr.bf16.mxu1 %v5287_v33 }
 0xdc9   :  { %2948 = vmatpush1.bf16.msra.mxu0 %v5293_v35  ;;  %2989 = vmatpush1.bf16.msra.mxu1 %v5295_v36 }
 0xdca   :  { %2949 = vmatprep.subr.bf16.mxu0 %v5299_v37  ;;  %2990 = vmatprep.subr.bf16.mxu1 %v5301_v41 }
 0xdcd   :  { %2950 = vmatpush1.bf16.msra.mxu0 %v5305_v42  ;;  %2991 = vmatpush1.bf16.msra.mxu1 %v5307_v58 }
 0xdce   :  { %2951 = vmatprep.subr.bf16.mxu0 %v5311_v20  ;;  %2992 = vmatprep.subr.bf16.mxu1 %v5313_v22 }
 0xdd1   :  { %2952 = vmatpush1.bf16.msra.mxu0 %v5317_v23  ;;  %2993 = vmatpush1.bf16.msra.mxu1 %v5319_v24 }
 0xdd2   :  { %2953 = vmatprep.subr.bf16.mxu0 %v5323_v0  ;;  %2994 = vmatprep.subr.bf16.mxu1 %v5325_v25 }
 0xdd5   :  { %2954 = vmatpush1.bf16.msra.mxu0 %v5329_v26  ;;  %2995 = vmatpush1.bf16.msra.mxu1 %v5331_v27 }
 0xdd6   :  { %2955 = vmatprep.subr.bf16.mxu0 %v5335_v28  ;;  %2996 = vmatprep.subr.bf16.mxu1 %v5337_v59 }
 0xdd9   :  { %2956 = vmatpush1.bf16.msra.mxu0 %v5341_v11  ;;  %2997 = vmatpush1.bf16.msra.mxu1 %v5343_v55 }
 0xdda   :  { %2957 = vmatprep.subr.bf16.mxu0 %v5347_v3  ;;  %2998 = vmatprep.subr.bf16.mxu1 %v5349_v6 }
 0xddd   :  { %2958 = vmatpush1.bf16.msra.mxu0 %v5353_v49  ;;  %2999 = vmatpush1.bf16.msra.mxu1 %v5355_v4 }
 0xdde   :  { %3066 = vmatprep.subr.bf16.mxu0 %v5239_v16  ;;  %3107 = vmatprep.subr.bf16.mxu1 %v5241_v17 }
 0xe93   :  { %v2852_v14 = vpop.f32.mrb[52].mxu0  ;;  %v2893_v31 = vpop.f32.mrb[60].mxu1 }
 0xe94   :  { %v2904_v63 = vrot.slane %v2852_v14, 5  ;;  %v2854_v39 = vpop.f32.mrb[53].mxu0  ;;  %v2895_v47 = vpop.f32.mrb[61].mxu1  ;;  %v2906_v52 = vrot.slane %v2893_v31, 5  ;;  %v2930_v31 = vrot.slane %v5588_v38, 7 }
 0xe95   :  { %v2905_v56 = vrot.slane %v2854_v39, 5  ;;  %v2856_v16 = vpop.f32.mrb[54].mxu0  ;;  %v2897_v7 = vpop.f32.mrb[62].mxu1  ;;  %v2907_v43 = vrot.slane %v2895_v47, 5 }
 0xe96   :  { %v2912_v17 = vadd.f32 %v2904_v63, %v5641_v8  ;;  %v2857_v60 = vpop.f32.mrb[55].mxu0  ;;  %v2898_v34 = vpop.f32.mrb[63].mxu1  ;;  %v2804_v63 = vrot.slane %v5425_v9, 1 }
 0xe97   :  { %v2913_v14 = vadd.f32 %v2905_v56, %v5648_v10  ;;  %v2915_v39 = vadd.f32 %v2907_v43, %v5654_v57 }
 0xe98   :  { %v2916_v29 = vmul.f32 0.5, %v2912_v17  ;;  %v5661_v21 = vsel %vm4822_vm7, %v5425_v9, %v2804_v63 }
 0xe99   :  { %v2917_v53 = vmul.f32 0.5, %v2913_v14  ;;  %v2914_v40 = vadd.f32 %v2906_v52, %v5661_v21 }
 0xe9a   :  { %4141 = vtanh.f32 %v2916_v29 }
 0xe9b   :  { %4143 = vtanh.f32 %v2917_v53  ;;  %v2918_v47 = vmul.f32 0.5, %v2914_v40  ;;  %v5712_v40 = vld [vmem:[#allocation10 + $0x10c] ss:$16 sps:$4 sm:$0xff]  }
 0xe9c   :  { %4145 = vtanh.f32 %v2915_v39 }
 0xe9d   :  { %4147 = vtanh.f32 %v2918_v47 }
 0xea4   :  { %v4142_v56 = vpop.eup %4141 }
 0xea5   :  { %v2922_v62 = vmul.f32 0.5, %v4142_v56  ;;  %v4144_v54 = vpop.eup %4143 }
 0xea6   :  { %v2923_v16 = vmul.f32 0.5, %v4144_v54  ;;  %v4146_v7 = vpop.eup %4145 }
 0xea7   :  { %v2925_v30 = vadd.f32 0.5, %v2922_v62  ;;  %v4148_v50 = vpop.eup %4147 }
 0xea8   :  { %v2926_v17 = vadd.f32 0.5, %v2923_v16  ;;  %v2924_v9 = vmul.f32 0.5, %v4148_v50 }
 0xea9   :  { %v2933_v43 = vmul.f32 %v4146_v7, %v2925_v30 }
 0xeaa   :  { %v2932_v60 = vmul.f32 %v2930_v31, %v2926_v17  ;;  %v2927_v14 = vadd.f32 0.5, %v2924_v9 }
 0xeac   :  { %v5665_v34 = vadd.f32 %v2933_v43, %v2932_v60 }
 0xeae   :  { %4149 = vtanh.f32 %v5665_v34 }
 0xeb8   :  { %v4150_v29 = vpop.eup %4149 }
 0xeb9   :  { %v5668_v53 = vmul.f32 %v4150_v29, %v2927_v14 }
 0xebb   :  { %v2937_v63 = vpack.c.bf16 %v5668_v53, %v5668_v53  ;;  %v5675_v39 = vsel %vm1878_vm10, %v5600_v5, %v5668_v53  ;;  %v5709_v5 = vld [vmem:[#allocation10 + $0x104] ss:$16 sps:$4 sm:$0xff]  }
 0xebd   :  { %v2939_v38 = vshrl.u32 %v2937_v63, 16  ;;  %v5945_v63 = vld [vmem:[#allocation26_spill] sm:$0xff] }
 0xebf   :  { %v2941_v52 = vrot.slane %v2939_v38, 1 }
 0xec1   :  { %2976 = vmatmul.mubr.bf16.vlgmr.msra.gmra.mrb[56].mxu0 %v2941_v52  ;;  %3017 = vmatmul.mubr.bf16.vlgmr.msra.gmra.mrb[64].mxu1 %v2941_v52 }
 0xec2   :  { %3067 = vmatpush1.bf16.msra.mxu0 %v5269_v61  ;;  %3108 = vmatpush1.bf16.msra.mxu1 %v5271_v48 }
 0xec3   :  { %3068 = vmatprep.subr.bf16.mxu0 %v5273_v15  ;;  %3109 = vmatprep.subr.bf16.mxu1 %v5275_v19 }
 0xec4   :  { %3098 = vmatprep.mubr.bf16.mxu0 %v5912_v12  ;;  %3139 = vmatprep.mubr.bf16.mxu1 %v5912_v12 }
 0xec6   :  { %3069 = vmatpush1.bf16.msra.mxu0 %v5279_v1  ;;  %3110 = vmatpush1.bf16.msra.mxu1 %v5281_v46 }
 0xec7   :  { %3070 = vmatprep.subr.bf16.mxu0 %v5285_v32  ;;  %3111 = vmatprep.subr.bf16.mxu1 %v5287_v33 }
 0xeca   :  { %3071 = vmatpush1.bf16.msra.mxu0 %v5293_v35  ;;  %3112 = vmatpush1.bf16.msra.mxu1 %v5295_v36 }
 0xecb   :  { %3072 = vmatprep.subr.bf16.mxu0 %v5299_v37  ;;  %3113 = vmatprep.subr.bf16.mxu1 %v5301_v41 }
 0xece   :  { %3073 = vmatpush1.bf16.msra.mxu0 %v5305_v42  ;;  %3114 = vmatpush1.bf16.msra.mxu1 %v5307_v58 }
 0xecf   :  { %3074 = vmatprep.subr.bf16.mxu0 %v5311_v20  ;;  %3115 = vmatprep.subr.bf16.mxu1 %v5313_v22 }
 0xed2   :  { %3075 = vmatpush1.bf16.msra.mxu0 %v5317_v23  ;;  %3116 = vmatpush1.bf16.msra.mxu1 %v5319_v24 }
 0xed3   :  { %3076 = vmatprep.subr.bf16.mxu0 %v5323_v0  ;;  %3117 = vmatprep.subr.bf16.mxu1 %v5325_v25 }
 0xed6   :  { %3077 = vmatpush1.bf16.msra.mxu0 %v5329_v26  ;;  %3118 = vmatpush1.bf16.msra.mxu1 %v5331_v27 }
 0xed7   :  { %3078 = vmatprep.subr.bf16.mxu0 %v5335_v28  ;;  %3119 = vmatprep.subr.bf16.mxu1 %v5337_v59 }
 0xeda   :  { %3079 = vmatpush1.bf16.msra.mxu0 %v5341_v11  ;;  %3120 = vmatpush1.bf16.msra.mxu1 %v5343_v55 }
 0xedb   :  { %3080 = vmatprep.subr.bf16.mxu0 %v5347_v3  ;;  %3121 = vmatprep.subr.bf16.mxu1 %v5349_v6 }
 0xede   :  { %3081 = vmatpush1.bf16.msra.mxu0 %v5353_v49  ;;  %3122 = vmatpush1.bf16.msra.mxu1 %v5355_v4 }
 0xedf   :  { %3191 = vmatprep.subr.bf16.mxu0 %v5709_v5  ;;  %3232 = vmatprep.subr.bf16.mxu1 %v5712_v40 }
 0xf94   :  { %v2977_v47 = vpop.f32.mrb[56].mxu0  ;;  %v3018_v56 = vpop.f32.mrb[64].mxu1 }
 0xf95   :  { %v3029_v62 = vrot.slane %v2977_v47, 4  ;;  %v2979_v54 = vpop.f32.mrb[57].mxu0  ;;  %v3020_v30 = vpop.f32.mrb[65].mxu1  ;;  %v3031_v52 = vrot.slane %v3018_v56, 4  ;;  %v5946_v47 = vld [vmem:[#allocation27_spill] sm:$0xff] }
 0xf96   :  { %v3030_v16 = vrot.slane %v2979_v54, 4  ;;  %v2981_v7 = vpop.f32.mrb[58].mxu0  ;;  %v3022_v17 = vpop.f32.mrb[66].mxu1  ;;  %v3032_v43 = vrot.slane %v3020_v30, 4 }
 0xf97   :  { %v3037_v31 = vadd.f32 %v3029_v62, %v5422_v44  ;;  %v2982_v60 = vpop.f32.mrb[59].mxu0  ;;  %v3023_v50 = vpop.f32.mrb[67].mxu1  ;;  %v3039_v18 = vadd.f32 %v3031_v52, %v5946_v47 }
 0xf98   :  { %v3038_v9 = vadd.f32 %v3030_v16, %v5431_v45  ;;  %v3040_v38 = vadd.f32 %v3032_v43, %v5945_v63  ;;  %v3055_v45 = vrot.slane %v5665_v34, 7 }
 0xf99   :  { %v3041_v14 = vmul.f32 0.5, %v3037_v31  ;;  %v3043_v54 = vmul.f32 0.5, %v3039_v18 }
 0xf9a   :  { %v3042_v29 = vmul.f32 0.5, %v3038_v9 }
 0xf9b   :  { %4151 = vtanh.f32 %v3041_v14 }
 0xf9c   :  { %4153 = vtanh.f32 %v3042_v29 }
 0xf9d   :  { %4155 = vtanh.f32 %v3040_v38 }
 0xf9e   :  { %4157 = vtanh.f32 %v3043_v54 }
 0xfa5   :  { %v4152_v7 = vpop.eup %4151 }
 0xfa6   :  { %v3047_v17 = vmul.f32 0.5, %v4152_v7  ;;  %v4154_v13 = vpop.eup %4153 }
 0xfa7   :  { %v3048_v62 = vmul.f32 0.5, %v4154_v13  ;;  %v4156_v30 = vpop.eup %4155 }
 0xfa8   :  { %v3050_v44 = vadd.f32 0.5, %v3047_v17  ;;  %v4158_v56 = vpop.eup %4157 }
 0xfa9   :  { %v3051_v60 = vadd.f32 0.5, %v3048_v62  ;;  %v3049_v43 = vmul.f32 0.5, %v4158_v56  ;;  %v4231_v56 = vld [vmem:[#allocation10 + $0x128] ss:$16 sps:$4 sm:$0xff]  }
 0xfaa   :  { %v3058_v16 = vmul.f32 %v4156_v30, %v3050_v44 }
 0xfab   :  { %v3057_v31 = vmul.f32 %v3055_v45, %v3051_v60  ;;  %v3052_v9 = vadd.f32 0.5, %v3049_v43  ;;  %v4226_v60 = vld [vmem:[#allocation10 + $0x100] ss:$16 sps:$4 sm:$0xff]   ;;  %v4227_v45 = vld [vmem:[#allocation10 + $0x108] ss:$16 sps:$4 sm:$0xff]  }
 0xfac   :  { %v4232_v43 = vld [vmem:[#allocation10 + $0x144] ss:$16 sps:$4 sm:$0xff]  }
 0xfad   :  { %v5720_v50 = vadd.f32 %v3058_v16, %v3057_v31  ;;  %v4228_v16 = vld [vmem:[#allocation10 + $0x124] ss:$16 sps:$4 sm:$0xff]   ;;  %v4229_v31 = vld [vmem:[#allocation10 + $0x12c] ss:$16 sps:$4 sm:$0xff]  }
 0xfaf   :  { %4159 = vtanh.f32 %v5720_v50 }
 0xfb9   :  { %v4160_v18 = vpop.eup %4159 }
 0xfba   :  { %v5723_v14 = vmul.f32 %v4160_v18, %v3052_v9  ;;  %v4233_v9 = vld [vmem:[#allocation10 + $0x14c] ss:$16 sps:$4 sm:$0xff]   ;;  %v4234_v18 = vld [vmem:[#allocation10 + $0x140] ss:$16 sps:$4 sm:$0xff]  }
 0xfbc   :  { %v3062_v29 = vpack.c.bf16 %v5723_v14, %v5723_v14  ;;  %v5730_v13 = vsel %vm143_vm1, %v5675_v39, %v5723_v14  ;;  %v3178_v39 = vrot.slane %v5720_v50, 7  ;;  %v4230_v50 = vld [vmem:[#allocation10 + $0x120] ss:$16 sps:$4 sm:$0xff]  }
 0xfbe   :  { %v3064_v34 = vrot.slane %v3062_v29, 2  ;;  %v4235_v29 = vld [vmem:[#allocation10 + $0x148] ss:$16 sps:$4 sm:$0xff]  }
 0xfc0   :  { %3099 = vmatmul.mubr.bf16.vlgmr.msra.gmra.mrb[60].mxu0 %v3064_v34  ;;  %3140 = vmatmul.mubr.bf16.vlgmr.msra.gmra.mrb[68].mxu1 %v3064_v34  ;;  %v4237_v34 = vld [vmem:[#allocation10 + $0x16c] ss:$16 sps:$4 sm:$0xff]  }
 0xfc1   :  { %3192 = vmatpush1.bf16.msra.mxu0 %v5269_v61  ;;  %3233 = vmatpush1.bf16.msra.mxu1 %v5271_v48 }
 0xfc2   :  { %3193 = vmatprep.subr.bf16.mxu0 %v5273_v15  ;;  %3234 = vmatprep.subr.bf16.mxu1 %v5275_v19 }
 0xfc3   :  { %3223 = vmatprep.mubr.bf16.mxu0 %v5912_v12  ;;  %3264 = vmatprep.mubr.bf16.mxu1 %v5912_v12 }
 0xfc5   :  { %3194 = vmatpush1.bf16.msra.mxu0 %v5279_v1  ;;  %3235 = vmatpush1.bf16.msra.mxu1 %v5281_v46 }
 0xfc6   :  { %3195 = vmatprep.subr.bf16.mxu0 %v5285_v32  ;;  %3236 = vmatprep.subr.bf16.mxu1 %v5287_v33 }
 0xfc9   :  { %3196 = vmatpush1.bf16.msra.mxu0 %v5293_v35  ;;  %3237 = vmatpush1.bf16.msra.mxu1 %v5295_v36  ;;  %v5947_v35 = vld [vmem:[#allocation30_spill] sm:$0xff] }
 0xfca   :  { %3197 = vmatprep.subr.bf16.mxu0 %v5299_v37  ;;  %3238 = vmatprep.subr.bf16.mxu1 %v5301_v41 }
 0xfcd   :  { %3198 = vmatpush1.bf16.msra.mxu0 %v5305_v42  ;;  %3239 = vmatpush1.bf16.msra.mxu1 %v5307_v58  ;;  %v5948_v58 = vld [vmem:[#allocation31_spill] sm:$0xff] }
 0xfce   :  { %3199 = vmatprep.subr.bf16.mxu0 %v5311_v20  ;;  %3240 = vmatprep.subr.bf16.mxu1 %v5313_v22 }
 0xfd1   :  { %3200 = vmatpush1.bf16.msra.mxu0 %v5317_v23  ;;  %3241 = vmatpush1.bf16.msra.mxu1 %v5319_v24  ;;  %v5949_v24 = vld [vmem:[#allocation32_spill] sm:$0xff] }
 0xfd2   :  { %3201 = vmatprep.subr.bf16.mxu0 %v5323_v0  ;;  %3242 = vmatprep.subr.bf16.mxu1 %v5325_v25 }
 0xfd5   :  { %3202 = vmatpush1.bf16.msra.mxu0 %v5329_v26  ;;  %3243 = vmatpush1.bf16.msra.mxu1 %v5331_v27  ;;  %v5950_v26 = vld [vmem:[#allocation33_spill] sm:$0xff] }
 0xfd6   :  { %3203 = vmatprep.subr.bf16.mxu0 %v5335_v28  ;;  %3244 = vmatprep.subr.bf16.mxu1 %v5337_v59 }
 0xfd9   :  { %3204 = vmatpush1.bf16.msra.mxu0 %v5341_v11  ;;  %3245 = vmatpush1.bf16.msra.mxu1 %v5343_v55 }
 0xfda   :  { %3205 = vmatprep.subr.bf16.mxu0 %v5347_v3  ;;  %3246 = vmatprep.subr.bf16.mxu1 %v5349_v6 }
 0xfdd   :  { %3206 = vmatpush1.bf16.msra.mxu0 %v5353_v49  ;;  %3247 = vmatpush1.bf16.msra.mxu1 %v5355_v4 }
 0xfde   :  { %3314 = vmatprep.subr.bf16.mxu0 %v5709_v5  ;;  %3355 = vmatprep.subr.bf16.mxu1 %v5712_v40 }
0x1093   :  { %v3100_v61 = vpop.f32.mrb[60].mxu0  ;;  %v3141_v48 = vpop.f32.mrb[68].mxu1 }
0x1094   :  { %v3152_v15 = vrot.slane %v3100_v61, 3  ;;  %v3102_v19 = vpop.f32.mrb[61].mxu0  ;;  %v3143_v1 = vpop.f32.mrb[69].mxu1  ;;  %v3154_v25 = vrot.slane %v3141_v48, 3  ;;  %v4238_v61 = vld [vmem:[#allocation10 + $0x160] ss:$16 sps:$4 sm:$0xff]  }
0x1095   :  { %v3153_v46 = vrot.slane %v3102_v19, 3  ;;  %v3104_v32 = vpop.f32.mrb[62].mxu0  ;;  %v3145_v33 = vpop.f32.mrb[70].mxu1  ;;  %v3155_v37 = vrot.slane %v3143_v1, 3  ;;  %v4239_v48 = vld [vmem:[#allocation10 + $0x168] ss:$16 sps:$4 sm:$0xff]  }
0x1096   :  { %v3160_v36 = vadd.f32 %v3152_v15, %v5947_v35  ;;  %v3105_v41 = vpop.f32.mrb[63].mxu0  ;;  %v3146_v42 = vpop.f32.mrb[71].mxu1  ;;  %v3162_v27 = vadd.f32 %v3154_v25, %v5950_v26  ;;  %v4241_v15 = vld [vmem:[#allocation10 + $0x18c] ss:$16 sps:$4 sm:$0xff]   ;;  %v4242_v19 = vld [vmem:[#allocation10 + $0x180] ss:$16 sps:$4 sm:$0xff]  }
0x1097   :  { %v3161_v20 = vadd.f32 %v3153_v46, %v5948_v58  ;;  %v3163_v0 = vadd.f32 %v3155_v37, %v5949_v24  ;;  %v4243_v1 = vld [vmem:[#allocation10 + $0x188] ss:$16 sps:$4 sm:$0xff]   ;;  %v4244_v46 = vld [vmem:[#allocation10 + $0x1a4] ss:$16 sps:$4 sm:$0xff]   ;;  %v4245_v32 = vld [vmem:[#allocation10 + $0x1ac] ss:$16 sps:$4 sm:$0xff]  }
0x1098   :  { %v3164_v22 = vmul.f32 0.5, %v3160_v36  ;;  %v3166_v28 = vmul.f32 0.5, %v3162_v27  ;;  %v4246_v33 = vld [vmem:[#allocation10 + $0x1a0] ss:$16 sps:$4 sm:$0xff]   ;;  %v4247_v35 = vld [vmem:[#allocation10 + $0x1a8] ss:$16 sps:$4 sm:$0xff]  }
0x1099   :  { %v3165_v23 = vmul.f32 0.5, %v3161_v20  ;;  %v4248_v36 = vld [vmem:[#allocation10 + $0x1c4] ss:$16 sps:$4 sm:$0xff]   ;;  %v4249_v37 = vld [vmem:[#allocation10 + $0x1cc] ss:$16 sps:$4 sm:$0xff]   ;;  %v5951_v24 = vmov 0.0  }
0x109a   :  { %4161 = vtanh.f32 %v3164_v22  ;;  %v4250_v41 = vld [vmem:[#allocation10 + $0x1c0] ss:$16 sps:$4 sm:$0xff]   ;;  %v4251_v42 = vld [vmem:[#allocation10 + $0x1c8] ss:$16 sps:$4 sm:$0xff]   ;;  %v4252_v58 = vld [vmem:[#allocation10 + $0x1e4] ss:$16 sps:$4 sm:$0xff]  }
0x109b   :  { %4163 = vtanh.f32 %v3165_v23  ;;  %v4253_v20 = vld [vmem:[#allocation10 + $0x1ec] ss:$16 sps:$4 sm:$0xff]   ;;  %v4254_v22 = vld [vmem:[#allocation10 + $0x1e0] ss:$16 sps:$4 sm:$0xff]   ;;  %v4255_v23 = vld [vmem:[#allocation10 + $0x1e8] ss:$16 sps:$4 sm:$0xff]  }
0x109c   :  { %4165 = vtanh.f32 %v3163_v0 }
0x109d   :  { %4167 = vtanh.f32 %v3166_v28 }
0x10a4   :  { %v4162_v59 = vpop.eup %4161 }
0x10a5   :  { %v3170_v11 = vmul.f32 0.5, %v4162_v59  ;;  %v4164_v55 = vpop.eup %4163 }
0x10a6   :  { %v3171_v6 = vmul.f32 0.5, %v4164_v55  ;;  %v4166_v49 = vpop.eup %4165 }
0x10a7   :  { %v3173_v3 = vadd.f32 0.5, %v3170_v11  ;;  %v4168_v38 = vpop.eup %4167 }
0x10a8   :  { %v3174_v4 = vadd.f32 0.5, %v3171_v6  ;;  %v3172_v52 = vmul.f32 0.5, %v4168_v38 }
0x10a9   :  { %v3181_v5 = vmul.f32 %v4166_v49, %v3173_v3 }
0x10aa   :  { %v3180_v40 = vmul.f32 %v3178_v39, %v3174_v4  ;;  %v3175_v47 = vadd.f32 0.5, %v3172_v52  ;;  %v5952_v39 = vld [vmem:[#allocation28_spill] sm:$0xff] }
0x10ab   :  { %v5953_v52 = vld [vmem:[#allocation20_spill] sm:$0xff] }
0x10ac   :  { %v5771_v63 = vadd.f32 %v3181_v5, %v3180_v40 }
0x10ae   :  { %4169 = vtanh.f32 %v5771_v63 }
0x10b8   :  { %v4170_v54 = vpop.eup %4169 }
0x10b9   :  { %v5774_v7 = vmul.f32 %v4170_v54, %v3175_v47 }
0x10bb   :  { %v3185_v17 = vpack.c.bf16 %v5774_v7, %v5774_v7  ;;  %v5781_v44 = vsel %vm1881_vm11, %v5730_v13, %v5774_v7  ;;  %v4236_v13 = vld [vmem:[#allocation10 + $0x164] ss:$16 sps:$4 sm:$0xff]  }
0x10bd   :  { %v3187_v62 = vshrl.u32 %v3185_v17, 16  ;;  %v5954_v17 = vld [vmem:[#allocation21_spill] sm:$0xff] }
0x10bf   :  { %v3189_v30 = vrot.slane %v3187_v62, 2 }
0x10c1   :  { %3224 = vmatmul.mubr.bf16.vlgmr.msra.gmra.mrb[64].mxu0 %v3189_v30  ;;  %3265 = vmatmul.mubr.bf16.vlgmr.msra.gmra.mrb[72].mxu1 %v3189_v30 }
0x10c2   :  { %3315 = vmatpush1.bf16.msra.mxu0 %v4226_v60  ;;  %3356 = vmatpush1.bf16.msra.mxu1 %v4227_v45 }
0x10c3   :  { %3316 = vmatprep.subr.bf16.mxu0 %v4228_v16  ;;  %3357 = vmatprep.subr.bf16.mxu1 %v4229_v31 }
0x10c4   :  { %3346 = vmatprep.mubr.bf16.mxu0 %v5912_v12  ;;  %3387 = vmatprep.mubr.bf16.mxu1 %v5912_v12  ;;  %v4240_v12 = vld [vmem:[#allocation10 + $0x184] ss:$16 sps:$4 sm:$0xff]  }
0x10c6   :  { %3317 = vmatpush1.bf16.msra.mxu0 %v4230_v50  ;;  %3358 = vmatpush1.bf16.msra.mxu1 %v4231_v56 }
0x10c7   :  { %3318 = vmatprep.subr.bf16.mxu0 %v4232_v43  ;;  %3359 = vmatprep.subr.bf16.mxu1 %v4233_v9  ;;  %v3303_v43 = vrot.slane %v5771_v63, 7 }
0x10ca   :  { %3319 = vmatpush1.bf16.msra.mxu0 %v4234_v18  ;;  %3360 = vmatpush1.bf16.msra.mxu1 %v4235_v29 }
0x10cb   :  { %3320 = vmatprep.subr.bf16.mxu0 %v4236_v13  ;;  %3361 = vmatprep.subr.bf16.mxu1 %v4237_v34 }
0x10ce   :  { %3321 = vmatpush1.bf16.msra.mxu0 %v4238_v61  ;;  %3362 = vmatpush1.bf16.msra.mxu1 %v4239_v48 }
0x10cf   :  { %3322 = vmatprep.subr.bf16.mxu0 %v4240_v12  ;;  %3363 = vmatprep.subr.bf16.mxu1 %v4241_v15 }
0x10d2   :  { %3323 = vmatpush1.bf16.msra.mxu0 %v4242_v19  ;;  %3364 = vmatpush1.bf16.msra.mxu1 %v4243_v1  ;;  %v4019_v1 = vld [vmem:[#allocation11] sm:$0xff]  }
0x10d3   :  { %3324 = vmatprep.subr.bf16.mxu0 %v4244_v46  ;;  %3365 = vmatprep.subr.bf16.mxu1 %v4245_v32  ;;  %v4020_v46 = vld [vmem:[#allocation11 + $0x8] sm:$0xff]   ;;  %v4021_v32 = vld [vmem:[#allocation11 + $0x10] sm:$0xff]  }
0x10d6   :  { %3325 = vmatpush1.bf16.msra.mxu0 %v4246_v33  ;;  %3366 = vmatpush1.bf16.msra.mxu1 %v4247_v35  ;;  %v4022_v33 = vld [vmem:[#allocation11 + $0x18] sm:$0xff]   ;;  %v4024_v35 = vld [vmem:[#allocation11 + $0x28] sm:$0xff]  }
0x10d7   :  { %3326 = vmatprep.subr.bf16.mxu0 %v4248_v36  ;;  %3367 = vmatprep.subr.bf16.mxu1 %v4249_v37  ;;  %v4025_v36 = vld [vmem:[#allocation11 + $0x30] sm:$0xff]   ;;  %v4026_v37 = vld [vmem:[#allocation11 + $0x38] sm:$0xff]  }
0x10da   :  { %3327 = vmatpush1.bf16.msra.mxu0 %v4250_v41  ;;  %3368 = vmatpush1.bf16.msra.mxu1 %v4251_v42 }
0x10db   :  { %3328 = vmatprep.subr.bf16.mxu0 %v4252_v58  ;;  %3369 = vmatprep.subr.bf16.mxu1 %v4253_v20 }
0x10de   :  { %3329 = vmatpush1.bf16.msra.mxu0 %v4254_v22  ;;  %3370 = vmatpush1.bf16.msra.mxu1 %v4255_v23 }
0x10df   :  { %3786 = vmatprep.subr.bf16.mxu0 %v5951_v24 }
0x1194   :  { %v3225_v0 = vpop.f32.mrb[64].mxu0  ;;  %v3266_v25 = vpop.f32.mrb[72].mxu1 }
0x1195   :  { %v3277_v26 = vrot.slane %v3225_v0, 2  ;;  %v3227_v27 = vpop.f32.mrb[65].mxu0  ;;  %v3268_v28 = vpop.f32.mrb[73].mxu1  ;;  %v3279_v54 = vrot.slane %v3266_v25, 2 }
0x1196   :  { %v3278_v59 = vrot.slane %v3227_v27, 2  ;;  %v3229_v11 = vpop.f32.mrb[66].mxu0  ;;  %v3270_v55 = vpop.f32.mrb[74].mxu1  ;;  %v3280_v6 = vrot.slane %v3268_v28, 2 }
0x1197   :  { %v3285_v3 = vadd.f32 %v3277_v26, %v5564_v2  ;;  %v3230_v49 = vpop.f32.mrb[67].mxu0  ;;  %v3271_v4 = vpop.f32.mrb[75].mxu1  ;;  %v3287_v62 = vadd.f32 %v3279_v54, %v5954_v17 }
0x1198   :  { %v3286_v5 = vadd.f32 %v3278_v59, %v5952_v39  ;;  %v3288_v47 = vadd.f32 %v3280_v6, %v5953_v52 }
0x1199   :  { %v3289_v40 = vmul.f32 0.5, %v3285_v3  ;;  %v3291_v30 = vmul.f32 0.5, %v3287_v62 }
0x119a   :  { %v3290_v38 = vmul.f32 0.5, %v3286_v5 }
0x119b   :  { %4171 = vtanh.f32 %v3289_v40 }
0x119c   :  { %4173 = vtanh.f32 %v3290_v38 }
0x119d   :  { %4175 = vtanh.f32 %v3288_v47 }
0x119e   :  { %4177 = vtanh.f32 %v3291_v30 }
0x11a5   :  { %v4172_v60 = vpop.eup %4171 }
0x11a6   :  { %v3295_v45 = vmul.f32 0.5, %v4172_v60  ;;  %v4174_v16 = vpop.eup %4173 }
0x11a7   :  { %v3296_v31 = vmul.f32 0.5, %v4174_v16  ;;  %v4176_v50 = vpop.eup %4175 }
0x11a8   :  { %v3298_v2 = vadd.f32 0.5, %v3295_v45  ;;  %v4178_v13 = vpop.eup %4177 }
0x11a9   :  { %v3299_v56 = vadd.f32 0.5, %v3296_v31  ;;  %v3297_v34 = vmul.f32 0.5, %v4178_v13 }
0x11aa   :  { %v3306_v9 = vmul.f32 %v4176_v50, %v3298_v2  ;;  %v3447_v50 = vrot.slane %v5774_v7, 3 }
0x11ab   :  { %v3305_v18 = vmul.f32 %v3303_v43, %v3299_v56  ;;  %v3300_v61 = vadd.f32 0.5, %v3297_v34  ;;  %v3450_v56 = vrot.slane %v5723_v14, 1  ;;  %v5955_v34 = vld [vmem:[#allocation34_spill] sm:$0xff] }
0x11ad   :  { %v5791_v29 = vadd.f32 %v3306_v9, %v3305_v18  ;;  %v3453_v9 = vrot.slane %v5668_v53, 7 }
0x11af   :  { %4179 = vtanh.f32 %v5791_v29 }
0x11b9   :  { %v4180_v48 = vpop.eup %4179 }
0x11ba   :  { %v5794_v12 = vmul.f32 %v4180_v48, %v3300_v61  ;;  %v3459_v61 = vrot.slane %v5955_v34, 3 }
0x11bc   :  { %v3310_v15 = vpack.c.bf16 %v5794_v12, %v5794_v12  ;;  %v5801_v19 = vsel %vm1883_vm12, %v5781_v44, %v5794_v12  ;;  %v4023_v44 = vld [vmem:[#allocation11 + $0x20] sm:$0xff]   ;;  %v3444_v16 = vrot.slane %v5794_v12, 5  ;;  %v5956_v12 = vld [vmem:[#allocation29_spill] sm:$0xff] }
0x11be   :  { %v3312_v63 = vrot.slane %v3310_v15, 3  ;;  %v3462_v15 = vrot.slane %v5956_v12, 1 }
0x11c0   :  { %3347 = vmatmul.mubr.bf16.vlgmr.msra.gmra.mrb[68].mxu0 %v3312_v63  ;;  %3388 = vmatmul.mubr.bf16.vlgmr.msra.gmra.mrb[76].mxu1 %v3312_v63 }
0x11c1   :  { %3802 = vmatprep.mubr.msk.bf16.mxu0 %vm4432_vm0, %v5951_v24  ;;  %3787 = vmatpush3.bf16.msra.mxu0 %v4019_v1 }
0x11c2   :  { %3788 = vmatprep.subr.bf16.mxu0 %v5951_v24 }
0x11c5   :  { %3789 = vmatpush3.bf16.msra.mxu0 %v4020_v46 }
0x11c6   :  { %3790 = vmatprep.subr.bf16.mxu0 %v5951_v24 }
0x11c9   :  { %3791 = vmatpush3.bf16.msra.mxu0 %v4021_v32  ;;  %v4256_v32 = vld [vmem:[%s5858_s7] sm:$0xff] }
0x11ca   :  { %3792 = vmatprep.subr.bf16.mxu0 %v5951_v24 }
0x11cd   :  { %3793 = vmatpush3.bf16.msra.mxu0 %v4022_v33 }
0x11ce   :  { %3794 = vmatprep.subr.bf16.mxu0 %v5951_v24 }
0x11d1   :  { %3795 = vmatpush3.bf16.msra.mxu0 %v4023_v44 }
0x11d2   :  { %3796 = vmatprep.subr.bf16.mxu0 %v5951_v24 }
0x11d5   :  { %3797 = vmatpush3.bf16.msra.mxu0 %v4024_v35 }
0x11d6   :  { %3798 = vmatprep.subr.bf16.mxu0 %v5951_v24 }
0x11d9   :  { %3799 = vmatpush3.bf16.msra.mxu0 %v4025_v36 }
0x11da   :  { %3800 = vmatprep.subr.bf16.mxu0 %v5951_v24 }
0x11dd   :  { %3801 = vmatpush3.bf16.msra.mxu0 %v4026_v37 }
0x1293   :  { %v3348_v41 = vpop.f32.mrb[68].mxu0  ;;  %v3389_v42 = vpop.f32.mrb[76].mxu1 }
0x1294   :  { %v3400_v58 = vrot.slane %v3348_v41, 1  ;;  %v3350_v20 = vpop.f32.mrb[69].mxu0  ;;  %v3391_v22 = vpop.f32.mrb[77].mxu1  ;;  %v3402_v6 = vrot.slane %v3389_v42, 1 }
0x1295   :  { %v3401_v23 = vrot.slane %v3350_v20, 1  ;;  %v3352_v0 = vpop.f32.mrb[70].mxu0  ;;  %v3393_v25 = vpop.f32.mrb[78].mxu1  ;;  %v3403_v27 = vrot.slane %v3391_v22, 1 }
0x1296   :  { %v3408_v26 = vadd.f32 %v3400_v58, %v5641_v8  ;;  %v3353_v28 = vpop.f32.mrb[71].mxu0  ;;  %v3394_v59 = vpop.f32.mrb[79].mxu1  ;;  %v3410_v49 = vadd.f32 %v3402_v6, %v5661_v21 }
0x1297   :  { %v3409_v11 = vadd.f32 %v3401_v23, %v5648_v10  ;;  %v3411_v24 = vadd.f32 %v3403_v27, %v5654_v57  ;;  %v3426_v10 = vrot.slane %v5791_v29, 7  ;;  %v3456_v29 = vrot.slane %v5591_v51, 5  ;;  %v5958_v51 = vld [vmem:[#allocation19_spill] sm:$0xff] }
0x1298   :  { %v3412_v55 = vmul.f32 0.5, %v3408_v26  ;;  %v3414_v4 = vmul.f32 0.5, %v3410_v49  ;;  %v3491_v46 = vsub.s32 6, %v5958_v51 }
0x1299   :  { %v3413_v3 = vmul.f32 0.5, %v3409_v11 }
0x129a   :  { %4181 = vtanh.f32 %v3412_v55  ;;  %v3492_v33 = vrot.slane %v4256_v32, %v3491_v46 }
0x129b   :  { %4183 = vtanh.f32 %v3413_v3 }
0x129c   :  { %4185 = vtanh.f32 %v3411_v24 }
0x129d   :  { %4187 = vtanh.f32 %v3414_v4 }
0x12a4   :  { %v4182_v39 = vpop.eup %4181 }
0x12a5   :  { %v3418_v5 = vmul.f32 0.5, %v4182_v39  ;;  %v4184_v40 = vpop.eup %4183 }
0x12a6   :  { %v3419_v38 = vmul.f32 0.5, %v4184_v40  ;;  %v4186_v52 = vpop.eup %4185 }
0x12a7   :  { %v3421_v8 = vadd.f32 0.5, %v3418_v5  ;;  %v4188_v57 = vpop.eup %4187 }
0x12a8   :  { %v3422_v47 = vadd.f32 0.5, %v3419_v38  ;;  %v3420_v30 = vmul.f32 0.5, %v4188_v57 }
0x12a9   :  { %v3429_v54 = vmul.f32 %v4186_v52, %v3421_v8 }
0x12aa   :  { %v3428_v17 = vmul.f32 %v3426_v10, %v3422_v47  ;;  %v3423_v60 = vadd.f32 0.5, %v3420_v30 }
0x12ac   :  { %v3430_v62 = vadd.f32 %v3429_v54, %v3428_v17 }
0x12ae   :  { %4189 = vtanh.f32 %v3430_v62 }
0x12b8   :  { %v4190_v45 = vpop.eup %4189 }
0x12b9   :  { %v3432_v21 = vmul.f32 %v4190_v45, %v3423_v60 }
0x12bb   :  { %v3439_v2 = vsel %vm1885_vm13, %v5801_v19, %v3432_v21  ;;  %v3441_v31 = vrot.slane %v3432_v21, 7 }
0x12bd   :  { %v3464_v43 = vsel %vm1874_vm8, %v3441_v31, %v3444_v16 }
0x12be   :  { %v3465_v18 = vsel %vm1876_vm9, %v3464_v43, %v3447_v50 }
0x12bf   :  { %v3466_v13 = vsel %vm1878_vm10, %v3465_v18, %v3450_v56 }
0x12c0   :  { %v3467_v48 = vsel %vm143_vm1, %v3466_v13, %v3453_v9 }
0x12c1   :  { %v3468_v7 = vsel %vm1881_vm11, %v3467_v48, %v3456_v29 }
0x12c2   :  { %v3469_v14 = vsel %vm1883_vm12, %v3468_v7, %v3459_v61 }
0x12c3   :  { %v3470_v19 = vsel %vm1885_vm13, %v3469_v14, %v3462_v15 }
0x12c4   :  { %v3471_v53 = vsel %vm356_vm14, %v3439_v2, %v3470_v19 }
0x12c5   :  { %v3472_v1 = vpack.c.bf16 %v3471_v53, %v3471_v53 }
0x12c7   :  { %3803 = vmatmul.mubr.bf16.vlgmr.msra.gmra.mrb[72].mxu0 %v3472_v1 }
0x139a   :  { %v3575_v44 = vpop.f32.mrb[72].mxu0 }
0x139b   :  { %v3576_v35 = vadd.f32 %v3575_v44, %v3492_v33  ;;  %v3804_v36 = vpop.f32.mrb[73].mxu0 }
0x139c   :  { %v3578_v37 = vpop.f32.mrb[74].mxu0 }
0x139d   :  { %3581 = vst [vmem:[#allocation13] sm:$0xff] %v3576_v35  ;;  %v3805_v41 = vpop.f32.mrb[75].mxu0 }
0x139e   :  { %4400 = shalt.err (!%p4397_p10)
}
0x139f   :  { %s4401_s7 = scalar_lea.hbm %s5859_s8, 128 }
0x13a0   :  { %p4402_p11 = scmp.ne.s32.totalorder %s5859_s8, %s4401_s7  ;;  %p4405_p12 = scmp.lt.u32.totalorder %s4401_s7, %s5859_s8 }
0x13a2   :  { %p4407_p13 = pnand %p4405_p12, %p4402_p11 }
0x13a4   :  { %4410 = shalt.err (!%p4407_p13)
}
0x13a5   :  { %3591 = dma.vmem_to_hbm [thread:$0]  %s3589_s20, 128, %s5859_s8, [#allocation4]  }
0x13a6   :  { %4419 = dma.done.wait [#allocation4], 128  }
0x13a7   :  { %4420 = vsyncadd [#allocation4], 4294967168 }
0x13a8   :  { %3595 = vsyncpa [#allocation3], 1 }
0x13a9   :  { %3596 = vsyncpa [#allocation6], 1 }
0x13aa   :  { %3597 = vsyncpa [#allocation9], 1 }
0x13ab   :  { %3598 = vsyncpa [#allocation12], 1 }
0x13ac   :  { %3599 = vsyncpa [#allocation4], 1 }

</bundles_post_ra>
